<compile_context>
chip_gen: v5e
topology: v5e:2x2
jax: 0.10.0
libtpu: 0.0.40
codegen_flags: <defaults>
</compile_context>

<pallas_src>
import functools

import jax
import jax.numpy as jnp
from jax.experimental import pallas as pl
from jax.experimental.pallas import tpu as pltpu

# ---------------- model dimensions (small, consistent with the module) -------
N_NODES = 32          # total nodes in the batched graph
F_IN = 16             # raw node feature dim
HIDDEN = 512          # GIN node embedding dim (head expects 512)
MID = 256             # linear1 output / BatchNorm1d features
NUM_LABELS = 8
PAD_LABELS = 128      # lane-dense padded label dim for the output store
N_GRAPHS = 2          # number of graphs in the batch
N_EDGES = 64

_VMEM = pl.BlockSpec(memory_space=pltpu.MemorySpace.VMEM)


# ---------------- fused Pallas kernel -----------------------------------------
def _fused_forward_kernel(
    edges_ref,    # (2, E)   int32   rows: [src; dst]
    batch_ref,    # (1, N)   int32   graph id per node
    v_ref,        # (N, F_IN) f32    raw node features
    enc_w_ref,    # (F_IN, H) bf16   node encoder weight
    gin_w_ref,    # (4, H, H) bf16   [g1_w1, g1_w2, g2_w1, g2_w2]
    lin1_w_ref,   # (H, MID)  bf16
    cls_w_ref,    # (MID, PAD_LABELS) bf16 (zero-padded lanes)
    bias_ref,     # (8, H)    f32    packed bias/BN slab (see init_params)
    logit_ref, prob_ref,              # (G, PAD_LABELS) f32 outputs
):
    f32 = jnp.float32
    bf16 = jnp.bfloat16

    n = v_ref.shape[0]
    e = edges_ref.shape[1]
    g = logit_ref.shape[0]

    # ---- dense adjacency A[dst, src] via one-hot contraction over edges -----
    src_row = edges_ref[pl.ds(0, 1), :]                       # (1, E)
    dst_row = edges_ref[pl.ds(1, 1), :]                       # (1, E)
    node_ids = jax.lax.broadcasted_iota(jnp.int32, (n, e), 0)  # (N, E)
    dst_oh = (node_ids == dst_row).astype(bf16)               # (N, E)
    src_oh = (node_ids == src_row).astype(bf16)               # (N, E)
    adj = jax.lax.dot_general(                                 # (N, N) f32
        dst_oh, src_oh,
        dimension_numbers=(((1,), (1,)), ((), ())),
        preferred_element_type=f32)
    adj_bf = adj.astype(bf16)       # small exact integer multiplicities

    # ---- mean-pool: one-hot membership + per-graph node counts --------------
    graph_ids = jax.lax.broadcasted_iota(jnp.int32, (g, n), 0)
    pool_mask = (graph_ids == batch_ref[...])                  # (G, N) bool
    counts = jnp.maximum(jnp.sum(pool_mask.astype(f32), axis=1, keepdims=True),
                         1.0)
    pool_bf = pool_mask.astype(bf16)

    # bf16-operand matmul with f32 accumulation (MXU-native on all chips).
    def mm(x_f32, w_bf16):
        return jnp.dot(x_f32.astype(bf16), w_bf16, preferred_element_type=f32)

    # ---- node encoder: Linear(F_in -> H) + ReLU ------------------------------
    h = jnp.maximum(mm(v_ref[...], enc_w_ref[...]) + bias_ref[pl.ds(0, 1), :],
                    0.0)

    # ---- 2x GINConv (eps=0): out = MLP(A @ x + x), MLP = Lin+ReLU+Lin+ReLU ---
    for k in range(2):                                 # statically unrolled
        agg = jnp.dot(adj_bf, h.astype(bf16), preferred_element_type=f32) + h
        m = jnp.maximum(
            mm(agg, gin_w_ref[2 * k]) + bias_ref[pl.ds(2 * k + 1, 1), :], 0.0)
        h = jnp.maximum(
            mm(m, gin_w_ref[2 * k + 1]) + bias_ref[pl.ds(2 * k + 2, 1), :], 0.0)

    # ---- global mean pool (sum via one-hot matmul, divide in f32) ------------
    pooled = jnp.dot(pool_bf, h.astype(bf16),
                     preferred_element_type=f32) / counts       # (G, H)

    # ---- linear1 + BatchNorm1d (training-mode stats, eps=1e-5) + ReLU --------
    z = mm(pooled, lin1_w_ref[...]) + bias_ref[pl.ds(5, 1), pl.ds(0, MID)]
    mean = jnp.mean(z, axis=0, keepdims=True)
    var = jnp.mean((z - mean) ** 2, axis=0, keepdims=True)
    gamma = bias_ref[pl.ds(6, 1), pl.ds(0, MID)]
    beta = bias_ref[pl.ds(6, 1), pl.ds(MID, MID)]
    zn = gamma * (z - mean) * jax.lax.rsqrt(var + 1e-5) + beta
    zr = jnp.maximum(zn, 0.0)

    # ---- classifier (zero-padded to 128 lanes -> lane-dense stores) ----------
    logits = mm(zr, cls_w_ref[...]) + bias_ref[pl.ds(7, 1), pl.ds(0, PAD_LABELS)]
    logit_ref[...] = logits
    prob_ref[...] = jax.nn.sigmoid(logits)


# ---------------- parameter init (deterministic, synthetic) -------------------
def init_params(key):
    ks = jax.random.split(key, 16)
    s = 0.05
    bf16 = jnp.bfloat16

    def mat(k, shape, dtype=jnp.float32):
        return (jax.random.normal(k, shape, jnp.float32) * s).astype(dtype)

    enc_w = mat(ks[0], (F_IN, HIDDEN), bf16)
    enc_b = mat(ks[1], (HIDDEN,))
    g1_w1 = mat(ks[2], (HIDDEN, HIDDEN), bf16); g1_b1 = mat(ks[3], (HIDDEN,))
    g1_w2 = mat(ks[4], (HIDDEN, HIDDEN), bf16); g1_b2 = mat(ks[5], (HIDDEN,))
    g2_w1 = mat(ks[6], (HIDDEN, HIDDEN), bf16); g2_b1 = mat(ks[7], (HIDDEN,))
    g2_w2 = mat(ks[8], (HIDDEN, HIDDEN), bf16); g2_b2 = mat(ks[9], (HIDDEN,))
    lin1_w = mat(ks[10], (HIDDEN, MID), bf16);  lin1_b = mat(ks[11], (MID,))
    cls_w = mat(ks[12], (MID, NUM_LABELS));     cls_b = mat(ks[13], (NUM_LABELS,))
    bn_gamma = jnp.ones((MID,), jnp.float32)
    bn_beta = jnp.zeros((MID,), jnp.float32)

    def row(vec):
        v2 = vec.reshape(1, -1).astype(jnp.float32)
        return jnp.pad(v2, ((0, 0), (0, HIDDEN - v2.shape[1])))

    # (8, HIDDEN) f32 slab:
    #   0: enc_b | 1: g1_b1 | 2: g1_b2 | 3: g2_b1 | 4: g2_b2
    #   5: lin1_b (first MID) | 6: [bn_gamma | bn_beta] | 7: cls_b (first 128)
    bias = jnp.concatenate([
        row(enc_b),
        row(g1_b1), row(g1_b2), row(g2_b1), row(g2_b2),
        row(lin1_b),
        row(jnp.concatenate([bn_gamma, bn_beta])),
        row(jnp.pad(cls_b, (0, PAD_LABELS - NUM_LABELS))),
    ], axis=0)

    return dict(
        enc_w=enc_w,
        gin_w=jnp.stack([g1_w1, g1_w2, g2_w1, g2_w2]),   # (4, H, H) bf16
        lin1_w=lin1_w,
        cls_w=jnp.pad(cls_w, ((0, 0), (0, PAD_LABELS - NUM_LABELS))).astype(bf16),
        bias=bias,
    )


# ---------------- full forward (one fused pallas_call) ------------------------
@functools.partial(jax.jit, static_argnames=("num_graphs",))
def drug_classification_forward(v, edges, batch, params, *, num_graphs=N_GRAPHS):
    p = params
    edges2e = edges.astype(jnp.int32)                     # (2, E)
    batch_row = batch.astype(jnp.int32).reshape(1, -1)    # (1, N)

    logits_pad, probs_pad = pl.pallas_call(
        _fused_forward_kernel,
        out_shape=(
            jax.ShapeDtypeStruct((num_graphs, PAD_LABELS), jnp.float32),
            jax.ShapeDtypeStruct((num_graphs, PAD_LABELS), jnp.float32),
        ),
        in_specs=[_VMEM] * 8,
        out_specs=(_VMEM, _VMEM),
    )(
        edges2e, batch_row, v.astype(jnp.float32),
        p["enc_w"], p["gin_w"], p["lin1_w"], p["cls_w"], p["bias"],
    )
    return logits_pad[:, :NUM_LABELS], probs_pad[:, :NUM_LABELS]


# ---------------- main ---------------------------------------------------------
if __name__ == "__main__":
    key = jax.random.PRNGKey(0)
    k_v, k_e, k_p = jax.random.split(key, 3)

    v = jax.random.normal(k_v, (N_NODES, F_IN), jnp.float32)
    edges = jax.random.randint(k_e, (2, N_EDGES), 0, N_NODES, jnp.int32)
    batch = jnp.concatenate([
        jnp.zeros((N_NODES // 2,), jnp.int32),
        jnp.ones((N_NODES - N_NODES // 2,), jnp.int32),
    ])
    params = init_params(k_p)

    logits, probs = drug_classification_forward(v, edges, batch, params)
    jax.block_until_ready((logits, probs))

    assert logits.shape == (N_GRAPHS, NUM_LABELS)
    assert probs.shape == (N_GRAPHS, NUM_LABELS)
    assert bool(jnp.all(jnp.isfinite(logits)))
    assert bool(jnp.all((probs >= 0.0) & (probs <= 1.0)))
    print("KERNEL_OK")
</pallas_src>

<mosaic_0001>
module attributes {stable_mosaic.version = 11 : i64} {
  func.func @_fused_forward_kernel(%arg0: memref<2x64xi32, #tpu.memory_space<vmem>>, %arg1: memref<1x32xi32, #tpu.memory_space<vmem>>, %arg2: memref<32x16xf32, #tpu.memory_space<vmem>>, %arg3: memref<16x512xbf16, #tpu.memory_space<vmem>>, %arg4: memref<4x512x512xbf16, #tpu.memory_space<vmem>>, %arg5: memref<512x256xbf16, #tpu.memory_space<vmem>>, %arg6: memref<256x128xbf16, #tpu.memory_space<vmem>>, %arg7: memref<8x512xf32, #tpu.memory_space<vmem>>, %arg8: memref<2x128xf32, #tpu.memory_space<vmem>>, %arg9: memref<2x128xf32, #tpu.memory_space<vmem>>) attributes {dimension_semantics = [], scalar_prefetch = 0 : i64, scratch_operands = 0 : i64, tpu.core_type = #tpu.core_type<tc>} {
    %c0 = arith.constant 0 : index
    %c0_0 = arith.constant 0 : index
    %0 = vector.load %arg0[%c0, %c0_0] : memref<2x64xi32, #tpu.memory_space<vmem>>, vector<1x64xi32>
    %c1 = arith.constant 1 : index
    %c0_1 = arith.constant 0 : index
    %1 = vector.load %arg0[%c1, %c0_1] : memref<2x64xi32, #tpu.memory_space<vmem>>, vector<1x64xi32>
    %2 = tpu.iota {dimensions = array<i32: 0>} : vector<32x64xi32>
    %3 = vector.broadcast %1 : vector<1x64xi32> to vector<32x64xi32>
    %4 = arith.cmpi eq, %2, %3 : vector<32x64xi32>
    %5 = arith.extui %4 : vector<32x64xi1> to vector<32x64xi32>
    %6 = arith.sitofp %5 : vector<32x64xi32> to vector<32x64xf32>
    %7 = arith.truncf %6 : vector<32x64xf32> to vector<32x64xbf16>
    %8 = vector.broadcast %0 : vector<1x64xi32> to vector<32x64xi32>
    %9 = arith.cmpi eq, %2, %8 : vector<32x64xi32>
    %10 = arith.extui %9 : vector<32x64xi1> to vector<32x64xi32>
    %11 = arith.sitofp %10 : vector<32x64xi32> to vector<32x64xf32>
    %12 = arith.truncf %11 : vector<32x64xf32> to vector<32x64xbf16>
    %cst = arith.constant dense<0.000000e+00> : vector<32x32xf32>
    %13 = tpu.matmul %7, %12, %cst {dimension_numbers = #tpu.dot_dimension_numbers<[1], [1], [0], [0], [0, 0, 1, 0], [], []>} : vector<32x64xbf16>, vector<32x64xbf16>, vector<32x32xf32> -> vector<32x32xf32>
    %14 = arith.truncf %13 : vector<32x32xf32> to vector<32x32xbf16>
    %15 = tpu.iota {dimensions = array<i32: 0>} : vector<2x32xi32>
    %c0_2 = arith.constant 0 : index
    %c0_3 = arith.constant 0 : index
    %16 = vector.load %arg1[%c0_2, %c0_3] : memref<1x32xi32, #tpu.memory_space<vmem>>, vector<1x32xi32>
    %17 = vector.broadcast %16 : vector<1x32xi32> to vector<2x32xi32>
    %18 = arith.cmpi eq, %15, %17 : vector<2x32xi32>
    %19 = arith.extui %18 : vector<2x32xi1> to vector<2x32xi32>
    %20 = arith.sitofp %19 : vector<2x32xi32> to vector<2x32xf32>
    %cst_4 = arith.constant dense<0.000000e+00> : vector<2xf32>
    %21 = vector.multi_reduction <add>, %20, %cst_4 [1] : vector<2x32xf32> to vector<2xf32>
    %22 = vector.shape_cast %21 : vector<2xf32> to vector<2x1xf32>
    %cst_5 = arith.constant 1.000000e+00 : f32
    %23 = vector.broadcast %cst_5 : f32 to vector<2x1xf32>
    %24 = arith.maximumf %22, %23 : vector<2x1xf32>
    %25 = arith.extui %18 : vector<2x32xi1> to vector<2x32xi32>
    %26 = arith.sitofp %25 : vector<2x32xi32> to vector<2x32xf32>
    %27 = arith.truncf %26 : vector<2x32xf32> to vector<2x32xbf16>
    %c0_6 = arith.constant 0 : index
    %c0_7 = arith.constant 0 : index
    %28 = vector.load %arg2[%c0_6, %c0_7] : memref<32x16xf32, #tpu.memory_space<vmem>>, vector<32x16xf32>
    %c0_8 = arith.constant 0 : index
    %c0_9 = arith.constant 0 : index
    %29 = vector.load %arg3[%c0_8, %c0_9] : memref<16x512xbf16, #tpu.memory_space<vmem>>, vector<16x512xbf16>
    %30 = arith.truncf %28 : vector<32x16xf32> to vector<32x16xbf16>
    %cst_10 = arith.constant dense<0.000000e+00> : vector<32x512xf32>
    %31 = tpu.matmul %30, %29, %cst_10 {dimension_numbers = #tpu.dot_dimension_numbers<[1], [0], [0], [1], [0, 0, 1, 1], [], []>} : vector<32x16xbf16>, vector<16x512xbf16>, vector<32x512xf32> -> vector<32x512xf32>
    %c0_11 = arith.constant 0 : index
    %c0_12 = arith.constant 0 : index
    %32 = vector.load %arg7[%c0_11, %c0_12] : memref<8x512xf32, #tpu.memory_space<vmem>>, vector<1x512xf32>
    %33 = vector.broadcast %32 : vector<1x512xf32> to vector<32x512xf32>
    %34 = arith.addf %31, %33 : vector<32x512xf32>
    %cst_13 = arith.constant 0.000000e+00 : f32
    %35 = vector.broadcast %cst_13 : f32 to vector<32x512xf32>
    %36 = arith.maximumf %34, %35 : vector<32x512xf32>
    %37 = arith.truncf %36 : vector<32x512xf32> to vector<32x512xbf16>
    %cst_14 = arith.constant dense<0.000000e+00> : vector<32x512xf32>
    %38 = tpu.matmul %14, %37, %cst_14 {dimension_numbers = #tpu.dot_dimension_numbers<[1], [0], [0], [1], [0, 0, 1, 1], [], []>} : vector<32x32xbf16>, vector<32x512xbf16>, vector<32x512xf32> -> vector<32x512xf32>
    %39 = arith.addf %38, %36 : vector<32x512xf32>
    %c0_15 = arith.constant 0 : index
    %c0_16 = arith.constant 0 : index
    %c0_17 = arith.constant 0 : index
    %40 = vector.load %arg4[%c0_15, %c0_16, %c0_17] : memref<4x512x512xbf16, #tpu.memory_space<vmem>>, vector<1x512x512xbf16>
    %41 = vector.shape_cast %40 : vector<1x512x512xbf16> to vector<512x512xbf16>
    %42 = arith.truncf %39 : vector<32x512xf32> to vector<32x512xbf16>
    %cst_18 = arith.constant dense<0.000000e+00> : vector<32x512xf32>
    %43 = tpu.matmul %42, %41, %cst_18 {dimension_numbers = #tpu.dot_dimension_numbers<[1], [0], [0], [1], [0, 0, 1, 1], [], []>} : vector<32x512xbf16>, vector<512x512xbf16>, vector<32x512xf32> -> vector<32x512xf32>
    %c1_19 = arith.constant 1 : index
    %c0_20 = arith.constant 0 : index
    %44 = vector.load %arg7[%c1_19, %c0_20] : memref<8x512xf32, #tpu.memory_space<vmem>>, vector<1x512xf32>
    %45 = vector.broadcast %44 : vector<1x512xf32> to vector<32x512xf32>
    %46 = arith.addf %43, %45 : vector<32x512xf32>
    %cst_21 = arith.constant 0.000000e+00 : f32
    %47 = vector.broadcast %cst_21 : f32 to vector<32x512xf32>
    %48 = arith.maximumf %46, %47 : vector<32x512xf32>
    %c1_22 = arith.constant 1 : index
    %c0_23 = arith.constant 0 : index
    %c0_24 = arith.constant 0 : index
    %49 = vector.load %arg4[%c1_22, %c0_23, %c0_24] : memref<4x512x512xbf16, #tpu.memory_space<vmem>>, vector<1x512x512xbf16>
    %50 = vector.shape_cast %49 : vector<1x512x512xbf16> to vector<512x512xbf16>
    %51 = arith.truncf %48 : vector<32x512xf32> to vector<32x512xbf16>
    %cst_25 = arith.constant dense<0.000000e+00> : vector<32x512xf32>
    %52 = tpu.matmul %51, %50, %cst_25 {dimension_numbers = #tpu.dot_dimension_numbers<[1], [0], [0], [1], [0, 0, 1, 1], [], []>} : vector<32x512xbf16>, vector<512x512xbf16>, vector<32x512xf32> -> vector<32x512xf32>
    %c2 = arith.constant 2 : index
    %c0_26 = arith.constant 0 : index
    %53 = vector.load %arg7[%c2, %c0_26] : memref<8x512xf32, #tpu.memory_space<vmem>>, vector<1x512xf32>
    %54 = vector.broadcast %53 : vector<1x512xf32> to vector<32x512xf32>
    %55 = arith.addf %52, %54 : vector<32x512xf32>
    %cst_27 = arith.constant 0.000000e+00 : f32
    %56 = vector.broadcast %cst_27 : f32 to vector<32x512xf32>
    %57 = arith.maximumf %55, %56 : vector<32x512xf32>
    %58 = arith.truncf %57 : vector<32x512xf32> to vector<32x512xbf16>
    %cst_28 = arith.constant dense<0.000000e+00> : vector<32x512xf32>
    %59 = tpu.matmul %14, %58, %cst_28 {dimension_numbers = #tpu.dot_dimension_numbers<[1], [0], [0], [1], [0, 0, 1, 1], [], []>} : vector<32x32xbf16>, vector<32x512xbf16>, vector<32x512xf32> -> vector<32x512xf32>
    %60 = arith.addf %59, %57 : vector<32x512xf32>
    %c2_29 = arith.constant 2 : index
    %c0_30 = arith.constant 0 : index
    %c0_31 = arith.constant 0 : index
    %61 = vector.load %arg4[%c2_29, %c0_30, %c0_31] : memref<4x512x512xbf16, #tpu.memory_space<vmem>>, vector<1x512x512xbf16>
    %62 = vector.shape_cast %61 : vector<1x512x512xbf16> to vector<512x512xbf16>
    %63 = arith.truncf %60 : vector<32x512xf32> to vector<32x512xbf16>
    %cst_32 = arith.constant dense<0.000000e+00> : vector<32x512xf32>
    %64 = tpu.matmul %63, %62, %cst_32 {dimension_numbers = #tpu.dot_dimension_numbers<[1], [0], [0], [1], [0, 0, 1, 1], [], []>} : vector<32x512xbf16>, vector<512x512xbf16>, vector<32x512xf32> -> vector<32x512xf32>
    %c3 = arith.constant 3 : index
    %c0_33 = arith.constant 0 : index
    %65 = vector.load %arg7[%c3, %c0_33] : memref<8x512xf32, #tpu.memory_space<vmem>>, vector<1x512xf32>
    %66 = vector.broadcast %65 : vector<1x512xf32> to vector<32x512xf32>
    %67 = arith.addf %64, %66 : vector<32x512xf32>
    %cst_34 = arith.constant 0.000000e+00 : f32
    %68 = vector.broadcast %cst_34 : f32 to vector<32x512xf32>
    %69 = arith.maximumf %67, %68 : vector<32x512xf32>
    %c3_35 = arith.constant 3 : index
    %c0_36 = arith.constant 0 : index
    %c0_37 = arith.constant 0 : index
    %70 = vector.load %arg4[%c3_35, %c0_36, %c0_37] : memref<4x512x512xbf16, #tpu.memory_space<vmem>>, vector<1x512x512xbf16>
    %71 = vector.shape_cast %70 : vector<1x512x512xbf16> to vector<512x512xbf16>
    %72 = arith.truncf %69 : vector<32x512xf32> to vector<32x512xbf16>
    %cst_38 = arith.constant dense<0.000000e+00> : vector<32x512xf32>
    %73 = tpu.matmul %72, %71, %cst_38 {dimension_numbers = #tpu.dot_dimension_numbers<[1], [0], [0], [1], [0, 0, 1, 1], [], []>} : vector<32x512xbf16>, vector<512x512xbf16>, vector<32x512xf32> -> vector<32x512xf32>
    %c4 = arith.constant 4 : index
    %c0_39 = arith.constant 0 : index
    %74 = vector.load %arg7[%c4, %c0_39] : memref<8x512xf32, #tpu.memory_space<vmem>>, vector<1x512xf32>
    %75 = vector.broadcast %74 : vector<1x512xf32> to vector<32x512xf32>
    %76 = arith.addf %73, %75 : vector<32x512xf32>
    %cst_40 = arith.constant 0.000000e+00 : f32
    %77 = vector.broadcast %cst_40 : f32 to vector<32x512xf32>
    %78 = arith.maximumf %76, %77 : vector<32x512xf32>
    %79 = arith.truncf %78 : vector<32x512xf32> to vector<32x512xbf16>
    %cst_41 = arith.constant dense<0.000000e+00> : vector<2x512xf32>
    %80 = tpu.matmul %27, %79, %cst_41 {dimension_numbers = #tpu.dot_dimension_numbers<[1], [0], [0], [1], [0, 0, 1, 1], [], []>} : vector<2x32xbf16>, vector<32x512xbf16>, vector<2x512xf32> -> vector<2x512xf32>
    %81 = vector.broadcast %24 : vector<2x1xf32> to vector<2x512xf32>
    %82 = arith.divf %80, %81 : vector<2x512xf32>
    %c0_42 = arith.constant 0 : index
    %c0_43 = arith.constant 0 : index
    %83 = vector.load %arg5[%c0_42, %c0_43] : memref<512x256xbf16, #tpu.memory_space<vmem>>, vector<512x256xbf16>
    %84 = arith.truncf %82 : vector<2x512xf32> to vector<2x512xbf16>
    %cst_44 = arith.constant dense<0.000000e+00> : vector<2x256xf32>
    %85 = tpu.matmul %84, %83, %cst_44 {dimension_numbers = #tpu.dot_dimension_numbers<[1], [0], [0], [1], [0, 0, 1, 1], [], []>} : vector<2x512xbf16>, vector<512x256xbf16>, vector<2x256xf32> -> vector<2x256xf32>
    %c5 = arith.constant 5 : index
    %c0_45 = arith.constant 0 : index
    %86 = vector.load %arg7[%c5, %c0_45] : memref<8x512xf32, #tpu.memory_space<vmem>>, vector<1x256xf32>
    %87 = vector.broadcast %86 : vector<1x256xf32> to vector<2x256xf32>
    %88 = arith.addf %85, %87 : vector<2x256xf32>
    %cst_46 = arith.constant dense<0.000000e+00> : vector<256xf32>
    %89 = vector.multi_reduction <add>, %88, %cst_46 [0] : vector<2x256xf32> to vector<256xf32>
    %90 = vector.shape_cast %89 : vector<256xf32> to vector<1x256xf32>
    %cst_47 = arith.constant 2.000000e+00 : f32
    %91 = vector.broadcast %cst_47 : f32 to vector<1x256xf32>
    %92 = arith.divf %90, %91 : vector<1x256xf32>
    %93 = vector.broadcast %92 : vector<1x256xf32> to vector<2x256xf32>
    %94 = arith.subf %88, %93 : vector<2x256xf32>
    %95 = arith.mulf %94, %94 : vector<2x256xf32>
    %cst_48 = arith.constant dense<0.000000e+00> : vector<256xf32>
    %96 = vector.multi_reduction <add>, %95, %cst_48 [0] : vector<2x256xf32> to vector<256xf32>
    %97 = vector.shape_cast %96 : vector<256xf32> to vector<1x256xf32>
    %cst_49 = arith.constant 2.000000e+00 : f32
    %98 = vector.broadcast %cst_49 : f32 to vector<1x256xf32>
    %99 = arith.divf %97, %98 : vector<1x256xf32>
    %c6 = arith.constant 6 : index
    %c0_50 = arith.constant 0 : index
    %100 = vector.load %arg7[%c6, %c0_50] : memref<8x512xf32, #tpu.memory_space<vmem>>, vector<1x256xf32>
    %c6_51 = arith.constant 6 : index
    %c256 = arith.constant 256 : index
    %101 = vector.load %arg7[%c6_51, %c256] : memref<8x512xf32, #tpu.memory_space<vmem>>, vector<1x256xf32>
    %102 = vector.broadcast %92 : vector<1x256xf32> to vector<2x256xf32>
    %103 = arith.subf %88, %102 : vector<2x256xf32>
    %104 = vector.broadcast %100 : vector<1x256xf32> to vector<2x256xf32>
    %105 = arith.mulf %104, %103 : vector<2x256xf32>
    %cst_52 = arith.constant 9.99999974E-6 : f32
    %106 = vector.broadcast %cst_52 : f32 to vector<1x256xf32>
    %107 = arith.addf %99, %106 : vector<1x256xf32>
    %108 = math.rsqrt %107 : vector<1x256xf32>
    %109 = vector.broadcast %108 : vector<1x256xf32> to vector<2x256xf32>
    %110 = arith.mulf %105, %109 : vector<2x256xf32>
    %111 = vector.broadcast %101 : vector<1x256xf32> to vector<2x256xf32>
    %112 = arith.addf %110, %111 : vector<2x256xf32>
    %cst_53 = arith.constant 0.000000e+00 : f32
    %113 = vector.broadcast %cst_53 : f32 to vector<2x256xf32>
    %114 = arith.maximumf %112, %113 : vector<2x256xf32>
    %c0_54 = arith.constant 0 : index
    %c0_55 = arith.constant 0 : index
    %115 = vector.load %arg6[%c0_54, %c0_55] : memref<256x128xbf16, #tpu.memory_space<vmem>>, vector<256x128xbf16>
    %116 = arith.truncf %114 : vector<2x256xf32> to vector<2x256xbf16>
    %cst_56 = arith.constant dense<0.000000e+00> : vector<2x128xf32>
    %117 = tpu.matmul %116, %115, %cst_56 {dimension_numbers = #tpu.dot_dimension_numbers<[1], [0], [0], [1], [0, 0, 1, 1], [], []>} : vector<2x256xbf16>, vector<256x128xbf16>, vector<2x128xf32> -> vector<2x128xf32>
    %c7 = arith.constant 7 : index
    %c0_57 = arith.constant 0 : index
    %118 = vector.load %arg7[%c7, %c0_57] : memref<8x512xf32, #tpu.memory_space<vmem>>, vector<1x128xf32>
    %119 = vector.broadcast %118 : vector<1x128xf32> to vector<2x128xf32>
    %120 = arith.addf %117, %119 : vector<2x128xf32>
    %c0_58 = arith.constant 0 : index
    %c0_59 = arith.constant 0 : index
    %121 = vector.load %arg8[%c0_58, %c0_59] : memref<2x128xf32, #tpu.memory_space<vmem>>, vector<2x128xf32>
    tpu.vector_store %arg8[%c0_58, %c0_59], %120 {strides = array<i32>} : memref<2x128xf32, #tpu.memory_space<vmem>>, vector<2x128xf32>,
    %122 = arith.negf %120 : vector<2x128xf32>
    %123 = math.exp %122 : vector<2x128xf32>
    %cst_60 = arith.constant 1.000000e+00 : f32
    %124 = vector.broadcast %cst_60 : f32 to vector<2x128xf32>
    %125 = arith.addf %124, %123 : vector<2x128xf32>
    %126 = arith.divf %124, %125 : vector<2x128xf32>
    %c0_61 = arith.constant 0 : index
    %c0_62 = arith.constant 0 : index
    %127 = vector.load %arg9[%c0_61, %c0_62] : memref<2x128xf32, #tpu.memory_space<vmem>>, vector<2x128xf32>
    tpu.vector_store %arg9[%c0_61, %c0_62], %126 {strides = array<i32>} : memref<2x128xf32, #tpu.memory_space<vmem>>, vector<2x128xf32>,
    return
  }
}

</mosaic_0001>

<bundles_post_ra>
// kernel: drug_classification_forward.1
= control target key start
LH: loop header
LB: loop body
LE: loop exit
PB: predicated region body
PF: predicated region fallthrough
CT: control target
= control target key end

     0   :  { %15 = vsyncpa [#allocation3], 0  ;;  %s10064_s0 = inlined_call_operand.hbm [shape: s32[2,64], index: 0, kind: input, shape index: {}]   ;;  %s10065_s1 = inlined_call_operand.hbm [shape: s32[1,32], index: 1, kind: input, shape index: {}]   ;;  %s10066_s2 = inlined_call_operand.vmem [shape: f32[32,16], index: 2, kind: input, shape index: {}]   ;;  %s10067_s3 = inlined_call_operand.hbm [shape: bf16[16,512], index: 3, kind: input, shape index: {}]   ;;  %s10068_s4 = inlined_call_operand.hbm [shape: bf16[4,512,512], index: 4, kind: input, shape index: {}]   ;;  %s10069_s5 = inlined_call_operand.hbm [shape: bf16[512,256], index: 5, kind: input, shape index: {}]   ;;  %s10070_s6 = inlined_call_operand.hbm [shape: bf16[256,128], index: 6, kind: input, shape index: {}]   ;;  %s10071_s7 = inlined_call_operand.hbm [shape: f32[8,512], index: 7, kind: input, shape index: {}]   ;;  %s10072_s8 = inlined_call_operand.hbm [shape: f32[2,128], index: 8, kind: output, shape index: {0}]   ;;  %s10073_s9 = inlined_call_operand.hbm [shape: f32[2,128], index: 9, kind: output, shape index: {1}]  }
   0x1   :  { %16 = vsyncpa [#allocation6], 0 }
   0x2   :  { %17 = vsyncpa [#allocation9], 0 }
   0x3   :  { %18 = vsyncpa [#allocation12], 0 }
   0x4   :  { %19 = vsyncpa [#allocation4], 0  ;;  %s37_s11 = sshll.u32 %s10065_s1, 4  ;;  %s38_s11 = int_to_ptr.hbm [resolvable:$true] %s37_s11 }
   0x5   :  { %20 = vsyncpa [#allocation16], 0  ;;  %s9127_s12 = smov [#allocation5]   ;;  %s62_s16 = sshll.u32 %s10068_s4, 4  ;;  %s63_s16 = int_to_ptr.hbm [resolvable:$true] %s62_s16 }
   0x6   :  { %s39_s13 = sshll.u32 %s9127_s12, 4  ;;  %s9128_s17 = smov [#allocation8]   ;;  %s40_s13 = int_to_ptr.vmem [resolvable:$true] %s39_s13 }
   0x7   :  { %42 = dma.hbm_to_vmem [thread:$0]  %s38_s11, 16, %s40_s13, [#allocation6]  }
   0x8   :  { %s64_s18 = sshll.u32 %s9128_s17, 4  ;;  %s88_s21 = sshll.u32 %s10070_s6, 4  ;;  %s65_s18 = int_to_ptr.vmem [resolvable:$true] %s64_s18  ;;  %s89_s21 = int_to_ptr.hbm [resolvable:$true] %s88_s21 }
   0x9   :  { %s9129_s1 = smov 256   ;;  %s9130_s22 = smov 16  }
   0xa   :  { %70 = dma.hbm_to_vmem [thread:$0]  %s63_s16, 65536, %s65_s18, [#allocation9], %s9129_s1, %s9129_s1, %s9130_s22  }
   0xb   :  { %s9131_s23 = smov [#allocation11]   ;;  %s26_s27 = sshll.u32 %s10064_s0, 4  ;;  %s27_s27 = int_to_ptr.hbm [resolvable:$true] %s26_s27 }
   0xc   :  { %s90_s24 = sshll.u32 %s9131_s23, 4  ;;  %s9132_s4 = smov 64   ;;  %s91_s24 = int_to_ptr.vmem [resolvable:$true] %s90_s24 }
   0xd   :  { %s9133_s28 = smov 4   ;;  %s9134_s29 = smov [#allocation2]  }
   0xe   :  { %96 = dma.hbm_to_vmem [thread:$0]  %s89_s21, 2048, %s91_s24, [#allocation12], %s9132_s4, %s9132_s4, %s9133_s28  }
   0xf   :  { %s28_s30 = sshll.u32 %s9134_s29, 4  ;;  %s49_s11 = sshll.u32 %s10067_s3, 4  ;;  %s29_s30 = int_to_ptr.vmem [resolvable:$true] %s28_s30  ;;  %s50_s11 = int_to_ptr.hbm [resolvable:$true] %s49_s11 }
  0x10   :  { %31 = dma.hbm_to_vmem [thread:$0]  %s27_s27, 32, %s29_s30, [#allocation3]  }
  0x11   :  { %s75_s14 = sshll.u32 %s10069_s5, 4  ;;  %s9135_s15 = smov [#allocation7]   ;;  %s76_s14 = int_to_ptr.hbm [resolvable:$true] %s75_s14 }
  0x12   :  { %s51_s16 = sshll.u32 %s9135_s15, 4  ;;  %s9136_s0 = smov [#allocation10]   ;;  %s52_s16 = int_to_ptr.vmem [resolvable:$true] %s51_s16 }
  0x13   :  { %57 = dma.hbm_to_vmem [thread:$0]  %s50_s11, 512, %s52_s16, [#allocation6], %s9129_s1, %s9129_s1, %s9130_s22  }
  0x14   :  { %s77_s17 = sshll.u32 %s9136_s0, 4  ;;  %s9137_s18 = smov 128   ;;  %s78_s17 = int_to_ptr.vmem [resolvable:$true] %s77_s17 }
  0x15   :  { %s9138_s19 = smov 8   ;;  %s102_s21 = sshll.u32 %s10071_s7, 4  ;;  %s103_s21 = int_to_ptr.hbm [resolvable:$true] %s102_s21 }
  0x16   :  { %83 = dma.hbm_to_vmem [thread:$0]  %s76_s14, 8192, %s78_s17, [#allocation9], %s9137_s18, %s9137_s18, %s9138_s19  }
  0x17   :  { %s9139_s23 = smov [#allocation13]  }
  0x18   :  { %s104_s24 = sshll.u32 %s9139_s23, 4  ;;  %s105_s24 = int_to_ptr.vmem [resolvable:$true] %s104_s24 }
  0x19   :  { %107 = dma.hbm_to_vmem [thread:$0]  %s103_s21, 512, %s105_s24, [#allocation12]  }
  0x1a   :  { %9115 = dma.done.wait [#allocation3], 32  }
  0x1b   :  { %9116 = vsyncadd [#allocation3], 4294967264 }
  0x1c   :  { %9117 = dma.done.wait [#allocation6], 528  }
  0x1d   :  { %9118 = vsyncadd [#allocation6], 4294966768 }
  0x1e   :  { %9119 = dma.done.wait [#allocation9], 73728  }
  0x1f   :  { %9120 = vsyncadd [#allocation9], 4294893568 }
  0x20   :  { %9121 = dma.done.wait [#allocation12], 2560  }
  0x21   :  { %9122 = vsyncadd [#allocation12], 4294964736  ;;  %v139_v0 = vlaneseq  ;;  %v5859_v5 = vld [vmem:[#allocation7] sm:$0xf]  ;;  %v8272_v6 = vld [vmem:[#allocation7 + $0xc] sm:$0xf0] }
  0x22   :  { %v8270_v7 = vld [vmem:[#allocation7 + $0x4] sm:$0xf]  ;;  %v5860_v8 = vor.u32 %v8272_v6, %v5859_v5  ;;  %v5861_v9 = vld [vmem:[#allocation7 + $0x10] sm:$0xf0]  ;;  %v5867_v10 = vld [vmem:[#allocation7 + $0x8] sm:$0xf] }
  0x23   :  { %v9215_v1 = vshrl.u32 %v139_v0, 7  ;;  %v8273_v11 = vld [vmem:[#allocation7 + $0x14] sm:$0xf0]  ;;  %v5864_v12 = vor.u32 %v8270_v7, %v5861_v9  ;;  %v221_v14 = vld [vmem:[%s10066_s2 + $0x10] sm:$0xff]  ;;  %vm259_vm0 = vcmask 130048   ;;  %v219_v16 = vld [vmem:[%s10066_s2] sm:$0xff] }
  0x24   :  { %v5868_v13 = vor.u32 %v8273_v11, %v5867_v10  ;;  %v222_v15 = vld [vmem:[%s10066_s2 + $0x18] sm:$0xff]  ;;  %8866 = vmatpush.bf16.msra.mxu1 %v5860_v8  ;;  %v220_v18 = vld [vmem:[%s10066_s2 + $0x8] sm:$0xff]  ;;  %v8884_v19 = vld [vmem:[#allocation2] ss:$0 sm:$0xff]  ;;  %v9140_v23 = vmov 0.0   ;;  %vm174_vm5 = vcmask 523264  }
  0x25   :  { %v142_v2 = vadd.s32 16, %v9215_v1  ;;  %v143_v3 = vadd.s32 24, %v9215_v1  ;;  %v141_v4 = vadd.s32 8, %v9215_v1  ;;  %v228_v17 = vpack.c.bf16 %v222_v15, %v221_v14  ;;  %292 = vmatpush.bf16.msra.mxu2 %v5864_v12  ;;  %v8271_v21 = vld [vmem:[#allocation7 + $0xc] sm:$0xf]  ;;  %s9142_s2 = smov [#allocation14]  }
  0x26   :  { %311 = vmatpush.bf16.msra.mxu3 %v5868_v13  ;;  %v227_v20 = vpack.c.bf16 %v220_v18, %v219_v16  ;;  %v5869_v22 = vld [vmem:[#allocation7 + $0x18] sm:$0xf0]  ;;  %vm160_vm3 = vcmp.eq.s32.totalorder %v9215_v1, %v8884_v19  ;;  %v229_v40 = vld [vmem:[#allocation13] ss:$8 sm:$0xf]  ;;  %vm366_vm10 = vcmask 261120  }
  0x27   :  { %vm162_vm1 = vcmp.eq.s32.totalorder %v142_v2, %v8884_v19  ;;  %vm163_vm2 = vcmp.eq.s32.totalorder %v143_v3, %v8884_v19  ;;  %vm161_vm4 = vcmp.eq.s32.totalorder %v141_v4, %v8884_v19  ;;  %5874 = vmatmul.msk.bf16.vlgmr.msra.gmra.mxu1 %vm259_vm0, %v228_v17  ;;  %v5872_v27 = vor.u32 %v8271_v21, %v5869_v22  ;;  %v8885_v32 = vld [vmem:[#allocation2 + $0x1] ss:$0 sm:$0xff]  ;;  %s5815_s28 = sshll.u32 %s9142_s2, 4  ;;  %s5817_s10 = sshll.u32 %s10072_s8, 4  ;;  %s5816_s28 = int_to_ptr.vmem [resolvable:$true] %s5815_s28  ;;  %s5818_s10 = int_to_ptr.hbm [resolvable:$true] %s5817_s10 }
  0x28   :  { %v5852_v24 = vsel %vm162_vm1, 1.0, %v9140_v23  ;;  %v5853_v25 = vsel %vm163_vm2, 1.0, %v9140_v23  ;;  %5875 = vmatmul.msk.bf16.vlgmr.msra.gmra.mxu2 %vm259_vm0, %v227_v20  ;;  %v5850_v28 = vsel %vm160_vm3, 1.0, %v9140_v23  ;;  %v5851_v29 = vsel %vm161_vm4, 1.0, %v9140_v23  ;;  %s9143_s8 = smov [#allocation15]   ;;  %s5828_s13 = sshll.u32 %s10073_s9, 4  ;;  %s5829_s13 = int_to_ptr.hbm [resolvable:$true] %s5828_s13 }
  0x29   :  { %5877 = vmatmul.msk.bf16.vlgmr.msra.gmra.mxu3 %vm259_vm0, %v227_v20  ;;  %v173_v26 = vpack.c.bf16 %v5853_v25, %v5852_v24  ;;  %330 = vmatpush.bf16.msrb.mxu1 %v5872_v27  ;;  %v172_v31 = vpack.c.bf16 %v5851_v29, %v5850_v28  ;;  %vm145_vm6 = vcmp.eq.s32.totalorder %v9215_v1, %v8885_v32  ;;  %v9254_v42 = vperm.slane %v229_v40, 0  ;;  %s5826_s6 = sshll.u32 %s9143_s8, 4  ;;  %s5827_s6 = int_to_ptr.vmem [resolvable:$true] %s5826_s6 }
  0x2a   :  { %vm146_vm7 = vcmp.eq.s32.totalorder %v141_v4, %v8885_v32  ;;  %v5846_v34 = vsel %vm145_vm6, 1.0, %v9140_v23  ;;  %vm147_vm8 = vcmp.eq.s32.totalorder %v142_v2, %v8885_v32  ;;  %vm148_vm9 = vcmp.eq.s32.totalorder %v143_v3, %v8885_v32 }
  0x2b   :  { %v185_v30 = vsel %vm174_vm5, %v173_v26, 0  ;;  %v182_v33 = vsel %vm174_vm5, %v172_v31, 0  ;;  %v5847_v35 = vsel %vm146_vm7, 1.0, %v9140_v23  ;;  %v5848_v37 = vsel %vm147_vm8, 1.0, %v9140_v23 }
  0x2c   :  { %193 = vmatpush.bf16.xpose.msra.mxu0 %v185_v30  ;;  %v157_v36 = vpack.c.bf16 %v5847_v35, %v5846_v34  ;;  %v5849_v38 = vsel %vm148_vm9, 1.0, %v9140_v23  ;;  %v232_v57 = vperm.slane %v229_v40, 1  ;;  %v233_v58 = vperm.slane %v229_v40, 2 }
  0x2d   :  { %v158_v39 = vpack.c.bf16 %v5849_v38, %v5848_v37  ;;  %v234_v11 = vperm.slane %v229_v40, 3  ;;  %v6259_v38 = vld [vmem:[#allocation8 + $0x2e0] sm:$0xf]  ;;  %vm213_vm12 = vcmask 254976   ;;  %vm5544_vm1 = vcmask 1041408  }
  0x2e   :  { %v6243_v40 = vld [vmem:[#allocation8 + $0x2c0] sm:$0xf] }
  0x34   :  { %194 = vmatpush.bf16.xpose.msra.mxu0 %v182_v33 }
  0x37   :  { %5879 = vmatmul.msk.bf16.vlgmr.msrb.gmra.mxu1 %vm259_vm0, %v227_v20 }
  0x38   :  { %5876 = vmatmul.msk.bf16.gmra.mxu2 %vm259_vm0, %v228_v17 }
  0x39   :  { %5878 = vmatmul.msk.bf16.gmra.mxu3 %vm259_vm0, %v228_v17 }
  0x3b   :  { %5854 = vmatmul.msk.bf16.vlgmr.msra.gmra.mxu0 %vm174_vm5, %v157_v36 }
  0x3c   :  { %273 = vmatpush.bf16.msrb.mxu0 %v5860_v8 }
  0x47   :  { %5880 = vmatmul.msk.bf16.gmra.mxu1 %vm259_vm0, %v228_v17 }
  0x4b   :  { %5855 = vmatmul.msk.bf16.gmra.mxu0 %vm174_vm5, %v158_v39  ;;  %v8368_v39 = vld [vmem:[#allocation8 + $0x2ec] sm:$0xf0] }
  0x5b   :  { %5873 = vmatmul.msk.bf16.vlgmr.msrb.gmra.mxu0 %vm259_vm0, %v227_v20 }
  0xa4   :  { %v280_v41 = vpop.f32.mrf.mxu1 }
  0xa5   :  { %v9257_v43 = vadd.f32 %v280_v41, %v9254_v42  ;;  %v6260_v41 = vor.u32 %v8368_v39, %v6259_v38  ;;  %v6195_v39 = vld [vmem:[#allocation8 + $0x260] sm:$0xf] }
  0xa7   :  { %v350_v47 = vmax.f32 %v9257_v43, 0.0 }
  0xab   :  { %v294_v44 = vpop.f32.mrf.mxu2 }
  0xac   :  { %v313_v45 = vpop.f32.mrf.mxu3  ;;  %v282_v46 = vpop.f32.mrf.mxu1  ;;  %v9276_v2 = vadd.f32 %v294_v44, %v232_v57  ;;  %v8364_v44 = vld [vmem:[#allocation8 + $0x2cc] sm:$0xf0] }
  0xad   :  { %v9261_v48 = vadd.f32 %v282_v46, %v9254_v42  ;;  %v9272_v63 = vadd.f32 %v313_v45, %v233_v58  ;;  %v6131_v45 = vld [vmem:[#allocation8 + $0x1e0] sm:$0xf]  ;;  %v8336_v46 = vld [vmem:[#allocation8 + $0x1ec] sm:$0xf0] }
  0xae   :  { %v343_v17 = vmax.f32 %v9276_v2, 0.0 }
  0xaf   :  { %v354_v49 = vmax.f32 %v9261_v48, 0.0  ;;  %v344_v12 = vmax.f32 %v9272_v63, 0.0  ;;  %v8378_v63 = vld [vmem:[#allocation8 + $0x344] sm:$0xf]  ;;  %v6109_v48 = vld [vmem:[#allocation8 + $0x1b8] sm:$0xf0] }
  0xb1   :  { %v362_v50 = vpack.c.bf16 %v354_v49, %v350_v47 }
  0xb3   :  { %v296_v51 = vpop.f32.mrf.mxu2  ;;  %379 = vmatpush.bf16.msrb.mxu2 %v362_v50  ;;  %v6244_v50 = vor.u32 %v8364_v44, %v6243_v40  ;;  %v8352_v40 = vld [vmem:[#allocation8 + $0x26c] sm:$0xf0]  ;;  %v6083_v44 = vld [vmem:[#allocation8 + $0x180] sm:$0xf] }
  0xb4   :  { %v315_v52 = vpop.f32.mrf.mxu3  ;;  %v332_v53 = vpop.f32.mrf.mxu1  ;;  %v9278_v3 = vadd.f32 %v296_v51, %v232_v57  ;;  %v6132_v51 = vor.u32 %v8336_v46, %v6131_v45  ;;  %v8324_v45 = vld [vmem:[#allocation8 + $0x18c] sm:$0xf0]  ;;  %v6355_v46 = vld [vmem:[#allocation8 + $0x3a0] sm:$0xf] }
  0xb5   :  { %v9274_v0 = vadd.f32 %v315_v52, %v233_v58  ;;  %v9306_v24 = vadd.f32 %v332_v53, %v234_v11  ;;  %v6115_v52 = vld [vmem:[#allocation8 + $0x1c0] sm:$0xf]  ;;  %v8332_v53 = vld [vmem:[#allocation8 + $0x1cc] sm:$0xf0] }
  0xb6   :  { %v347_v18 = vmax.f32 %v9278_v3, 0.0  ;;  %v8294_v3 = vld [vmem:[#allocation8 + $0xa4] sm:$0xf] }
  0xb7   :  { %v348_v13 = vmax.f32 %v9274_v0, 0.0  ;;  %v345_v30 = vmax.f32 %v9306_v24, 0.0  ;;  %v6309_v0 = vld [vmem:[#allocation8 + $0x350] sm:$0xf0]  ;;  %v6235_v24 = vld [vmem:[#allocation8 + $0x2a8] sm:$0xf] }
  0xb8   :  { %v196_v54 = vpop.f32.mrf.mxu0  ;;  %v359_v27 = vpack.c.bf16 %v347_v18, %v343_v17 }
  0xb9   :  { %v360_v22 = vpack.c.bf16 %v348_v13, %v344_v12 }
  0xbb   :  { %v299_v55 = vpop.f32.mrf.mxu2 }
  0xbc   :  { %v318_v56 = vpop.f32.mrf.mxu3  ;;  %v334_v59 = vpop.f32.mrf.mxu1  ;;  %v9268_v61 = vadd.f32 %v299_v55, %v232_v57  ;;  %v6227_v55 = vld [vmem:[#allocation8 + $0x2a0] sm:$0xf] }
  0xbd   :  { %v9270_v62 = vadd.f32 %v318_v56, %v233_v58  ;;  %v9308_v25 = vadd.f32 %v334_v59, %v234_v11  ;;  %v8360_v56 = vld [vmem:[#allocation8 + $0x2ac] sm:$0xf0]  ;;  %v6116_v59 = vor.u32 %v8332_v53, %v6115_v52  ;;  %v6179_v53 = vld [vmem:[#allocation8 + $0x240] sm:$0xf] }
  0xbe   :  { %v351_v6 = vmax.f32 %v9268_v61, 0.0 }
  0xbf   :  { %v352_v7 = vmax.f32 %v9270_v62, 0.0  ;;  %v349_v31 = vmax.f32 %v9308_v25, 0.0  ;;  %v6379_v62 = vld [vmem:[#allocation8 + $0x3c8] sm:$0xf] }
  0xc0   :  { %v198_v60 = vpop.f32.mrf.mxu0 }
  0xc1   :  { %v9319_v32 = vpack.c.bf16 %v198_v60, %v196_v54  ;;  %v361_v36 = vpack.c.bf16 %v349_v31, %v345_v30  ;;  %v6387_v54 = vld [vmem:[#allocation8 + $0x3e0] sm:$0xf] }
  0xc3   :  { %v301_v4 = vpop.f32.mrf.mxu2 }
  0xc4   :  { %v320_v5 = vpop.f32.mrf.mxu3  ;;  %v9282_v8 = vadd.f32 %v301_v4, %v232_v57  ;;  %v337_v10 = vpop.f32.mrf.mxu1  ;;  %v8400_v57 = vld [vmem:[#allocation8 + $0x3ec] sm:$0xf0]  ;;  %v6371_v4 = vld [vmem:[#allocation8 + $0x3c0] sm:$0xf] }
  0xc5   :  { %v9284_v9 = vadd.f32 %v320_v5, %v233_v58  ;;  %v9300_v21 = vadd.f32 %v337_v10, %v234_v11  ;;  %v6388_v60 = vor.u32 %v8400_v57, %v6387_v54  ;;  %v8348_v54 = vld [vmem:[#allocation8 + $0x24c] sm:$0xf0] }
  0xc6   :  { %v355_v14 = vmax.f32 %v9282_v8, 0.0  ;;  %v8320_v57 = vld [vmem:[#allocation8 + $0x16c] sm:$0xf0] }
  0xc7   :  { %v356_v15 = vmax.f32 %v9284_v9, 0.0  ;;  %v353_v28 = vmax.f32 %v9300_v21, 0.0  ;;  %v8397_v9 = vld [vmem:[#allocation8 + $0x3d4] sm:$0xf0] }
  0xc8   :  { %v201_v16 = vpop.f32.mrf.mxu0  ;;  %v363_v20 = vpack.c.bf16 %v355_v14, %v351_v6 }
  0xc9   :  { %v364_v19 = vpack.c.bf16 %v356_v15, %v352_v7 }
  0xca   :  { %398 = vmatpush.bf16.msrb.mxu3 %v363_v20  ;;  %v8396_v20 = vld [vmem:[#allocation8 + $0x3cc] sm:$0xf0] }
  0xcb   :  { %417 = vmatpush.bf16.msra.mxu0 %v364_v19  ;;  %v8328_v19 = vld [vmem:[#allocation8 + $0x1ac] sm:$0xf0] }
  0xcc   :  { %v339_v26 = vpop.f32.mrf.mxu1 }
  0xcd   :  { %v9315_v29 = vadd.f32 %v339_v26, %v234_v11  ;;  %v6099_v11 = vld [vmem:[#allocation8 + $0x1a0] sm:$0xf]  ;;  %v6228_v26 = vor.u32 %v8360_v56, %v6227_v55  ;;  %v6180_v56 = vor.u32 %v8348_v54, %v6179_v53  ;;  %v8380_v53 = vld [vmem:[#allocation8 + $0x34c] sm:$0xf0] }
  0xce   :  { %399 = vmatpush.bf16.msrb.mxu3 %v359_v27  ;;  %v6372_v27 = vor.u32 %v8396_v20, %v6371_v4  ;;  %v6067_v55 = vld [vmem:[#allocation8 + $0x160] sm:$0xf] }
  0xcf   :  { %418 = vmatpush.bf16.msra.mxu0 %v360_v22  ;;  %v357_v33 = vmax.f32 %v9315_v29, 0.0  ;;  %v6068_v4 = vor.u32 %v8320_v57, %v6067_v55  ;;  %v8366_v55 = vld [vmem:[#allocation8 + $0x2e4] sm:$0xf]  ;;  %v5987_v57 = vld [vmem:[#allocation8 + $0xc0] sm:$0xf] }
  0xd0   :  { %v203_v34 = vpop.f32.mrf.mxu0  ;;  %v5893_v29 = vld [vmem:[#allocation8 + $0x10] sm:$0xf0] }
  0xd1   :  { %v365_v35 = vpack.c.bf16 %v357_v33, %v353_v28  ;;  %5883 = vmatmul.msk.bf16.vlgmr.msrb.gmra.mxu3 %vm366_vm10, %v9319_v32  ;;  %v9339_v5 = vpack.c.bf16 %v203_v34, %v201_v16  ;;  %v8356_v16 = vld [vmem:[#allocation8 + $0x28c] sm:$0xf0] }
  0xd2   :  { %5885 = vmatmul.msk.bf16.vlgmr.msra.gmra.mxu0 %vm366_vm10, %v9319_v32  ;;  %1255 = vmatpush.bf16.msra.mxu3 %v6132_v51  ;;  %v8392_v51 = vld [vmem:[#allocation8 + $0x3ac] sm:$0xf0] }
  0xd3   :  { %436 = vmatpush.bf16.msra.mxu1 %v365_v35  ;;  %1274 = vmatpush.bf16.msrb.mxu0 %v6260_v41  ;;  %v6211_v35 = vld [vmem:[#allocation8 + $0x280] sm:$0xf]  ;;  %v6196_v41 = vor.u32 %v8352_v40, %v6195_v39  ;;  %v6356_v52 = vor.u32 %v8392_v51, %v6355_v46  ;;  %v8340_v39 = vld [vmem:[#allocation8 + $0x20c] sm:$0xf0] }
  0xd4   :  { %v6212_v38 = vor.u32 %v8356_v16, %v6211_v35  ;;  %v6323_v35 = vld [vmem:[#allocation8 + $0x360] sm:$0xf] }
  0xd5   :  { %v6003_v40 = vld [vmem:[#allocation8 + $0xe0] sm:$0xf] }
  0xd6   :  { %1256 = vmatpush.bf16.msra.mxu3 %v6116_v59  ;;  %v6339_v59 = vld [vmem:[#allocation8 + $0x380] sm:$0xf] }
  0xd7   :  { %437 = vmatpush.bf16.msra.mxu1 %v361_v36  ;;  %1275 = vmatpush.bf16.msrb.mxu0 %v6244_v50  ;;  %v6084_v50 = vor.u32 %v8324_v45, %v6083_v44  ;;  %v8304_v44 = vld [vmem:[#allocation8 + $0xec] sm:$0xf0]  ;;  %v6035_v46 = vld [vmem:[#allocation8 + $0x120] sm:$0xf] }
  0xd8   :  { %v275_v37 = vpop.f32.mrf.mxu0  ;;  %v6004_v45 = vor.u32 %v8304_v44, %v6003_v40  ;;  %v6307_v51 = vld [vmem:[#allocation8 + $0x340] sm:$0xf]  ;;  %v8334_v44 = vld [vmem:[#allocation8 + $0x1e4] sm:$0xf] }
  0xd9   :  { %v9337_v58 = vadd.f32 %v275_v37, %v9254_v42  ;;  %v6100_v37 = vor.u32 %v8328_v19, %v6099_v11  ;;  %v6163_v11 = vld [vmem:[#allocation8 + $0x220] sm:$0xf]  ;;  %v8344_v19 = vld [vmem:[#allocation8 + $0x22c] sm:$0xf0]  ;;  %v6308_v54 = vor.u32 %v8380_v53, %v6307_v51  ;;  %v8358_v51 = vld [vmem:[#allocation8 + $0x2a4] sm:$0xf] }
  0xda   :  { %5887 = vmatmul.msk.bf16.vlgmr.msra.gmra.mxu1 %vm366_vm10, %v9319_v32  ;;  %v6164_v20 = vor.u32 %v8344_v19, %v6163_v11  ;;  %v8308_v11 = vld [vmem:[#allocation8 + $0x10c] sm:$0xf0]  ;;  %v6291_v19 = vld [vmem:[#allocation8 + $0x320] sm:$0xf] }
  0xdb   :  { %1293 = vmatpush.bf16.msrb.mxu1 %v6388_v60  ;;  %v342_v34 = vmax.f32 %v9337_v58, 0.0  ;;  %1276 = vmatpush.bf16.msrb.mxu0 %v6228_v26  ;;  %v8388_v60 = vld [vmem:[#allocation8 + $0x38c] sm:$0xf0]  ;;  %v6051_v26 = vld [vmem:[#allocation8 + $0x140] sm:$0xf] }
  0xdc   :  { %1257 = vmatpush.bf16.msra.mxu3 %v6100_v37  ;;  %v8384_v37 = vld [vmem:[#allocation8 + $0x36c] sm:$0xf0]  ;;  %v6275_v40 = vld [vmem:[#allocation8 + $0x300] sm:$0xf] }
  0xdd   :  { %v5955_v53 = vld [vmem:[#allocation8 + $0x80] sm:$0xf] }
  0xdf   :  { %1294 = vmatpush.bf16.msrb.mxu1 %v6372_v27  ;;  %1277 = vmatpush.bf16.msrb.mxu0 %v6212_v38  ;;  %v8316_v27 = vld [vmem:[#allocation8 + $0x14c] sm:$0xf0]  ;;  %v6147_v38 = vld [vmem:[#allocation8 + $0x200] sm:$0xf] }
  0xe0   :  { %v277_v10 = vpop.f32.mrf.mxu0  ;;  %1258 = vmatpush.bf16.msra.mxu3 %v6084_v50  ;;  %v6052_v16 = vor.u32 %v8316_v27, %v6051_v26  ;;  %v8312_v50 = vld [vmem:[#allocation8 + $0x12c] sm:$0xf0] }
  0xe1   :  { %v9342_v22 = vadd.f32 %v277_v10, %v9254_v42  ;;  %5884 = vmatmul.msk.bf16.gmra.mxu3 %vm366_vm10, %v9339_v5  ;;  %v6340_v10 = vor.u32 %v8388_v60, %v6339_v59  ;;  %v8300_v60 = vld [vmem:[#allocation8 + $0xcc] sm:$0xf0] }
  0xe2   :  { %5886 = vmatmul.msk.bf16.gmra.mxu0 %vm366_vm10, %v9339_v5  ;;  %v8376_v26 = vld [vmem:[#allocation8 + $0x32c] sm:$0xf0] }
  0xe3   :  { %v346_v36 = vmax.f32 %v9342_v22, 0.0  ;;  %1278 = vmatpush.bf16.msrb.mxu0 %v6196_v41  ;;  %1295 = vmatpush.bf16.msrb.mxu1 %v6356_v52  ;;  %v6148_v41 = vor.u32 %v8340_v39, %v6147_v38  ;;  %v6036_v52 = vor.u32 %v8312_v50, %v6035_v46  ;;  %v6292_v27 = vor.u32 %v8376_v26, %v6291_v19  ;;  %v8296_v38 = vld [vmem:[#allocation8 + $0xac] sm:$0xf0]  ;;  %v6133_v46 = vld [vmem:[#allocation8 + $0x1f0] sm:$0xf0] }
  0xe4   :  { %1259 = vmatpush.bf16.msra.mxu3 %v6068_v4  ;;  %v5988_v4 = vor.u32 %v8300_v60, %v5987_v57  ;;  %v6136_v50 = vor.u32 %v8334_v44, %v6133_v46  ;;  %v8330_v57 = vld [vmem:[#allocation8 + $0x1c4] sm:$0xf]  ;;  %v5939_v26 = vld [vmem:[#allocation8 + $0x60] sm:$0xf]  ;;  %v6043_v22 = vld [vmem:[#allocation8 + $0x128] sm:$0xf] }
  0xe5   :  { %v358_v42 = vpack.c.bf16 %v346_v36, %v342_v34  ;;  %v8398_v60 = vld [vmem:[#allocation8 + $0x3e4] sm:$0xf]  ;;  %v5923_v46 = vld [vmem:[#allocation8 + $0x40] sm:$0xf] }
  0xe6   :  { %v8354_v19 = vld [vmem:[#allocation8 + $0x284] sm:$0xf] }
  0xe7   :  { %380 = vmatpush.bf16.msrb.mxu2 %v358_v42  ;;  %1279 = vmatpush.bf16.msrb.mxu0 %v6180_v56  ;;  %v6324_v42 = vor.u32 %v8384_v37, %v6323_v35  ;;  %v6261_v56 = vld [vmem:[#allocation8 + $0x2f0] sm:$0xf0]  ;;  %v8362_v35 = vld [vmem:[#allocation8 + $0x2c4] sm:$0xf]  ;;  %v5971_v37 = vld [vmem:[#allocation8 + $0xa0] sm:$0xf] }
  0xe8   :  { %1296 = vmatpush.bf16.msrb.mxu1 %v6340_v10  ;;  %1260 = vmatpush.bf16.msra.mxu3 %v6052_v16  ;;  %v6264_v59 = vor.u32 %v8366_v55, %v6261_v56  ;;  %v6019_v10 = vld [vmem:[#allocation8 + $0x100] sm:$0xf]  ;;  %v6245_v16 = vld [vmem:[#allocation8 + $0x2d0] sm:$0xf0]  ;;  %v5972_v39 = vor.u32 %v8296_v38, %v5971_v37  ;;  %v8292_v55 = vld [vmem:[#allocation8 + $0x8c] sm:$0xf0] }
  0xe9   :  { %v5956_v56 = vor.u32 %v8292_v55, %v5955_v53  ;;  %v8326_v37 = vld [vmem:[#allocation8 + $0x1a4] sm:$0xf] }
  0xea   :  { %5881 = vmatmul.msk.bf16.vlgmr.msrb.gmra.mxu2 %vm366_vm10, %v9319_v32  ;;  %5888 = vmatmul.msk.bf16.gmra.mxu1 %vm366_vm10, %v9339_v5  ;;  %v8394_v38 = vld [vmem:[#allocation8 + $0x3c4] sm:$0xf] }
  0xeb   :  { %1280 = vmatpush.bf16.msrb.mxu0 %v6164_v20  ;;  %1236 = vmatpush.bf16.msra.mxu2 %v6004_v45  ;;  %v6020_v20 = vor.u32 %v8308_v11, %v6019_v10  ;;  %v6389_v10 = vld [vmem:[#allocation8 + $0x3f0] sm:$0xf0]  ;;  %v8350_v44 = vld [vmem:[#allocation8 + $0x264] sm:$0xf] }
  0xec   :  { %1297 = vmatpush.bf16.msrb.mxu1 %v6324_v42  ;;  %1261 = vmatpush.bf16.msra.mxu3 %v6036_v52  ;;  %v6248_v42 = vor.u32 %v8362_v35, %v6245_v16  ;;  %v6229_v52 = vld [vmem:[#allocation8 + $0x2b0] sm:$0xf0]  ;;  %v6392_v11 = vor.u32 %v8398_v60, %v6389_v10  ;;  %v8288_v35 = vld [vmem:[#allocation8 + $0x6c] sm:$0xf0]  ;;  %v8322_v53 = vld [vmem:[#allocation8 + $0x184] sm:$0xf] }
  0xed   :  { %v5940_v16 = vor.u32 %v8288_v35, %v5939_v26  ;;  %v8390_v55 = vld [vmem:[#allocation8 + $0x3a4] sm:$0xf]  ;;  %v6181_v10 = vld [vmem:[#allocation8 + $0x250] sm:$0xf0] }
  0xee   :  { %v6069_v35 = vld [vmem:[#allocation8 + $0x170] sm:$0xf0] }
  0xef   :  { %1281 = vmatpush.bf16.msrb.mxu0 %v6148_v41  ;;  %1237 = vmatpush.bf16.msra.mxu2 %v5988_v4  ;;  %v8372_v41 = vld [vmem:[#allocation8 + $0x30c] sm:$0xf0] }
  0xf0   :  { %1298 = vmatpush.bf16.msrb.mxu1 %v6308_v54  ;;  %1262 = vmatpush.bf16.msra.mxu3 %v6020_v20  ;;  %v6276_v45 = vor.u32 %v8372_v41, %v6275_v40  ;;  %v6232_v54 = vor.u32 %v8358_v51, %v6229_v52  ;;  %v6213_v20 = vld [vmem:[#allocation8 + $0x290] sm:$0xf0]  ;;  %v8284_v51 = vld [vmem:[#allocation8 + $0x4c] sm:$0xf0] }
  0xf1   :  { %v6373_v40 = vld [vmem:[#allocation8 + $0x3d0] sm:$0xf0]  ;;  %v5924_v52 = vor.u32 %v8284_v51, %v5923_v46  ;;  %v8276_v46 = vld [vmem:[#allocation8 + $0xc] sm:$0xf0]  ;;  %v8314_v51 = vld [vmem:[#allocation8 + $0x144] sm:$0xf] }
  0xf2   :  { %v6376_v41 = vor.u32 %v8394_v38, %v6373_v40  ;;  %v6165_v40 = vld [vmem:[#allocation8 + $0x230] sm:$0xf0] }
  0xf3   :  { %1350 = vmatpush.bf16.msra.mxu0 %v6264_v59  ;;  %1238 = vmatpush.bf16.msra.mxu2 %v5972_v39  ;;  %v6117_v59 = vld [vmem:[#allocation8 + $0x1d0] sm:$0xf0] }
  0xf4   :  { %1299 = vmatpush.bf16.msrb.mxu1 %v6292_v27  ;;  %1331 = vmatpush.bf16.msrb.mxu3 %v6136_v50  ;;  %v6120_v4 = vor.u32 %v8330_v57, %v6117_v59  ;;  %v6216_v27 = vor.u32 %v8354_v19, %v6213_v20  ;;  %v6357_v59 = vld [vmem:[#allocation8 + $0x3b0] sm:$0xf0]  ;;  %v8280_v20 = vld [vmem:[#allocation8 + $0x2c] sm:$0xf0] }
  0xf5   :  { %v6360_v60 = vor.u32 %v8390_v55, %v6357_v59 }
  0xf7   :  { %1351 = vmatpush.bf16.msra.mxu0 %v6248_v42  ;;  %1239 = vmatpush.bf16.msra.mxu2 %v5956_v56  ;;  %v6101_v42 = vld [vmem:[#allocation8 + $0x1b0] sm:$0xf0] }
  0xf8   :  { %1300 = vmatpush.bf16.msrb.mxu1 %v6276_v45  ;;  %1332 = vmatpush.bf16.msrb.mxu3 %v6120_v4  ;;  %v6104_v39 = vor.u32 %v8326_v37, %v6101_v42  ;;  %v6197_v45 = vld [vmem:[#allocation8 + $0x270] sm:$0xf0]  ;;  %v8346_v4 = vld [vmem:[#allocation8 + $0x244] sm:$0xf] }
  0xf9   :  { %v6200_v50 = vor.u32 %v8350_v44, %v6197_v45  ;;  %v6184_v19 = vor.u32 %v8346_v4, %v6181_v10  ;;  %v6341_v42 = vld [vmem:[#allocation8 + $0x390] sm:$0xf0] }
  0xfa   :  { %5882 = vmatmul.msk.bf16.gmra.mxu2 %vm366_vm10, %v9339_v5 }
  0xfb   :  { %1352 = vmatpush.bf16.msra.mxu0 %v6232_v54  ;;  %1240 = vmatpush.bf16.msra.mxu2 %v5940_v16  ;;  %v6085_v54 = vld [vmem:[#allocation8 + $0x190] sm:$0xf0]  ;;  %v8386_v16 = vld [vmem:[#allocation8 + $0x384] sm:$0xf] }
  0xfc   :  { %1369 = vmatpush.bf16.msra.mxu1 %v6392_v11  ;;  %1333 = vmatpush.bf16.msrb.mxu3 %v6104_v39  ;;  %v6088_v57 = vor.u32 %v8322_v53, %v6085_v54  ;;  %v5907_v11 = vld [vmem:[#allocation8 + $0x20] sm:$0xf]  ;;  %v6344_v38 = vor.u32 %v8386_v16, %v6341_v42  ;;  %v8342_v39 = vld [vmem:[#allocation8 + $0x224] sm:$0xf]  ;;  %v6037_v42 = vld [vmem:[#allocation8 + $0x130] sm:$0xf0] }
  0xfd   :  { %v5908_v26 = vor.u32 %v8280_v20, %v5907_v11  ;;  %v6168_v45 = vor.u32 %v8342_v39, %v6165_v40  ;;  %v8382_v53 = vld [vmem:[#allocation8 + $0x364] sm:$0xf] }
  0xfe   :  { %v8338_v11 = vld [vmem:[#allocation8 + $0x204] sm:$0xf] }
  0xff   :  { %1353 = vmatpush.bf16.msra.mxu0 %v6216_v27  ;;  %1241 = vmatpush.bf16.msra.mxu2 %v5924_v52  ;;  %v8318_v27 = vld [vmem:[#allocation8 + $0x164] sm:$0xf]  ;;  %v6053_v52 = vld [vmem:[#allocation8 + $0x150] sm:$0xf0] }
 0x100   :  { %1370 = vmatpush.bf16.msra.mxu1 %v6376_v41  ;;  %1334 = vmatpush.bf16.msrb.mxu3 %v6088_v57  ;;  %v6072_v37 = vor.u32 %v8318_v27, %v6069_v35  ;;  %v5891_v41 = vld [vmem:[#allocation8] sm:$0xf]  ;;  %v6056_v55 = vor.u32 %v8314_v51, %v6053_v52  ;;  %v6325_v57 = vld [vmem:[#allocation8 + $0x370] sm:$0xf0]  ;;  %v8302_v20 = vld [vmem:[#allocation8 + $0xe4] sm:$0xf] }
 0x101   :  { %v6328_v10 = vor.u32 %v8382_v53, %v6325_v57  ;;  %v6005_v27 = vld [vmem:[#allocation8 + $0xf0] sm:$0xf0]  ;;  %v8298_v39 = vld [vmem:[#allocation8 + $0xc4] sm:$0xf] }
 0x102   :  { %v6008_v16 = vor.u32 %v8302_v20, %v6005_v27  ;;  %v8306_v52 = vld [vmem:[#allocation8 + $0x104] sm:$0xf]  ;;  %v6021_v53 = vld [vmem:[#allocation8 + $0x110] sm:$0xf0] }
 0x103   :  { %1354 = vmatpush.bf16.msra.mxu0 %v6200_v50  ;;  %1242 = vmatpush.bf16.msra.mxu2 %v5908_v26  ;;  %v5892_v50 = vor.u32 %v8276_v46, %v5891_v41  ;;  %v6024_v57 = vor.u32 %v8306_v52, %v6021_v53  ;;  %v8370_v27 = vld [vmem:[#allocation8 + $0x304] sm:$0xf] }
 0x104   :  { %1371 = vmatpush.bf16.msra.mxu1 %v6360_v60  ;;  %1335 = vmatpush.bf16.msrb.mxu3 %v6072_v37  ;;  %v8310_v37 = vld [vmem:[#allocation8 + $0x124] sm:$0xf] }
 0x107   :  { %1355 = vmatpush.bf16.msra.mxu0 %v6184_v19  ;;  %1243 = vmatpush.bf16.msra.mxu2 %v5892_v50  ;;  %v6149_v19 = vld [vmem:[#allocation8 + $0x210] sm:$0xf0] }
 0x108   :  { %1372 = vmatpush.bf16.msra.mxu1 %v6344_v38  ;;  %v6152_v26 = vor.u32 %v8338_v11, %v6149_v19  ;;  %1336 = vmatpush.bf16.msrb.mxu3 %v6056_v55  ;;  %v8369_v38 = vld [vmem:[#allocation8 + $0x2f4] sm:$0xf0] }
 0x10b   :  { %1356 = vmatpush.bf16.msra.mxu0 %v6168_v45  ;;  %1312 = vmatpush.bf16.msrb.mxu2 %v6008_v16  ;;  %v5989_v45 = vld [vmem:[#allocation8 + $0xd0] sm:$0xf0] }
 0x10c   :  { %1373 = vmatpush.bf16.msra.mxu1 %v6328_v10  ;;  %v5992_v51 = vor.u32 %v8298_v39, %v5989_v45  ;;  %v8365_v10 = vld [vmem:[#allocation8 + $0x2d4] sm:$0xf0]  ;;  %v6277_v16 = vld [vmem:[#allocation8 + $0x310] sm:$0xf0] }
 0x10d   :  { %v8333_v39 = vld [vmem:[#allocation8 + $0x1d4] sm:$0xf0] }
 0x10f   :  { %1357 = vmatpush.bf16.msra.mxu0 %v6152_v26  ;;  %1313 = vmatpush.bf16.msrb.mxu2 %v5992_v51 }
 0x14f   :  { %v420_v56 = vpop.f32.mrf.mxu0 }
 0x150   :  { %v421_v59 = vadd.f32 %v420_v56, %v344_v12  ;;  %v6040_v12 = vor.u32 %v8310_v37, %v6037_v42  ;;  %v6267_v56 = vld [vmem:[#allocation8 + $0x2e8] sm:$0xf] }
 0x151   :  { %v6268_v41 = vor.u32 %v8369_v38, %v6267_v56  ;;  %v6139_v37 = vld [vmem:[#allocation8 + $0x1e8] sm:$0xf] }
 0x152   :  { %1337 = vmatpush.bf16.msrb.mxu3 %v6040_v12  ;;  %v8337_v12 = vld [vmem:[#allocation8 + $0x1f4] sm:$0xf0]  ;;  %v6123_v38 = vld [vmem:[#allocation8 + $0x1c8] sm:$0xf] }
 0x153   :  { %v6124_v45 = vor.u32 %v8333_v39, %v6123_v38  ;;  %v8349_v38 = vld [vmem:[#allocation8 + $0x254] sm:$0xf0]  ;;  %v8278_v39 = vld [vmem:[#allocation8 + $0x24] sm:$0xf] }
 0x154   :  { %v401_v44 = vpop.f32.mrf.mxu3 }
 0x155   :  { %v402_v46 = vadd.f32 %v401_v44, %v343_v17 }
 0x156   :  { %1338 = vmatpush.bf16.msrb.mxu3 %v6024_v57  ;;  %v8357_v57 = vld [vmem:[#allocation8 + $0x294] sm:$0xf0] }
 0x157   :  { %v422_v54 = vpop.f32.mrf.mxu0  ;;  %v439_v4 = vpop.f32.mrf.mxu1 }
 0x158   :  { %v423_v60 = vadd.f32 %v422_v54, %v348_v13  ;;  %v6312_v13 = vor.u32 %v8378_v63, %v6309_v0  ;;  %v8374_v54 = vld [vmem:[#allocation8 + $0x324] sm:$0xf]  ;;  %v440_v44 = vadd.f32 %v439_v4, %v345_v30  ;;  %v6280_v63 = vor.u32 %v8370_v27, %v6277_v16  ;;  %v8361_v30 = vld [vmem:[#allocation8 + $0x2b4] sm:$0xf0]  ;;  %v5925_v16 = vld [vmem:[#allocation8 + $0x50] sm:$0xf0] }
 0x159   :  { %v6140_v0 = vor.u32 %v8337_v12, %v6139_v37  ;;  %v8290_v4 = vld [vmem:[#allocation8 + $0x84] sm:$0xf]  ;;  %v6091_v37 = vld [vmem:[#allocation8 + $0x188] sm:$0xf] }
 0x15a   :  { %v9364_v35 = vpack.c.bf16 %v423_v60, %v421_v59  ;;  %1374 = vmatpush.bf16.msra.mxu1 %v6312_v13  ;;  %v6293_v59 = vld [vmem:[#allocation8 + $0x330] sm:$0xf0]  ;;  %v6251_v60 = vld [vmem:[#allocation8 + $0x2c8] sm:$0xf] }
 0x15b   :  { %v6296_v2 = vor.u32 %v8374_v54, %v6293_v59  ;;  %v6252_v17 = vor.u32 %v8365_v10, %v6251_v60  ;;  %v5957_v13 = vld [vmem:[#allocation8 + $0x90] sm:$0xf0]  ;;  %v6219_v54 = vld [vmem:[#allocation8 + $0x288] sm:$0xf]  ;;  %v8286_v59 = vld [vmem:[#allocation8 + $0x64] sm:$0xf] }
 0x15c   :  { %1282 = vmatmul.bf16.vlgmr.msrb.gmra.mxu0 %v9364_v35  ;;  %v403_v40 = vpop.f32.mrf.mxu3  ;;  %v5960_v56 = vor.u32 %v8290_v4, %v5957_v13  ;;  %v6220_v60 = vor.u32 %v8357_v57, %v6219_v54  ;;  %v5941_v10 = vld [vmem:[#allocation8 + $0x70] sm:$0xf0]  ;;  %v8393_v4 = vld [vmem:[#allocation8 + $0x3b4] sm:$0xf0]  ;;  %v6171_v57 = vld [vmem:[#allocation8 + $0x228] sm:$0xf] }
 0x15d   :  { %v404_v50 = vadd.f32 %v403_v40, %v347_v18  ;;  %1426 = vmatpush.bf16.msrb.mxu0 %v6268_v41  ;;  %v5973_v18 = vld [vmem:[#allocation8 + $0xb0] sm:$0xf0]  ;;  %v6395_v40 = vld [vmem:[#allocation8 + $0x3e8] sm:$0xf]  ;;  %v8389_v54 = vld [vmem:[#allocation8 + $0x394] sm:$0xf0] }
 0x15e   :  { %v5976_v26 = vor.u32 %v8294_v3, %v5973_v18  ;;  %1375 = vmatpush.bf16.msra.mxu1 %v6296_v2  ;;  %v5944_v2 = vor.u32 %v8286_v59, %v5941_v10  ;;  %v8329_v3 = vld [vmem:[#allocation8 + $0x1b4] sm:$0xf0]  ;;  %v6059_v10 = vld [vmem:[#allocation8 + $0x148] sm:$0xf] }
 0x15f   :  { %v425_v55 = vpop.f32.mrf.mxu0  ;;  %v9371_v11 = vpack.c.bf16 %v404_v50, %v402_v46  ;;  %v441_v19 = vpop.f32.mrf.mxu1  ;;  %v8401_v46 = vld [vmem:[#allocation8 + $0x3f4] sm:$0xf0] }
 0x160   :  { %v442_v20 = vadd.f32 %v441_v19, %v349_v31  ;;  %1314 = vmatpush.bf16.msrb.mxu2 %v5976_v26  ;;  %v6236_v31 = vor.u32 %v8361_v30, %v6235_v24  ;;  %v426_v50 = vadd.f32 %v425_v55, %v352_v7  ;;  %v6396_v53 = vor.u32 %v8401_v46, %v6395_v40  ;;  %v6203_v55 = vld [vmem:[#allocation8 + $0x268] sm:$0xf]  ;;  %v8353_v18 = vld [vmem:[#allocation8 + $0x274] sm:$0xf0]  ;;  %v5909_v40 = vld [vmem:[#allocation8 + $0x30] sm:$0xf0] }
 0x161   :  { %1263 = vmatmul.bf16.vlgmr.msra.gmra.mxu3 %v9371_v11  ;;  %1427 = vmatpush.bf16.msrb.mxu0 %v6252_v17  ;;  %v6107_v17 = vld [vmem:[#allocation8 + $0x1a8] sm:$0xf]  ;;  %v6204_v27 = vor.u32 %v8353_v18, %v6203_v55  ;;  %v8321_v46 = vld [vmem:[#allocation8 + $0x174] sm:$0xf0] }
 0x162   :  { %v9378_v42 = vpack.c.bf16 %v442_v20, %v440_v44  ;;  %1376 = vmatpush.bf16.msra.mxu1 %v6280_v63  ;;  %1407 = vmatpush.bf16.msra.mxu3 %v6140_v0  ;;  %v6108_v7 = vor.u32 %v8329_v3, %v6107_v17  ;;  %v8282_v44 = vld [vmem:[#allocation8 + $0x44] sm:$0xf]  ;;  %v8325_v63 = vld [vmem:[#allocation8 + $0x194] sm:$0xf0]  ;;  %v6363_v30 = vld [vmem:[#allocation8 + $0x3a8] sm:$0xf] }
 0x163   :  { %v5928_v24 = vor.u32 %v8282_v44, %v5925_v16  ;;  %v6092_v13 = vor.u32 %v8325_v63, %v6091_v37  ;;  %v8345_v59 = vld [vmem:[#allocation8 + $0x234] sm:$0xf0]  ;;  %v6331_v17 = vld [vmem:[#allocation8 + $0x368] sm:$0xf] }
 0x164   :  { %v406_v25 = vpop.f32.mrf.mxu3  ;;  %1301 = vmatmul.bf16.vlgmr.msrb.gmra.mxu1 %v9378_v42  ;;  %1315 = vmatpush.bf16.msrb.mxu2 %v5960_v56  ;;  %v6364_v56 = vor.u32 %v8393_v4, %v6363_v30  ;;  %v6155_v18 = vld [vmem:[#allocation8 + $0x208] sm:$0xf]  ;;  %v8341_v44 = vld [vmem:[#allocation8 + $0x214] sm:$0xf0] }
 0x165   :  { %1428 = vmatpush.bf16.msrb.mxu0 %v6236_v31  ;;  %v407_v12 = vadd.f32 %v406_v25, %v351_v6  ;;  %v6187_v31 = vld [vmem:[#allocation8 + $0x248] sm:$0xf]  ;;  %v5912_v6 = vor.u32 %v8278_v39, %v5909_v40  ;;  %v8305_v16 = vld [vmem:[#allocation8 + $0xf4] sm:$0xf0] }
 0x166   :  { %1408 = vmatpush.bf16.msra.mxu3 %v6124_v45  ;;  %1445 = vmatpush.bf16.msrb.mxu1 %v6396_v53  ;;  %v6188_v61 = vor.u32 %v8349_v38, %v6187_v31  ;;  %v6075_v25 = vld [vmem:[#allocation8 + $0x168] sm:$0xf]  ;;  %v8381_v37 = vld [vmem:[#allocation8 + $0x354] sm:$0xf0] }
 0x167   :  { %v427_v41 = vpop.f32.mrf.mxu0  ;;  %v444_v52 = vpop.f32.mrf.mxu1  ;;  %v6076_v53 = vor.u32 %v8321_v46, %v6075_v25  ;;  %v8301_v31 = vld [vmem:[#allocation8 + $0xd4] sm:$0xf0]  ;;  %v6299_v39 = vld [vmem:[#allocation8 + $0x328] sm:$0xf] }
 0x168   :  { %v428_v51 = vadd.f32 %v427_v41, %v356_v15  ;;  %1316 = vmatpush.bf16.msrb.mxu2 %v5944_v2  ;;  %v6380_v15 = vor.u32 %v8397_v9, %v6379_v62  ;;  %v445_v8 = vadd.f32 %v444_v52, %v353_v28  ;;  %v6172_v28 = vor.u32 %v8345_v59, %v6171_v57  ;;  %v8274_v52 = vld [vmem:[#allocation8 + $0x4] sm:$0xf]  ;;  %v8317_v2 = vld [vmem:[#allocation8 + $0x154] sm:$0xf0]  ;;  %v8335_v57 = vld [vmem:[#allocation8 + $0x1ec] sm:$0xf] }
 0x169   :  { %1429 = vmatpush.bf16.msrb.mxu0 %v6220_v60  ;;  %v5896_v60 = vor.u32 %v8274_v52, %v5893_v29  ;;  %v6060_v9 = vor.u32 %v8317_v2, %v6059_v10  ;;  %v8377_v40 = vld [vmem:[#allocation8 + $0x334] sm:$0xf0]  ;;  %v6237_v52 = vld [vmem:[#allocation8 + $0x2b8] sm:$0xf0] }
 0x16a   :  { %v9385_v19 = vpack.c.bf16 %v428_v51, %v426_v50  ;;  %1409 = vmatpush.bf16.msra.mxu3 %v6108_v7  ;;  %1446 = vmatpush.bf16.msrb.mxu1 %v6380_v15  ;;  %v6347_v50 = vld [vmem:[#allocation8 + $0x388] sm:$0xf]  ;;  %v8385_v7 = vld [vmem:[#allocation8 + $0x374] sm:$0xf0] }
 0x16b   :  { %v6348_v21 = vor.u32 %v8389_v54, %v6347_v50  ;;  %v6332_v15 = vor.u32 %v8385_v7, %v6331_v17  ;;  %v8297_v25 = vld [vmem:[#allocation8 + $0xb4] sm:$0xf0]  ;;  %v8399_v7 = vld [vmem:[#allocation8 + $0x3ec] sm:$0xf] }
 0x16c   :  { %1287 = vmatmul.bf16.gmra.mxu0 %v9385_v19  ;;  %v408_v26 = vpop.f32.mrf.mxu3  ;;  %1317 = vmatpush.bf16.msrb.mxu2 %v5928_v24  ;;  %v5995_v24 = vld [vmem:[#allocation8 + $0xc8] sm:$0xf]  ;;  %v8373_v54 = vld [vmem:[#allocation8 + $0x314] sm:$0xf0] }
 0x16d   :  { %v382_v20 = vpop.f32.mrf.mxu2  ;;  %v409_v0 = vadd.f32 %v408_v26, %v355_v14  ;;  %1430 = vmatpush.bf16.msrb.mxu0 %v6204_v27  ;;  %v6011_v26 = vld [vmem:[#allocation8 + $0xe8] sm:$0xf]  ;;  %v6156_v27 = vor.u32 %v8341_v44, %v6155_v18  ;;  %v5996_v38 = vor.u32 %v8301_v31, %v5995_v24  ;;  %v8293_v10 = vld [vmem:[#allocation8 + $0x94] sm:$0xf0]  ;;  %v6397_v44 = vld [vmem:[#allocation8 + $0x3f8] sm:$0xf0] }
 0x16e   :  { %1447 = vmatpush.bf16.msrb.mxu1 %v6364_v56  ;;  %1410 = vmatpush.bf16.msra.mxu3 %v6092_v13  ;;  %v383_v3 = vadd.f32 %v382_v20, %v342_v34  ;;  %v6012_v58 = vor.u32 %v8305_v16, %v6011_v26  ;;  %v8313_v34 = vld [vmem:[#allocation8 + $0x134] sm:$0xf0]  ;;  %v6027_v13 = vld [vmem:[#allocation8 + $0x108] sm:$0xf]  ;;  %v6400_v26 = vor.u32 %v8399_v7, %v6397_v44  ;;  %v8355_v16 = vld [vmem:[#allocation8 + $0x28c] sm:$0xf] }
 0x16f   :  { %v9392_v41 = vpack.c.bf16 %v409_v0, %v407_v12  ;;  %v446_v45 = vpop.f32.mrf.mxu1  ;;  %v6044_v20 = vor.u32 %v8313_v34, %v6043_v22  ;;  %v8367_v12 = vld [vmem:[#allocation8 + $0x2ec] sm:$0xf]  ;;  %v6269_v0 = vld [vmem:[#allocation8 + $0x2f8] sm:$0xf0]  ;;  %v8309_v56 = vld [vmem:[#allocation8 + $0x114] sm:$0xf0] }
 0x170   :  { %v447_v14 = vadd.f32 %v446_v45, %v357_v33  ;;  %1318 = vmatpush.bf16.msrb.mxu2 %v5912_v6  ;;  %v6272_v4 = vor.u32 %v8367_v12, %v6269_v0  ;;  %v8363_v45 = vld [vmem:[#allocation8 + $0x2cc] sm:$0xf]  ;;  %v6300_v6 = vor.u32 %v8377_v40, %v6299_v39  ;;  %v5947_v22 = vld [vmem:[#allocation8 + $0x68] sm:$0xf]  ;;  %v6205_v0 = vld [vmem:[#allocation8 + $0x278] sm:$0xf0] }
 0x171   :  { %1268 = vmatmul.bf16.gmra.mxu3 %v9392_v41  ;;  %1431 = vmatpush.bf16.msrb.mxu0 %v6188_v61  ;;  %v6028_v61 = vor.u32 %v8309_v56, %v6027_v13  ;;  %v8351_v12 = vld [vmem:[#allocation8 + $0x26c] sm:$0xf]  ;;  %v5931_v24 = vld [vmem:[#allocation8 + $0x48] sm:$0xf]  ;;  %v6093_v13 = vld [vmem:[#allocation8 + $0x198] sm:$0xf0] }
 0x172   :  { %v9399_v51 = vpack.c.bf16 %v447_v14, %v445_v8  ;;  %1448 = vmatpush.bf16.msrb.mxu1 %v6348_v21  ;;  %1411 = vmatpush.bf16.msra.mxu3 %v6076_v53  ;;  %v6253_v8 = vld [vmem:[#allocation8 + $0x2d8] sm:$0xf0]  ;;  %v5979_v14 = vld [vmem:[#allocation8 + $0xa8] sm:$0xf]  ;;  %v8323_v31 = vld [vmem:[#allocation8 + $0x18c] sm:$0xf] }
 0x173   :  { %v6256_v46 = vor.u32 %v8363_v45, %v6253_v8  ;;  %v5980_v50 = vor.u32 %v8297_v25, %v5979_v14  ;;  %v6283_v53 = vld [vmem:[#allocation8 + $0x308] sm:$0xf]  ;;  %v6141_v21 = vld [vmem:[#allocation8 + $0x1f8] sm:$0xf0]  ;;  %v8347_v40 = vld [vmem:[#allocation8 + $0x24c] sm:$0xf]  ;;  %v6096_v45 = vor.u32 %v8323_v31, %v6093_v13 }
 0x174   :  { %1306 = vmatmul.bf16.gmra.mxu1 %v9399_v51  ;;  %1319 = vmatpush.bf16.msrb.mxu2 %v5896_v60  ;;  %v6284_v59 = vor.u32 %v8373_v54, %v6283_v53  ;;  %v6144_v29 = vor.u32 %v8335_v57, %v6141_v21  ;;  %v5963_v60 = vld [vmem:[#allocation8 + $0x88] sm:$0xf]  ;;  %v6365_v39 = vld [vmem:[#allocation8 + $0x3b8] sm:$0xf0]  ;;  %v8281_v14 = vld [vmem:[#allocation8 + $0x34] sm:$0xf0] }
 0x175   :  { %v384_v33 = vpop.f32.mrf.mxu2  ;;  %1432 = vmatpush.bf16.msrb.mxu0 %v6172_v28  ;;  %v8359_v28 = vld [vmem:[#allocation8 + $0x2ac] sm:$0xf]  ;;  %v5964_v17 = vor.u32 %v8293_v10, %v5963_v60  ;;  %v5915_v8 = vld [vmem:[#allocation8 + $0x28] sm:$0xf]  ;;  %v6077_v53 = vld [vmem:[#allocation8 + $0x178] sm:$0xf0] }
 0x176   :  { %v385_v62 = vadd.f32 %v384_v33, %v346_v36  ;;  %1449 = vmatpush.bf16.msrb.mxu1 %v6332_v15  ;;  %v6315_v36 = vld [vmem:[#allocation8 + $0x348] sm:$0xf]  ;;  %1412 = vmatpush.bf16.msra.mxu3 %v6060_v9  ;;  %v6240_v33 = vor.u32 %v8359_v28, %v6237_v52  ;;  %v8387_v54 = vld [vmem:[#allocation8 + $0x38c] sm:$0xf]  ;;  %v6173_v28 = vld [vmem:[#allocation8 + $0x238] sm:$0xf0] }
 0x177   :  { %v6316_v63 = vor.u32 %v8381_v37, %v6315_v36  ;;  %v8289_v36 = vld [vmem:[#allocation8 + $0x74] sm:$0xf0]  ;;  %v6381_v37 = vld [vmem:[#allocation8 + $0x3d8] sm:$0xf0]  ;;  %v8343_v21 = vld [vmem:[#allocation8 + $0x22c] sm:$0xf] }
 0x178   :  { %v9406_v55 = vpack.c.bf16 %v385_v62, %v383_v3  ;;  %v8331_v3 = vld [vmem:[#allocation8 + $0x1cc] sm:$0xf]  ;;  %v6125_v62 = vld [vmem:[#allocation8 + $0x1d8] sm:$0xf0]  ;;  %v5948_v43 = vor.u32 %v8289_v36, %v5947_v22  ;;  %v8277_v60 = vld [vmem:[#allocation8 + $0x14] sm:$0xf0] }
 0x179   :  { %1433 = vmatpush.bf16.msrb.mxu0 %v6156_v27  ;;  %v6128_v18 = vor.u32 %v8331_v3, %v6125_v62  ;;  %v8383_v3 = vld [vmem:[#allocation8 + $0x36c] sm:$0xf]  ;;  %v6333_v62 = vld [vmem:[#allocation8 + $0x378] sm:$0xf0] }
 0x17a   :  { %1244 = vmatmul.bf16.vlgmr.msra.gmra.mxu2 %v9406_v55  ;;  %1450 = vmatpush.bf16.msrb.mxu1 %v6316_v63  ;;  %v8303_v44 = vld [vmem:[#allocation8 + $0xec] sm:$0xf]  ;;  %v5981_v31 = vld [vmem:[#allocation8 + $0xb8] sm:$0xf0] }
 0x17b   :  { %1388 = vmatpush.bf16.msra.mxu2 %v6012_v58  ;;  %1413 = vmatpush.bf16.msra.mxu3 %v6044_v20  ;;  %v6221_v58 = vld [vmem:[#allocation8 + $0x298] sm:$0xf0]  ;;  %v8311_v22 = vld [vmem:[#allocation8 + $0x12c] sm:$0xf] }
 0x17c   :  { %1358 = vmatmul.bf16.vlgmr.msra.gmra.mxu0 %v9364_v35  ;;  %v6224_v34 = vor.u32 %v8355_v16, %v6221_v58  ;;  %v6013_v16 = vld [vmem:[#allocation8 + $0xf8] sm:$0xf0]  ;;  %v8379_v36 = vld [vmem:[#allocation8 + $0x34c] sm:$0xf] }
 0x17d   :  { %v387_v30 = vpop.f32.mrf.mxu2  ;;  %1502 = vmatpush.bf16.msra.mxu0 %v6272_v4  ;;  %v8285_v4 = vld [vmem:[#allocation8 + $0x54] sm:$0xf0]  ;;  %v6016_v58 = vor.u32 %v8303_v44, %v6013_v16 }
 0x17e   :  { %1451 = vmatpush.bf16.msrb.mxu1 %v6300_v6  ;;  %v388_v9 = vadd.f32 %v387_v30, %v350_v47  ;;  %v8327_v47 = vld [vmem:[#allocation8 + $0x1ac] sm:$0xf]  ;;  %v6208_v30 = vor.u32 %v8351_v12, %v6205_v0  ;;  %v5932_v56 = vor.u32 %v8285_v4, %v5931_v24  ;;  %v6189_v6 = vld [vmem:[#allocation8 + $0x258] sm:$0xf0] }
 0x17f   :  { %1389 = vmatpush.bf16.msra.mxu2 %v5996_v38  ;;  %1414 = vmatpush.bf16.msra.mxu3 %v6028_v61  ;;  %v6112_v20 = vor.u32 %v8327_v47, %v6109_v48  ;;  %v8391_v38 = vld [vmem:[#allocation8 + $0x3ac] sm:$0xf]  ;;  %v6192_v25 = vor.u32 %v8347_v40, %v6189_v6  ;;  %v6317_v47 = vld [vmem:[#allocation8 + $0x358] sm:$0xf0] }
 0x180   :  { %v6368_v61 = vor.u32 %v8391_v38, %v6365_v39  ;;  %v6320_v48 = vor.u32 %v8379_v36, %v6317_v47  ;;  %v6029_v12 = vld [vmem:[#allocation8 + $0x118] sm:$0xf0]  ;;  %v8375_v0 = vld [vmem:[#allocation8 + $0x32c] sm:$0xf]  ;;  %v8404_v36 = vld [vmem:[#allocation8 + $0x40c] sm:$0xf0] }
 0x181   :  { %1339 = vmatmul.bf16.vlgmr.msrb.gmra.mxu3 %v9371_v11  ;;  %1503 = vmatpush.bf16.msra.mxu0 %v6256_v46  ;;  %v5916_v46 = vor.u32 %v8281_v14, %v5915_v8  ;;  %v6301_v24 = vld [vmem:[#allocation8 + $0x338] sm:$0xf0]  ;;  %v8295_v4 = vld [vmem:[#allocation8 + $0xac] sm:$0xf] }
 0x182   :  { %1452 = vmatpush.bf16.msrb.mxu1 %v6284_v59  ;;  %v6349_v59 = vld [vmem:[#allocation8 + $0x398] sm:$0xf0]  ;;  %v8371_v38 = vld [vmem:[#allocation8 + $0x30c] sm:$0xf] }
 0x183   :  { %1390 = vmatpush.bf16.msra.mxu2 %v5980_v50  ;;  %1483 = vmatpush.bf16.msrb.mxu3 %v6144_v29  ;;  %v8319_v50 = vld [vmem:[#allocation8 + $0x16c] sm:$0xf]  ;;  %v6352_v52 = vor.u32 %v8387_v54, %v6349_v59  ;;  %v6176_v29 = vor.u32 %v8343_v21, %v6173_v28  ;;  %v6285_v39 = vld [vmem:[#allocation8 + $0x318] sm:$0xf0] }
 0x184   :  { %1377 = vmatmul.bf16.vlgmr.msra.gmra.mxu1 %v9378_v42  ;;  %v6080_v57 = vor.u32 %v8319_v50, %v6077_v53  ;;  %v8291_v40 = vld [vmem:[#allocation8 + $0x8c] sm:$0xf]  ;;  %v5949_v14 = vld [vmem:[#allocation8 + $0x78] sm:$0xf0] }
 0x185   :  { %v389_v2 = vpop.f32.mrf.mxu2  ;;  %1504 = vmatpush.bf16.msra.mxu0 %v6240_v33  ;;  %v5899_v33 = vld [vmem:[#allocation8 + $0x8] sm:$0xf]  ;;  %v8287_v8 = vld [vmem:[#allocation8 + $0x6c] sm:$0xf]  ;;  %v5933_v50 = vld [vmem:[#allocation8 + $0x58] sm:$0xf0] }
 0x186   :  { %v390_v15 = vadd.f32 %v389_v2, %v354_v49  ;;  %1521 = vmatpush.bf16.msra.mxu1 %v6400_v26  ;;  %v8395_v49 = vld [vmem:[#allocation8 + $0x3cc] sm:$0xf]  ;;  %v5900_v10 = vor.u32 %v8277_v60, %v5899_v33  ;;  %v5901_v28 = vld [vmem:[#allocation8 + $0x18] sm:$0xf0]  ;;  %v8432_v33 = vld [vmem:[#allocation8 + $0x4ec] sm:$0xf0] }
 0x187   :  { %1391 = vmatpush.bf16.msra.mxu2 %v5964_v17  ;;  %1484 = vmatpush.bf16.msrb.mxu3 %v6128_v18  ;;  %v6384_v63 = vor.u32 %v8395_v49, %v6381_v37  ;;  %v8315_v2 = vld [vmem:[#allocation8 + $0x14c] sm:$0xf]  ;;  %v6061_v17 = vld [vmem:[#allocation8 + $0x158] sm:$0xf0] }
 0x188   :  { %v9416_v27 = vpack.c.bf16 %v390_v15, %v388_v9  ;;  %v6064_v7 = vor.u32 %v8315_v2, %v6061_v17  ;;  %v6336_v9 = vor.u32 %v8383_v3, %v6333_v62  ;;  %v8339_v15 = vld [vmem:[#allocation8 + $0x20c] sm:$0xf]  ;;  %v6157_v18 = vld [vmem:[#allocation8 + $0x218] sm:$0xf0]  ;;  %v8428_v2 = vld [vmem:[#allocation8 + $0x4cc] sm:$0xf0] }
 0x189   :  { %1505 = vmatpush.bf16.msra.mxu0 %v6224_v34  ;;  %v6160_v26 = vor.u32 %v8339_v15, %v6157_v18  ;;  %v6045_v34 = vld [vmem:[#allocation8 + $0x138] sm:$0xf0]  ;;  %v8299_v49 = vld [vmem:[#allocation8 + $0xcc] sm:$0xf]  ;;  %v6435_v18 = vld [vmem:[#allocation8 + $0x440] sm:$0xf] }
 0x18a   :  { %1249 = vmatmul.bf16.gmra.mxu2 %v9416_v27  ;;  %1522 = vmatpush.bf16.msra.mxu1 %v6384_v63  ;;  %v8307_v37 = vld [vmem:[#allocation8 + $0x10c] sm:$0xf] }
 0x18b   :  { %1392 = vmatpush.bf16.msra.mxu2 %v5948_v43  ;;  %1485 = vmatpush.bf16.msrb.mxu3 %v6112_v20  ;;  %v6048_v43 = vor.u32 %v8311_v22, %v6045_v34  ;;  %v5997_v20 = vld [vmem:[#allocation8 + $0xd8] sm:$0xf0]  ;;  %v6032_v13 = vor.u32 %v8307_v37, %v6029_v12  ;;  %v8279_v54 = vld [vmem:[#allocation8 + $0x2c] sm:$0xf]  ;;  %v6403_v34 = vld [vmem:[#allocation8 + $0x400] sm:$0xf] }
 0x18c   :  { %1363 = vmatmul.bf16.gmra.mxu0 %v9385_v19  ;;  %v6000_v63 = vor.u32 %v8299_v49, %v5997_v20  ;;  %v8275_v21 = vld [vmem:[#allocation8 + $0xc] sm:$0xf]  ;;  %v6643_v20 = vld [vmem:[#allocation8 + $0x5e0] sm:$0xf]  ;;  %v8464_v37 = vld [vmem:[#allocation8 + $0x5ec] sm:$0xf0] }
 0x18d   :  { %1506 = vmatpush.bf16.msra.mxu0 %v6208_v30  ;;  %v6304_v30 = vor.u32 %v8375_v0, %v6301_v24  ;;  %v6644_v12 = vor.u32 %v8464_v37, %v6643_v20  ;;  %v6517_v0 = vld [vmem:[#allocation8 + $0x4f0] sm:$0xf0] }
 0x18e   :  { %1523 = vmatpush.bf16.msra.mxu1 %v6368_v61  ;;  %v5965_v61 = vld [vmem:[#allocation8 + $0x98] sm:$0xf0]  ;;  %v6421_v37 = vld [vmem:[#allocation8 + $0x430] sm:$0xf0] }
 0x18f   :  { %1393 = vmatpush.bf16.msra.mxu2 %v5932_v56  ;;  %1486 = vmatpush.bf16.msrb.mxu3 %v6096_v45  ;;  %v5984_v56 = vor.u32 %v8295_v4, %v5981_v31  ;;  %v6288_v45 = vor.u32 %v8371_v38, %v6285_v39  ;;  %v5968_v6 = vor.u32 %v8291_v40, %v5965_v61  ;;  %v8426_v4 = vld [vmem:[#allocation8 + $0x4c4] sm:$0xf]  ;;  %v9454_v40 = vld [vmem:[#allocation13 + $0x1] ss:$8 sm:$0xf] }
 0x190   :  { %v8456_v61 = vld [vmem:[#allocation8 + $0x5ac] sm:$0xf0] }
 0x191   :  { %1344 = vmatmul.bf16.gmra.mxu3 %v9392_v41  ;;  %1507 = vmatpush.bf16.msra.mxu0 %v6192_v25  ;;  %v5952_v25 = vor.u32 %v8287_v8, %v5949_v14 }
 0x192   :  { %1524 = vmatpush.bf16.msra.mxu1 %v6352_v52  ;;  %v5904_v52 = vor.u32 %v8275_v21, %v5901_v28  ;;  %v8418_v21 = vld [vmem:[#allocation8 + $0x484] sm:$0xf]  ;;  %v6469_v28 = vld [vmem:[#allocation8 + $0x490] sm:$0xf0] }
 0x193   :  { %1394 = vmatpush.bf16.msra.mxu2 %v5916_v46  ;;  %1487 = vmatpush.bf16.msrb.mxu3 %v6080_v57  ;;  %v8283_v46 = vld [vmem:[#allocation8 + $0x4c] sm:$0xf]  ;;  %v5917_v57 = vld [vmem:[#allocation8 + $0x38] sm:$0xf0] }
 0x194   :  { %1382 = vmatmul.bf16.gmra.mxu1 %v9399_v51  ;;  %v5936_v53 = vor.u32 %v8283_v46, %v5933_v50  ;;  %v5920_v59 = vor.u32 %v8279_v54, %v5917_v57  ;;  %v9459_v46 = vperm.slane %v9454_v40, 0  ;;  %v8452_v54 = vld [vmem:[#allocation8 + $0x58c] sm:$0xf0] }
 0x195   :  { %1508 = vmatpush.bf16.msra.mxu0 %v6176_v29  ;;  %v6515_v29 = vld [vmem:[#allocation8 + $0x4e0] sm:$0xf] }
 0x196   :  { %1525 = vmatpush.bf16.msra.mxu1 %v6336_v9  ;;  %v6516_v60 = vor.u32 %v8432_v33, %v6515_v29  ;;  %v8416_v9 = vld [vmem:[#allocation8 + $0x46c] sm:$0xf0]  ;;  %v6472_v29 = vor.u32 %v8418_v21, %v6469_v28 }
 0x197   :  { %1395 = vmatpush.bf16.msra.mxu2 %v5900_v10  ;;  %1488 = vmatpush.bf16.msrb.mxu3 %v6064_v7  ;;  %v6499_v10 = vld [vmem:[#allocation8 + $0x4c0] sm:$0xf] }
 0x198   :  { %v6500_v17 = vor.u32 %v8428_v2, %v6499_v10  ;;  %v6451_v7 = vld [vmem:[#allocation8 + $0x460] sm:$0xf]  ;;  %v8448_v10 = vld [vmem:[#allocation8 + $0x56c] sm:$0xf0]  ;;  %v8414_v2 = vld [vmem:[#allocation8 + $0x464] sm:$0xf] }
 0x199   :  { %1509 = vmatpush.bf16.msra.mxu0 %v6160_v26 }
 0x19a   :  { %1320 = vmatmul.bf16.vlgmr.msrb.gmra.mxu2 %v9406_v55  ;;  %1526 = vmatpush.bf16.msra.mxu1 %v6320_v48  ;;  %v6404_v48 = vor.u32 %v8404_v36, %v6403_v34  ;;  %v8440_v34 = vld [vmem:[#allocation8 + $0x52c] sm:$0xf0]  ;;  %v8406_v36 = vld [vmem:[#allocation8 + $0x424] sm:$0xf] }
 0x19b   :  { %1464 = vmatpush.bf16.msrb.mxu2 %v6016_v58  ;;  %1489 = vmatpush.bf16.msrb.mxu3 %v6048_v43  ;;  %v6419_v58 = vld [vmem:[#allocation8 + $0x420] sm:$0xf] }
 0x19c   :  { %1434 = vmatmul.bf16.vlgmr.msrb.gmra.mxu0 %v9364_v35 }
 0x19e   :  { %1527 = vmatpush.bf16.msra.mxu1 %v6304_v30  ;;  %v8460_v30 = vld [vmem:[#allocation8 + $0x5cc] sm:$0xf0] }
 0x19f   :  { %1465 = vmatpush.bf16.msrb.mxu2 %v6000_v63  ;;  %1490 = vmatpush.bf16.msrb.mxu3 %v6032_v13  ;;  %v8430_v63 = vld [vmem:[#allocation8 + $0x4e4] sm:$0xf] }
 0x1a0   :  { %v6520_v24 = vor.u32 %v8430_v63, %v6517_v0  ;;  %v6424_v0 = vor.u32 %v8406_v36, %v6421_v37  ;;  %v8425_v36 = vld [vmem:[#allocation8 + $0x4b4] sm:$0xf0] }
 0x1a1   :  { %1415 = vmatmul.bf16.vlgmr.msra.gmra.mxu3 %v9371_v11 }
 0x1a2   :  { %1528 = vmatpush.bf16.msra.mxu1 %v6288_v45  ;;  %v6611_v45 = vld [vmem:[#allocation8 + $0x5a0] sm:$0xf] }
 0x1a3   :  { %1466 = vmatpush.bf16.msrb.mxu2 %v5984_v56  ;;  %2363 = vmatpush.bf16.msra.mxu3 %v6644_v12  ;;  %v6501_v56 = vld [vmem:[#allocation8 + $0x4d0] sm:$0xf0]  ;;  %v6612_v14 = vor.u32 %v8456_v61, %v6611_v45 }
 0x1a4   :  { %1453 = vmatmul.bf16.vlgmr.msrb.gmra.mxu1 %v9378_v42  ;;  %v6504_v38 = vor.u32 %v8426_v4, %v6501_v56 }
 0x1a7   :  { %1467 = vmatpush.bf16.msrb.mxu2 %v5968_v6  ;;  %v8422_v6 = vld [vmem:[#allocation8 + $0x4a4] sm:$0xf] }
 0x1aa   :  { %1325 = vmatmul.bf16.gmra.mxu2 %v9416_v27 }
 0x1ab   :  { %1468 = vmatpush.bf16.msrb.mxu2 %v5952_v25  ;;  %v6485_v25 = vld [vmem:[#allocation8 + $0x4b0] sm:$0xf0] }
 0x1ac   :  { %1439 = vmatmul.bf16.gmra.mxu0 %v9385_v19  ;;  %v6488_v50 = vor.u32 %v8422_v6, %v6485_v25  ;;  %v8462_v25 = vld [vmem:[#allocation8 + $0x5e4] sm:$0xf] }
 0x1af   :  { %1469 = vmatpush.bf16.msrb.mxu2 %v5936_v53  ;;  %v6595_v53 = vld [vmem:[#allocation8 + $0x580] sm:$0xf] }
 0x1b1   :  { %1420 = vmatmul.bf16.gmra.mxu3 %v9392_v41 }
 0x1b3   :  { %1470 = vmatpush.bf16.msrb.mxu2 %v5920_v59  ;;  %v6596_v59 = vor.u32 %v8452_v54, %v6595_v53  ;;  %v6645_v53 = vld [vmem:[#allocation8 + $0x5f0] sm:$0xf0]  ;;  %v6523_v54 = vld [vmem:[#allocation8 + $0x4e8] sm:$0xf] }
 0x1b4   :  { %1458 = vmatmul.bf16.gmra.mxu1 %v9399_v51  ;;  %v6648_v21 = vor.u32 %v8462_v25, %v6645_v53  ;;  %v8480_v25 = vld [vmem:[#allocation8 + $0x66c] sm:$0xf0] }
 0x1b7   :  { %1471 = vmatpush.bf16.msrb.mxu2 %v5904_v52 }
 0x1ba   :  { %1396 = vmatmul.bf16.vlgmr.msra.gmra.mxu2 %v9406_v55 }
 0x1bb   :  { %2344 = vmatpush.bf16.msra.mxu2 %v6516_v60  ;;  %v6579_v60 = vld [vmem:[#allocation8 + $0x560] sm:$0xf] }
 0x1bc   :  { %1510 = vmatmul.bf16.vlgmr.msra.gmra.mxu0 %v9364_v35  ;;  %v6483_v35 = vld [vmem:[#allocation8 + $0x4a0] sm:$0xf] }
 0x1bf   :  { %2345 = vmatpush.bf16.msra.mxu2 %v6500_v17 }
 0x1c1   :  { %1491 = vmatmul.bf16.vlgmr.msrb.gmra.mxu3 %v9371_v11  ;;  %v8424_v11 = vld [vmem:[#allocation8 + $0x4ac] sm:$0xf0] }
 0x1c2   :  { %v6484_v3 = vor.u32 %v8424_v11, %v6483_v35  ;;  %v6580_v35 = vor.u32 %v8448_v10, %v6579_v60  ;;  %v6453_v11 = vld [vmem:[#allocation8 + $0x470] sm:$0xf0]  ;;  %v8492_v60 = vld [vmem:[#allocation8 + $0x6cc] sm:$0xf0]  ;;  %v8458_v10 = vld [vmem:[#allocation8 + $0x5c4] sm:$0xf] }
 0x1c4   :  { %1529 = vmatmul.bf16.vlgmr.msra.gmra.mxu1 %v9378_v42  ;;  %2346 = vmatpush.bf16.msra.mxu2 %v6484_v3  ;;  %v6467_v42 = vld [vmem:[#allocation8 + $0x480] sm:$0xf] }
 0x1ca   :  { %1401 = vmatmul.bf16.gmra.mxu2 %v9416_v27 }
 0x1cc   :  { %1515 = vmatmul.bf16.gmra.mxu0 %v9385_v19  ;;  %v8420_v19 = vld [vmem:[#allocation8 + $0x48c] sm:$0xf0] }
 0x1cd   :  { %v6468_v62 = vor.u32 %v8420_v19, %v6467_v42  ;;  %v6456_v42 = vor.u32 %v8414_v2, %v6453_v11 }
 0x1cf   :  { %2347 = vmatpush.bf16.msra.mxu2 %v6468_v62  ;;  %v6563_v62 = vld [vmem:[#allocation8 + $0x540] sm:$0xf] }
 0x1d1   :  { %1496 = vmatmul.bf16.gmra.mxu3 %v9392_v41  ;;  %v6452_v41 = vor.u32 %v8416_v9, %v6451_v7  ;;  %v8444_v7 = vld [vmem:[#allocation8 + $0x54c] sm:$0xf0]  ;;  %v8410_v9 = vld [vmem:[#allocation8 + $0x444] sm:$0xf] }
 0x1d3   :  { %2348 = vmatpush.bf16.msra.mxu2 %v6452_v41 }
 0x1d4   :  { %1534 = vmatmul.bf16.gmra.mxu1 %v9399_v51  ;;  %v8412_v51 = vld [vmem:[#allocation8 + $0x44c] sm:$0xf0] }
 0x1d5   :  { %v6436_v16 = vor.u32 %v8412_v51, %v6435_v18  ;;  %v6564_v18 = vor.u32 %v8444_v7, %v6563_v62  ;;  %v6437_v51 = vld [vmem:[#allocation8 + $0x450] sm:$0xf0]  ;;  %v8429_v62 = vld [vmem:[#allocation8 + $0x4d4] sm:$0xf0] }
 0x1d7   :  { %2349 = vmatpush.bf16.msra.mxu2 %v6436_v16 }
 0x1d9   :  { %v9439_v15 = vpop.f32.mrf.mxu0 }
 0x1da   :  { %1472 = vmatmul.bf16.vlgmr.msrb.gmra.mxu2 %v9406_v55  ;;  %v8408_v55 = vld [vmem:[#allocation8 + $0x42c] sm:$0xf0] }
 0x1db   :  { %v6420_v22 = vor.u32 %v8408_v55, %v6419_v58  ;;  %v6440_v55 = vor.u32 %v8410_v9, %v6437_v51  ;;  %v9494_v51 = vperm.slane %v9454_v40, 1 }
 0x1dd   :  { %2350 = vmatpush.bf16.msra.mxu2 %v6420_v22 }
 0x1e1   :  { %v9441_v44 = vpop.f32.mrf.mxu1  ;;  %v9444_v43 = vpop.f32.mrf.mxu0  ;;  %2351 = vmatpush.bf16.msra.mxu2 %v6404_v48 }
 0x1e4   :  { %v1264_v26 = vpop.f32.mrf.mxu3 }
 0x1e5   :  { %2420 = vmatpush.bf16.msrb.mxu2 %v6520_v24 }
 0x1e9   :  { %v9448_v49 = vpop.f32.mrf.mxu1  ;;  %v9452_v39 = vpop.f32.mrf.mxu0  ;;  %2421 = vmatpush.bf16.msrb.mxu2 %v6504_v38  ;;  %v6405_v38 = vld [vmem:[#allocation8 + $0x410] sm:$0xf0] }
 0x1ea   :  { %1477 = vmatmul.bf16.gmra.mxu2 %v9416_v27  ;;  %v6627_v27 = vld [vmem:[#allocation8 + $0x5c0] sm:$0xf] }
 0x1eb   :  { %v6628_v13 = vor.u32 %v8460_v30, %v6627_v27  ;;  %v8436_v27 = vld [vmem:[#allocation8 + $0x50c] sm:$0xf0]  ;;  %v8402_v30 = vld [vmem:[#allocation8 + $0x404] sm:$0xf] }
 0x1ec   :  { %v9446_v47 = vpop.f32.mrf.mxu3 }
 0x1ed   :  { %2364 = vmatpush.bf16.msra.mxu3 %v6628_v13  ;;  %2422 = vmatpush.bf16.msrb.mxu2 %v6488_v50 }
 0x1f1   :  { %v9456_v8 = vpop.f32.mrf.mxu1  ;;  %2365 = vmatpush.bf16.msra.mxu3 %v6612_v14  ;;  %2423 = vmatpush.bf16.msrb.mxu2 %v6472_v29  ;;  %v9464_v17 = vpop.f32.mrf.mxu0  ;;  %v6771_v14 = vld [vmem:[#allocation8 + $0x6e0] sm:$0xf] }
 0x1f2   :  { %v6755_v29 = vld [vmem:[#allocation8 + $0x6c0] sm:$0xf] }
 0x1f3   :  { %v6756_v11 = vor.u32 %v8492_v60, %v6755_v29 }
 0x1f4   :  { %v9450_v31 = vpop.f32.mrf.mxu3 }
 0x1f5   :  { %2366 = vmatpush.bf16.msra.mxu3 %v6596_v59  ;;  %2424 = vmatpush.bf16.msrb.mxu2 %v6456_v42  ;;  %v6507_v42 = vld [vmem:[#allocation8 + $0x4c8] sm:$0xf] }
 0x1f9   :  { %v9466_v19 = vpop.f32.mrf.mxu1  ;;  %2367 = vmatpush.bf16.msra.mxu3 %v6580_v35  ;;  %2425 = vmatpush.bf16.msrb.mxu2 %v6440_v55  ;;  %v8488_v55 = vld [vmem:[#allocation8 + $0x6ac] sm:$0xf0] }
 0x1fc   :  { %v9462_v33 = vpop.f32.mrf.mxu3 }
 0x1fd   :  { %v1245_v57 = vpop.f32.mrf.mxu2  ;;  %2368 = vmatpush.bf16.msra.mxu3 %v6564_v18  ;;  %2426 = vmatpush.bf16.msrb.mxu2 %v6424_v0  ;;  %v8484_v0 = vld [vmem:[#allocation8 + $0x68c] sm:$0xf0] }
 0x1fe   :  { %v1246_v52 = vadd.f32 %v1245_v57, %v9459_v46  ;;  %v8433_v57 = vld [vmem:[#allocation8 + $0x4f4] sm:$0xf0] }
 0x1ff   :  { %v6524_v28 = vor.u32 %v8433_v57, %v6523_v54  ;;  %v6581_v57 = vld [vmem:[#allocation8 + $0x570] sm:$0xf0] }
 0x200   :  { %v1265_v3 = vadd.f32 %v1264_v26, %v1246_v52  ;;  %v6547_v26 = vld [vmem:[#allocation8 + $0x520] sm:$0xf] }
 0x201   :  { %v6548_v20 = vor.u32 %v8440_v34, %v6547_v26  ;;  %v9478_v4 = vpop.f32.mrf.mxu1  ;;  %v6613_v34 = vld [vmem:[#allocation8 + $0x5b0] sm:$0xf0] }
 0x202   :  { %v1284_v16 = vadd.f32 %v9439_v15, %v1265_v3  ;;  %v9475_v15 = vpop.f32.mrf.mxu0  ;;  %v6629_v3 = vld [vmem:[#allocation8 + $0x5d0] sm:$0xf0] }
 0x203   :  { %2369 = vmatpush.bf16.msra.mxu3 %v6548_v20  ;;  %v6632_v9 = vor.u32 %v8458_v10, %v6629_v3  ;;  %v8476_v10 = vld [vmem:[#allocation8 + $0x64c] sm:$0xf0] }
 0x204   :  { %v9471_v48 = vpop.f32.mrf.mxu3  ;;  %v1303_v63 = vadd.f32 %v9441_v44, %v1284_v16 }
 0x205   :  { %v1247_v41 = vpop.f32.mrf.mxu2 }
 0x206   :  { %v1248_v58 = vadd.f32 %v1247_v41, %v9459_v46  ;;  %v1540_v45 = vmax.f32 %v1303_v63, 0.0  ;;  %v6508_v41 = vor.u32 %v8429_v62, %v6507_v42  ;;  %v6565_v42 = vld [vmem:[#allocation8 + $0x550] sm:$0xf0]  ;;  %v6443_v62 = vld [vmem:[#allocation8 + $0x448] sm:$0xf] }
 0x208   :  { %v1267_v22 = vadd.f32 %v9446_v47, %v1248_v58  ;;  %v6531_v47 = vld [vmem:[#allocation8 + $0x500] sm:$0xf] }
 0x209   :  { %v6532_v56 = vor.u32 %v8436_v27, %v6531_v47  ;;  %v9491_v18 = vpop.f32.mrf.mxu1  ;;  %v6739_v58 = vld [vmem:[#allocation8 + $0x6a0] sm:$0xf] }
 0x20a   :  { %v1286_v12 = vadd.f32 %v9444_v43, %v1267_v22  ;;  %v6408_v43 = vor.u32 %v8402_v30, %v6405_v38  ;;  %v9487_v2 = vpop.f32.mrf.mxu0  ;;  %v8454_v22 = vld [vmem:[#allocation8 + $0x5a4] sm:$0xf]  ;;  %v6740_v26 = vor.u32 %v8488_v55, %v6739_v58  ;;  %v6675_v55 = vld [vmem:[#allocation8 + $0x620] sm:$0xf] }
 0x20b   :  { %2370 = vmatpush.bf16.msra.mxu3 %v6532_v56  ;;  %v6616_v37 = vor.u32 %v8454_v22, %v6613_v34  ;;  %v8450_v30 = vld [vmem:[#allocation8 + $0x584] sm:$0xf]  ;;  %v6475_v56 = vld [vmem:[#allocation8 + $0x488] sm:$0xf]  ;;  %v8472_v22 = vld [vmem:[#allocation8 + $0x62c] sm:$0xf0] }
 0x20c   :  { %v1305_v24 = vadd.f32 %v9448_v49, %v1286_v12  ;;  %2427 = vmatpush.bf16.msrb.mxu2 %v6408_v43  ;;  %v8496_v49 = vld [vmem:[#allocation8 + $0x6ec] sm:$0xf0]  ;;  %v9485_v52 = vpop.f32.mrf.mxu3 }
 0x20d   :  { %v1250_v13 = vpop.f32.mrf.mxu2  ;;  %v6772_v50 = vor.u32 %v8496_v49, %v6771_v14  ;;  %v6707_v49 = vld [vmem:[#allocation8 + $0x660] sm:$0xf] }
 0x20e   :  { %v1544_v61 = vmax.f32 %v1305_v24, 0.0  ;;  %v1251_v44 = vadd.f32 %v1250_v13, %v9459_v46  ;;  %v6597_v13 = vld [vmem:[#allocation8 + $0x590] sm:$0xf0]  ;;  %v6708_v54 = vor.u32 %v8480_v25, %v6707_v49  ;;  %v8528_v49 = vld [vmem:[#allocation8 + $0x7ec] sm:$0xf0] }
 0x20f   :  { %2382 = vmatpush.bf16.msrb.mxu0 %v6772_v50  ;;  %2439 = vmatpush.bf16.msrb.mxu3 %v6648_v21  ;;  %v8446_v50 = vld [vmem:[#allocation8 + $0x564] sm:$0xf]  ;;  %v8417_v21 = vld [vmem:[#allocation8 + $0x474] sm:$0xf0] }
 0x210   :  { %v9481_v6 = vpack.c.bf16 %v1544_v61, %v1540_v45  ;;  %v1270_v59 = vadd.f32 %v9450_v31, %v1251_v44  ;;  %v6600_v45 = vor.u32 %v8450_v30, %v6597_v13  ;;  %v8421_v61 = vld [vmem:[#allocation8 + $0x494] sm:$0xf0]  ;;  %v8494_v25 = vld [vmem:[#allocation8 + $0x6e4] sm:$0xf] }
 0x211   :  { %v9508_v53 = vpop.f32.mrf.mxu1 }
 0x212   :  { %2352 = vmatmul.bf16.vlgmr.msra.gmra.mxu2 %v9481_v6  ;;  %v1289_v31 = vadd.f32 %v9452_v39, %v1270_v59  ;;  %v6491_v39 = vld [vmem:[#allocation8 + $0x4a8] sm:$0xf]  ;;  %v9503_v44 = vpop.f32.mrf.mxu0 }
 0x213   :  { %2496 = vmatpush.bf16.msra.mxu2 %v6524_v28  ;;  %2383 = vmatpush.bf16.msrb.mxu0 %v6756_v11  ;;  %v6492_v63 = vor.u32 %v8425_v36, %v6491_v39  ;;  %v6459_v59 = vld [vmem:[#allocation8 + $0x468] sm:$0xf]  ;;  %v6584_v28 = vor.u32 %v8446_v50, %v6581_v57  ;;  %v6676_v39 = vor.u32 %v8472_v22, %v6675_v55  ;;  %v6549_v36 = vld [vmem:[#allocation8 + $0x530] sm:$0xf0]  ;;  %v8461_v55 = vld [vmem:[#allocation8 + $0x5d4] sm:$0xf0] }
 0x214   :  { %2440 = vmatpush.bf16.msrb.mxu3 %v6632_v9  ;;  %v9500_v24 = vpop.f32.mrf.mxu3  ;;  %v6460_v29 = vor.u32 %v8417_v21, %v6459_v59  ;;  %v6773_v57 = vld [vmem:[#allocation8 + $0x6f0] sm:$0xf0]  ;;  %v6651_v59 = vld [vmem:[#allocation8 + $0x5e8] sm:$0xf]  ;;  %v8465_v21 = vld [vmem:[#allocation8 + $0x5f4] sm:$0xf0] }
 0x215   :  { %v1252_v35 = vpop.f32.mrf.mxu2  ;;  %v8427_v22 = vld [vmem:[#allocation8 + $0x4cc] sm:$0xf] }
 0x216   :  { %v1253_v7 = vadd.f32 %v1252_v35, %v9459_v46  ;;  %v1308_v46 = vadd.f32 %v9456_v8, %v1289_v31  ;;  %v8442_v35 = vld [vmem:[#allocation8 + $0x544] sm:$0xf]  ;;  %v8413_v31 = vld [vmem:[#allocation8 + $0x454] sm:$0xf0] }
 0x217   :  { %2497 = vmatpush.bf16.msra.mxu2 %v6508_v41  ;;  %2384 = vmatpush.bf16.msrb.mxu0 %v6740_v26  ;;  %v6568_v9 = vor.u32 %v8442_v35, %v6565_v42  ;;  %v6444_v41 = vor.u32 %v8413_v31, %v6443_v62  ;;  %v8438_v26 = vld [vmem:[#allocation8 + $0x524] sm:$0xf]  ;;  %v8524_v42 = vld [vmem:[#allocation8 + $0x7cc] sm:$0xf0] }
 0x218   :  { %v1272_v16 = vadd.f32 %v9462_v33, %v1253_v7  ;;  %2441 = vmatpush.bf16.msrb.mxu3 %v6616_v37  ;;  %v6723_v33 = vld [vmem:[#allocation8 + $0x680] sm:$0xf]  ;;  %v1548_v38 = vmax.f32 %v1308_v46, 0.0  ;;  %v6427_v46 = vld [vmem:[#allocation8 + $0x428] sm:$0xf] }
 0x219   :  { %v6724_v27 = vor.u32 %v8484_v0, %v6723_v33  ;;  %v6659_v0 = vld [vmem:[#allocation8 + $0x600] sm:$0xf]  ;;  %v8490_v62 = vld [vmem:[#allocation8 + $0x6c4] sm:$0xf] }
 0x21a   :  { %v1291_v20 = vadd.f32 %v9464_v17, %v1272_v16  ;;  %v9517_v34 = vpop.f32.mrf.mxu0 }
 0x21b   :  { %2498 = vmatpush.bf16.msra.mxu2 %v6492_v63  ;;  %2385 = vmatpush.bf16.msrb.mxu0 %v6724_v27  ;;  %v6552_v63 = vor.u32 %v8438_v26, %v6549_v36  ;;  %v8434_v27 = vld [vmem:[#allocation8 + $0x504] sm:$0xf]  ;;  %v6509_v26 = vld [vmem:[#allocation8 + $0x4d8] sm:$0xf0]  ;;  %v9539_v36 = vperm.slane %v9454_v40, 2 }
 0x21c   :  { %v1310_v12 = vadd.f32 %v9466_v19, %v1291_v20  ;;  %v6476_v19 = vor.u32 %v8421_v61, %v6475_v56  ;;  %2442 = vmatpush.bf16.msrb.mxu3 %v6600_v45  ;;  %v9514_v58 = vpop.f32.mrf.mxu3  ;;  %v8409_v20 = vld [vmem:[#allocation8 + $0x434] sm:$0xf0]  ;;  %v6533_v56 = vld [vmem:[#allocation8 + $0x510] sm:$0xf0] }
 0x21d   :  { %v1321_v47 = vpop.f32.mrf.mxu2  ;;  %v6536_v45 = vor.u32 %v8434_v27, %v6533_v56  ;;  %v6493_v56 = vld [vmem:[#allocation8 + $0x4b8] sm:$0xf0] }
 0x21e   :  { %v1552_v8 = vmax.f32 %v1310_v12, 0.0  ;;  %v1322_v17 = vadd.f32 %v1321_v47, %v9494_v51  ;;  %v9520_v12 = vpop.f32.mrf.mxu1  ;;  %v8468_v47 = vld [vmem:[#allocation8 + $0x60c] sm:$0xf0] }
 0x21f   :  { %2499 = vmatpush.bf16.msra.mxu2 %v6476_v19  ;;  %2386 = vmatpush.bf16.msrb.mxu0 %v6708_v54  ;;  %v6660_v13 = vor.u32 %v8468_v47, %v6659_v0  ;;  %v6619_v0 = vld [vmem:[#allocation8 + $0x5a8] sm:$0xf] }
 0x220   :  { %v1341_v43 = vadd.f32 %v9471_v48, %v1322_v17  ;;  %v9506_v14 = vpack.c.bf16 %v1552_v8, %v1548_v38  ;;  %2443 = vmatpush.bf16.msrb.mxu3 %v6584_v28  ;;  %v6691_v48 = vld [vmem:[#allocation8 + $0x640] sm:$0xf]  ;;  %v6411_v38 = vld [vmem:[#allocation8 + $0x408] sm:$0xf]  ;;  %v8405_v8 = vld [vmem:[#allocation8 + $0x414] sm:$0xf0] }
 0x221   :  { %v6692_v3 = vor.u32 %v8476_v10, %v6691_v48  ;;  %v6412_v61 = vor.u32 %v8405_v8, %v6411_v38  ;;  %v8431_v48 = vld [vmem:[#allocation8 + $0x4ec] sm:$0xf]  ;;  %v6525_v10 = vld [vmem:[#allocation8 + $0x4f8] sm:$0xf0] }
 0x222   :  { %2357 = vmatmul.bf16.gmra.mxu2 %v9506_v14  ;;  %v1360_v60 = vadd.f32 %v9475_v15, %v1341_v43  ;;  %v6899_v43 = vld [vmem:[#allocation8 + $0x7e0] sm:$0xf]  ;;  %v9531_v28 = vpop.f32.mrf.mxu0  ;;  %v6528_v35 = vor.u32 %v8431_v48, %v6525_v10  ;;  %v6477_v48 = vld [vmem:[#allocation8 + $0x498] sm:$0xf0] }
 0x223   :  { %2500 = vmatpush.bf16.msra.mxu2 %v6460_v29  ;;  %2387 = vmatpush.bf16.msrb.mxu0 %v6692_v3  ;;  %v6900_v54 = vor.u32 %v8528_v49, %v6899_v43  ;;  %v6776_v29 = vor.u32 %v8494_v25, %v6773_v57  ;;  %v8482_v25 = vld [vmem:[#allocation8 + $0x684] sm:$0xf]  ;;  %v6603_v57 = vld [vmem:[#allocation8 + $0x588] sm:$0xf] }
 0x224   :  { %v1379_v16 = vadd.f32 %v9478_v4, %v1360_v60  ;;  %2444 = vmatpush.bf16.msrb.mxu3 %v6568_v9  ;;  %v6428_v4 = vor.u32 %v8409_v20, %v6427_v46  ;;  %v6652_v60 = vor.u32 %v8465_v21, %v6651_v59  ;;  %v6512_v20 = vor.u32 %v8427_v22, %v6509_v26  ;;  %v8453_v59 = vld [vmem:[#allocation8 + $0x594] sm:$0xf0]  ;;  %v8419_v21 = vld [vmem:[#allocation8 + $0x48c] sm:$0xf] }
 0x225   :  { %v1323_v11 = vpop.f32.mrf.mxu2  ;;  %2401 = vmatpush.bf16.msrb.mxu1 %v6900_v54  ;;  %v6480_v10 = vor.u32 %v8419_v21, %v6477_v48  ;;  %v8466_v48 = vld [vmem:[#allocation8 + $0x604] sm:$0xf] }
 0x226   :  { %v1324_v7 = vadd.f32 %v1323_v11, %v9494_v51  ;;  %v1541_v33 = vmax.f32 %v1379_v16, 0.0  ;;  %v9533_v11 = vpop.f32.mrf.mxu1  ;;  %v6635_v16 = vld [vmem:[#allocation8 + $0x5c8] sm:$0xf] }
 0x227   :  { %2501 = vmatpush.bf16.msra.mxu2 %v6444_v41  ;;  %2388 = vmatpush.bf16.msrb.mxu0 %v6676_v39  ;;  %v6757_v41 = vld [vmem:[#allocation8 + $0x6d0] sm:$0xf0]  ;;  %v6636_v46 = vor.u32 %v8461_v55, %v6635_v16  ;;  %v6461_v55 = vld [vmem:[#allocation8 + $0x478] sm:$0xf0] }
 0x228   :  { %v1343_v15 = vadd.f32 %v9485_v52, %v1324_v7  ;;  %2445 = vmatpush.bf16.msrb.mxu3 %v6552_v63 }
 0x22a   :  { %v1362_v37 = vadd.f32 %v9487_v2, %v1343_v15  ;;  %v6760_v15 = vor.u32 %v8490_v62, %v6757_v41 }
 0x22b   :  { %2502 = vmatpush.bf16.msra.mxu2 %v6428_v4  ;;  %2389 = vmatpush.bf16.msrb.mxu0 %v6660_v13  ;;  %v8423_v13 = vld [vmem:[#allocation8 + $0x4ac] sm:$0xf] }
 0x22c   :  { %v1381_v52 = vadd.f32 %v9491_v18, %v1362_v37  ;;  %2446 = vmatpush.bf16.msrb.mxu3 %v6536_v45  ;;  %v9526_v18 = vpop.f32.mrf.mxu3  ;;  %v8520_v37 = vld [vmem:[#allocation8 + $0x7ac] sm:$0xf0]  ;;  %v6496_v8 = vor.u32 %v8423_v13, %v6493_v56 }
 0x22d   :  { %v1326_v30 = vpop.f32.mrf.mxu2 }
 0x22e   :  { %v1545_v17 = vmax.f32 %v1381_v52, 0.0  ;;  %v1327_v2 = vadd.f32 %v1326_v30, %v9494_v51  ;;  %v6741_v52 = vld [vmem:[#allocation8 + $0x6b0] sm:$0xf0]  ;;  %v9549_v54 = vpop.f32.mrf.mxu1 }
 0x22f   :  { %2503 = vmatpush.bf16.msra.mxu2 %v6412_v61  ;;  %2458 = vmatpush.bf16.msra.mxu0 %v6776_v29 }
 0x230   :  { %v9524_v19 = vpack.c.bf16 %v1545_v17, %v1541_v33  ;;  %v1346_v50 = vadd.f32 %v9500_v24, %v1327_v2  ;;  %v6883_v24 = vld [vmem:[#allocation8 + $0x7c0] sm:$0xf]  ;;  %v9546_v17 = vpop.f32.mrf.mxu0  ;;  %v8516_v2 = vld [vmem:[#allocation8 + $0x78c] sm:$0xf0] }
 0x231   :  { %v6884_v9 = vor.u32 %v8524_v42, %v6883_v24  ;;  %v8478_v24 = vld [vmem:[#allocation8 + $0x664] sm:$0xf] }
 0x232   :  { %2371 = vmatmul.bf16.vlgmr.msra.gmra.mxu3 %v9524_v19  ;;  %2428 = vmatmul.bf16.vlgmr.msrb.gmra.mxu2 %v9481_v6  ;;  %v1365_v31 = vadd.f32 %v9503_v44, %v1346_v50  ;;  %v6867_v44 = vld [vmem:[#allocation8 + $0x7a0] sm:$0xf]  ;;  %v6725_v50 = vld [vmem:[#allocation8 + $0x690] sm:$0xf0] }
 0x233   :  { %2515 = vmatpush.bf16.msra.mxu3 %v6652_v60  ;;  %2572 = vmatpush.bf16.msrb.mxu2 %v6528_v35  ;;  %v6868_v33 = vor.u32 %v8520_v37, %v6867_v44  ;;  %v6604_v60 = vor.u32 %v8453_v59, %v6603_v57  ;;  %v6835_v35 = vld [vmem:[#allocation8 + $0x760] sm:$0xf] }
 0x234   :  { %2402 = vmatpush.bf16.msrb.mxu1 %v6884_v9  ;;  %2459 = vmatpush.bf16.msra.mxu0 %v6760_v15  ;;  %v1384_v63 = vadd.f32 %v9508_v53, %v1365_v31  ;;  %v9543_v47 = vpop.f32.mrf.mxu3  ;;  %v6709_v31 = vld [vmem:[#allocation8 + $0x670] sm:$0xf0]  ;;  %v8449_v9 = vld [vmem:[#allocation8 + $0x574] sm:$0xf0]  ;;  %v8415_v15 = vld [vmem:[#allocation8 + $0x46c] sm:$0xf] }
 0x235   :  { %v1328_v3 = vpop.f32.mrf.mxu2  ;;  %v6712_v41 = vor.u32 %v8478_v24, %v6709_v31  ;;  %v6464_v22 = vor.u32 %v8415_v15, %v6461_v55  ;;  %v6661_v24 = vld [vmem:[#allocation8 + $0x610] sm:$0xf0] }
 0x236   :  { %v1329_v7 = vadd.f32 %v1328_v3, %v9494_v51  ;;  %v8486_v51 = vld [vmem:[#allocation8 + $0x6a4] sm:$0xf]  ;;  %v1549_v45 = vmax.f32 %v1384_v63, 0.0  ;;  %v8512_v3 = vld [vmem:[#allocation8 + $0x76c] sm:$0xf0]  ;;  %v6664_v31 = vor.u32 %v8466_v48, %v6661_v24 }
 0x237   :  { %2516 = vmatpush.bf16.msra.mxu3 %v6636_v46  ;;  %2573 = vmatpush.bf16.msrb.mxu2 %v6512_v20  ;;  %v6744_v27 = vor.u32 %v8486_v51, %v6741_v52  ;;  %v6836_v62 = vor.u32 %v8512_v3, %v6835_v35  ;;  %v8508_v46 = vld [vmem:[#allocation8 + $0x74c] sm:$0xf0]  ;;  %v8474_v20 = vld [vmem:[#allocation8 + $0x644] sm:$0xf]  ;;  %v6693_v63 = vld [vmem:[#allocation8 + $0x650] sm:$0xf0] }
 0x238   :  { %v1348_v39 = vadd.f32 %v9514_v58, %v1329_v7  ;;  %v8457_v58 = vld [vmem:[#allocation8 + $0x5b4] sm:$0xf0]  ;;  %2403 = vmatpush.bf16.msrb.mxu1 %v6868_v33  ;;  %v6587_v7 = vld [vmem:[#allocation8 + $0x568] sm:$0xf]  ;;  %v9560_v33 = vpop.f32.mrf.mxu0  ;;  %v6696_v52 = vor.u32 %v8474_v20, %v6693_v63 }
 0x239   :  { %v6620_v30 = vor.u32 %v8457_v58, %v6619_v0  ;;  %2460 = vmatpush.bf16.msra.mxu0 %v6744_v27  ;;  %v6588_v16 = vor.u32 %v8449_v9, %v6587_v7  ;;  %v8445_v0 = vld [vmem:[#allocation8 + $0x554] sm:$0xf0]  ;;  %v8411_v58 = vld [vmem:[#allocation8 + $0x44c] sm:$0xf]  ;;  %v6445_v27 = vld [vmem:[#allocation8 + $0x458] sm:$0xf0] }
 0x23a   :  { %v1367_v4 = vadd.f32 %v9517_v34, %v1348_v39  ;;  %v6851_v34 = vld [vmem:[#allocation8 + $0x780] sm:$0xf]  ;;  %v6448_v56 = vor.u32 %v8411_v58, %v6445_v27  ;;  %v8437_v7 = vld [vmem:[#allocation8 + $0x514] sm:$0xf0]  ;;  %v6413_v9 = vld [vmem:[#allocation8 + $0x418] sm:$0xf0] }
 0x23b   :  { %2517 = vmatpush.bf16.msra.mxu3 %v6620_v30  ;;  %2574 = vmatpush.bf16.msrb.mxu2 %v6496_v8  ;;  %v6852_v49 = vor.u32 %v8516_v2, %v6851_v34  ;;  %v8504_v8 = vld [vmem:[#allocation8 + $0x72c] sm:$0xf0]  ;;  %v6885_v58 = vld [vmem:[#allocation8 + $0x7d0] sm:$0xf0]  ;;  %v6763_v27 = vld [vmem:[#allocation8 + $0x6c8] sm:$0xf] }
 0x23c   :  { %v1386_v38 = vadd.f32 %v9520_v12, %v1367_v4  ;;  %v6728_v12 = vor.u32 %v8482_v25, %v6725_v50  ;;  %v9556_v26 = vpop.f32.mrf.mxu3  ;;  %v6571_v4 = vld [vmem:[#allocation8 + $0x548] sm:$0xf]  ;;  %v8407_v50 = vld [vmem:[#allocation8 + $0x42c] sm:$0xf] }
 0x23d   :  { %v1397_v53 = vpop.f32.mrf.mxu2  ;;  %2404 = vmatpush.bf16.msrb.mxu1 %v6852_v49  ;;  %v6572_v13 = vor.u32 %v8445_v0, %v6571_v4  ;;  %v8441_v49 = vld [vmem:[#allocation8 + $0x534] sm:$0xf0] }
 0x23e   :  { %v1553_v61 = vmax.f32 %v1386_v38, 0.0  ;;  %v1398_v43 = vadd.f32 %v1397_v53, %v9539_v36  ;;  %2461 = vmatpush.bf16.msra.mxu0 %v6728_v12  ;;  %v9563_v38 = vpop.f32.mrf.mxu1  ;;  %v8470_v53 = vld [vmem:[#allocation8 + $0x624] sm:$0xf]  ;;  %v6429_v12 = vld [vmem:[#allocation8 + $0x438] sm:$0xf0] }
 0x23f   :  { %2518 = vmatpush.bf16.msra.mxu3 %v6604_v60  ;;  %2575 = vmatpush.bf16.msrb.mxu2 %v6480_v10  ;;  %v6432_v59 = vor.u32 %v8407_v50, %v6429_v12  ;;  %v6787_v60 = vld [vmem:[#allocation8 + $0x700] sm:$0xf]  ;;  %v8489_v12 = vld [vmem:[#allocation8 + $0x6b4] sm:$0xf0] }
 0x240   :  { %v9551_v29 = vpack.c.bf16 %v1553_v61, %v1549_v45  ;;  %v1417_v42 = vadd.f32 %v9526_v18, %v1398_v43  ;;  %v6819_v18 = vld [vmem:[#allocation8 + $0x740] sm:$0xf]  ;;  %v6677_v61 = vld [vmem:[#allocation8 + $0x630] sm:$0xf0]  ;;  %v6555_v43 = vld [vmem:[#allocation8 + $0x528] sm:$0xf]  ;;  %v1442_v55 = vpop.f32.mrf.mxu0 }
 0x241   :  { %2405 = vmatpush.bf16.msrb.mxu1 %v6836_v62  ;;  %v6820_v51 = vor.u32 %v8508_v46, %v6819_v18  ;;  %v6556_v25 = vor.u32 %v8441_v49, %v6555_v43  ;;  %v6779_v18 = vld [vmem:[#allocation8 + $0x6e8] sm:$0xf]  ;;  %v8518_v49 = vld [vmem:[#allocation8 + $0x7a4] sm:$0xf] }
 0x242   :  { %2376 = vmatmul.bf16.gmra.mxu3 %v9551_v29  ;;  %2433 = vmatmul.bf16.gmra.mxu2 %v9506_v14  ;;  %v1436_v44 = vadd.f32 %v9531_v28, %v1417_v42  ;;  %v6803_v28 = vld [vmem:[#allocation8 + $0x720] sm:$0xf]  ;;  %v6539_v42 = vld [vmem:[#allocation8 + $0x508] sm:$0xf] }
 0x243   :  { %2462 = vmatpush.bf16.msra.mxu0 %v6712_v41  ;;  %2519 = vmatpush.bf16.msra.mxu3 %v6588_v16  ;;  %v6804_v45 = vor.u32 %v8504_v8, %v6803_v28  ;;  %v6540_v16 = vor.u32 %v8437_v7, %v6539_v42  ;;  %v8493_v28 = vld [vmem:[#allocation8 + $0x6d4] sm:$0xf0]  ;;  %v8459_v8 = vld [vmem:[#allocation8 + $0x5cc] sm:$0xf] }
 0x244   :  { %2576 = vmatpush.bf16.msrb.mxu2 %v6464_v22  ;;  %v1455_v34 = vadd.f32 %v9533_v11, %v1436_v44  ;;  %v8500_v11 = vld [vmem:[#allocation8 + $0x70c] sm:$0xf0]  ;;  %v1423_v62 = vpop.f32.mrf.mxu3  ;;  %v8526_v22 = vld [vmem:[#allocation8 + $0x7e4] sm:$0xf]  ;;  %v8497_v44 = vld [vmem:[#allocation8 + $0x6f4] sm:$0xf0] }
 0x245   :  { %v1399_v39 = vpop.f32.mrf.mxu2  ;;  %2406 = vmatpush.bf16.msrb.mxu1 %v6820_v51  ;;  %v6788_v3 = vor.u32 %v8500_v11, %v6787_v60  ;;  %v6653_v51 = vld [vmem:[#allocation8 + $0x5f8] sm:$0xf0]  ;;  %v6780_v4 = vor.u32 %v8497_v44, %v6779_v18  ;;  %v8451_v7 = vld [vmem:[#allocation8 + $0x58c] sm:$0xf] }
 0x246   :  { %v1400_v37 = vadd.f32 %v1399_v39, %v9539_v36  ;;  %v6901_v39 = vld [vmem:[#allocation8 + $0x7f0] sm:$0xf0]  ;;  %v1461_v63 = vpop.f32.mrf.mxu1  ;;  %v8447_v44 = vld [vmem:[#allocation8 + $0x56c] sm:$0xf] }
 0x247   :  { %2463 = vmatpush.bf16.msra.mxu0 %v6696_v52  ;;  %2520 = vmatpush.bf16.msra.mxu3 %v6572_v13  ;;  %v6904_v20 = vor.u32 %v8526_v22, %v6901_v39  ;;  %v6837_v22 = vld [vmem:[#allocation8 + $0x770] sm:$0xf0]  ;;  %v6715_v39 = vld [vmem:[#allocation8 + $0x668] sm:$0xf] }
 0x248   :  { %v1419_v30 = vadd.f32 %v9543_v47, %v1400_v37  ;;  %2577 = vmatpush.bf16.msrb.mxu2 %v6448_v56  ;;  %v6680_v47 = vor.u32 %v8470_v53, %v6677_v61  ;;  %v8463_v37 = vld [vmem:[#allocation8 + $0x5ec] sm:$0xf]  ;;  %v6764_v53 = vor.u32 %v8493_v28, %v6763_v27  ;;  %v8477_v27 = vld [vmem:[#allocation8 + $0x654] sm:$0xf0] }
 0x249   :  { %2407 = vmatpush.bf16.msrb.mxu1 %v6804_v45  ;;  %v6656_v52 = vor.u32 %v8463_v37, %v6653_v51  ;;  %v9578_v45 = vperm.slane %v9454_v40, 3  ;;  %v6589_v37 = vld [vmem:[#allocation8 + $0x578] sm:$0xf0] }
 0x24a   :  { %v1438_v2 = vadd.f32 %v9546_v17, %v1419_v30  ;;  %v1542_v17 = vmax.f32 %v1455_v34, 0.0  ;;  %v6637_v34 = vld [vmem:[#allocation8 + $0x5d8] sm:$0xf0] }
 0x24b   :  { %2464 = vmatpush.bf16.msra.mxu0 %v6680_v47  ;;  %2521 = vmatpush.bf16.msra.mxu3 %v6556_v25  ;;  %v6640_v61 = vor.u32 %v8459_v8, %v6637_v34  ;;  %v6869_v47 = vld [vmem:[#allocation8 + $0x7b0] sm:$0xf0]  ;;  %v6747_v25 = vld [vmem:[#allocation8 + $0x6a8] sm:$0xf] }
 0x24c   :  { %v1457_v57 = vadd.f32 %v9549_v54, %v1438_v2  ;;  %2578 = vmatpush.bf16.msrb.mxu2 %v6432_v59  ;;  %v8403_v54 = vld [vmem:[#allocation8 + $0x40c] sm:$0xf]  ;;  %v1492_v43 = vpop.f32.mrf.mxu3  ;;  %v6621_v59 = vld [vmem:[#allocation8 + $0x5b8] sm:$0xf0]  ;;  %v6748_v60 = vor.u32 %v8489_v12, %v6747_v25  ;;  %v6805_v34 = vld [vmem:[#allocation8 + $0x730] sm:$0xf0] }
 0x24d   :  { %v1402_v21 = vpop.f32.mrf.mxu2  ;;  %2408 = vmatpush.bf16.msrb.mxu1 %v6788_v3  ;;  %v6416_v15 = vor.u32 %v8403_v54, %v6413_v9  ;;  %v6731_v3 = vld [vmem:[#allocation8 + $0x688] sm:$0xf]  ;;  %v6605_v9 = vld [vmem:[#allocation8 + $0x598] sm:$0xf0] }
 0x24e   :  { %v1546_v10 = vmax.f32 %v1457_v57, 0.0  ;;  %v1403_v35 = vadd.f32 %v1402_v21, %v9539_v36  ;;  %v8455_v57 = vld [vmem:[#allocation8 + $0x5ac] sm:$0xf]  ;;  %v1511_v21 = vpop.f32.mrf.mxu0  ;;  %v9581_v48 = vpop.f32.mrf.mxu1  ;;  %v6557_v12 = vld [vmem:[#allocation8 + $0x538] sm:$0xf0] }
 0x24f   :  { %2465 = vmatpush.bf16.msra.mxu0 %v6664_v31  ;;  %2522 = vmatpush.bf16.msra.mxu3 %v6540_v16  ;;  %v6624_v11 = vor.u32 %v8455_v57, %v6621_v59  ;;  %v8485_v31 = vld [vmem:[#allocation8 + $0x694] sm:$0xf0]  ;;  %v8498_v59 = vld [vmem:[#allocation8 + $0x704] sm:$0xf] }
 0x250   :  { %v9569_v41 = vpack.c.bf16 %v1546_v10, %v1542_v17  ;;  %v1422_v46 = vadd.f32 %v9556_v26, %v1403_v35  ;;  %2579 = vmatpush.bf16.msrb.mxu2 %v6416_v15  ;;  %v8522_v26 = vld [vmem:[#allocation8 + $0x7c4] sm:$0xf]  ;;  %v6853_v35 = vld [vmem:[#allocation8 + $0x790] sm:$0xf0]  ;;  %v6732_v54 = vor.u32 %v8485_v31, %v6731_v3  ;;  %v6608_v15 = vor.u32 %v8451_v7, %v6605_v9  ;;  %v6541_v31 = vld [vmem:[#allocation8 + $0x518] sm:$0xf0] }
 0x251   :  { %2477 = vmatpush.bf16.msra.mxu1 %v6904_v20  ;;  %v6888_v56 = vor.u32 %v8522_v26, %v6885_v58  ;;  %v8514_v10 = vld [vmem:[#allocation8 + $0x784] sm:$0xf]  ;;  %v8481_v20 = vld [vmem:[#allocation8 + $0x674] sm:$0xf0]  ;;  %v6699_v26 = vld [vmem:[#allocation8 + $0x648] sm:$0xf] }
 0x252   :  { %2390 = vmatmul.bf16.vlgmr.msrb.gmra.mxu0 %v9569_v41  ;;  %2447 = vmatmul.bf16.vlgmr.msrb.gmra.mxu3 %v9524_v19  ;;  %v1441_v30 = vadd.f32 %v9560_v33, %v1422_v46  ;;  %v6700_v8 = vor.u32 %v8477_v27, %v6699_v26 }
 0x253   :  { %2504 = vmatmul.bf16.vlgmr.msra.gmra.mxu2 %v9481_v6  ;;  %2534 = vmatpush.bf16.msrb.mxu0 %v6780_v4  ;;  %v6592_v4 = vor.u32 %v8447_v44, %v6589_v37  ;;  %v6781_v37 = vld [vmem:[#allocation8 + $0x6f8] sm:$0xf0] }
 0x254   :  { %2591 = vmatpush.bf16.msrb.mxu3 %v6656_v52  ;;  %v1460_v33 = vadd.f32 %v9563_v38, %v1441_v30  ;;  %v1494_v51 = vpop.f32.mrf.mxu3  ;;  %v8506_v52 = vld [vmem:[#allocation8 + $0x744] sm:$0xf]  ;;  %v8443_v30 = vld [vmem:[#allocation8 + $0x54c] sm:$0xf] }
 0x255   :  { %v1404_v0 = vpop.f32.mrf.mxu2  ;;  %2478 = vmatpush.bf16.msra.mxu1 %v6888_v56 }
 0x256   :  { %v1405_v13 = vadd.f32 %v1404_v0, %v9539_v36  ;;  %v6872_v36 = vor.u32 %v8518_v49, %v6869_v47  ;;  %v1550_v24 = vmax.f32 %v1460_v33, 0.0  ;;  %v6821_v0 = vld [vmem:[#allocation8 + $0x750] sm:$0xf0]  ;;  %v1513_v56 = vpop.f32.mrf.mxu0  ;;  %v8473_v49 = vld [vmem:[#allocation8 + $0x634] sm:$0xf0]  ;;  %v1532_v47 = vpop.f32.mrf.mxu1 }
 0x257   :  { %2535 = vmatpush.bf16.msrb.mxu0 %v6764_v53  ;;  %v6824_v58 = vor.u32 %v8506_v52, %v6821_v0  ;;  %v8502_v53 = vld [vmem:[#allocation8 + $0x724] sm:$0xf]  ;;  %v8525_v52 = vld [vmem:[#allocation8 + $0x7d4] sm:$0xf0]  ;;  %v8491_v0 = vld [vmem:[#allocation8 + $0x6cc] sm:$0xf] }
 0x258   :  { %v1424_v2 = vadd.f32 %v1423_v62, %v1405_v13  ;;  %2592 = vmatpush.bf16.msrb.mxu3 %v6640_v61  ;;  %v6856_v62 = vor.u32 %v8514_v10, %v6853_v35  ;;  %v6573_v13 = vld [vmem:[#allocation8 + $0x558] sm:$0xf0] }
 0x259   :  { %2479 = vmatpush.bf16.msra.mxu1 %v6872_v36  ;;  %v6576_v25 = vor.u32 %v8443_v30, %v6573_v13  ;;  %v8439_v36 = vld [vmem:[#allocation8 + $0x52c] sm:$0xf]  ;;  %v6765_v30 = vld [vmem:[#allocation8 + $0x6d8] sm:$0xf0]  ;;  %v6875_v13 = vld [vmem:[#allocation8 + $0x7a8] sm:$0xf] }
 0x25a   :  { %v1443_v50 = vadd.f32 %v1442_v55, %v1424_v2  ;;  %v8510_v55 = vld [vmem:[#allocation8 + $0x764] sm:$0xf]  ;;  %v6560_v10 = vor.u32 %v8439_v36, %v6557_v12  ;;  %v8483_v36 = vld [vmem:[#allocation8 + $0x68c] sm:$0xf] }
 0x25b   :  { %2536 = vmatpush.bf16.msrb.mxu0 %v6748_v60  ;;  %v6840_v46 = vor.u32 %v8510_v55, %v6837_v22  ;;  %v6789_v60 = vld [vmem:[#allocation8 + $0x710] sm:$0xf0] }
 0x25c   :  { %v1462_v40 = vadd.f32 %v1461_v63, %v1443_v50  ;;  %2593 = vmatpush.bf16.msrb.mxu3 %v6624_v11  ;;  %v6716_v63 = vor.u32 %v8481_v20, %v6715_v39  ;;  %v6808_v50 = vor.u32 %v8502_v53, %v6805_v34  ;;  %v6792_v3 = vor.u32 %v8498_v59, %v6789_v60  ;;  %v6907_v39 = vld [vmem:[#allocation8 + $0x7e8] sm:$0xf]  ;;  %v8487_v53 = vld [vmem:[#allocation8 + $0x6ac] sm:$0xf]  ;;  %v6749_v34 = vld [vmem:[#allocation8 + $0x6b8] sm:$0xf0] }
 0x25d   :  { %v1473_v17 = vpop.f32.mrf.mxu2  ;;  %2480 = vmatpush.bf16.msra.mxu1 %v6856_v62  ;;  %v8435_v62 = vld [vmem:[#allocation8 + $0x50c] sm:$0xf]  ;;  %v6733_v60 = vld [vmem:[#allocation8 + $0x698] sm:$0xf0] }
 0x25e   :  { %v1554_v38 = vmax.f32 %v1462_v40, 0.0  ;;  %v1474_v42 = vadd.f32 %v1473_v17, %v9578_v45  ;;  %v8469_v17 = vld [vmem:[#allocation8 + $0x614] sm:$0xf0]  ;;  %v6544_v55 = vor.u32 %v8435_v62, %v6541_v31  ;;  %v1535_v22 = vpop.f32.mrf.mxu1  ;;  %v8475_v62 = vld [vmem:[#allocation8 + $0x64c] sm:$0xf] }
 0x25f   :  { %2537 = vmatpush.bf16.msrb.mxu0 %v6732_v54 }
 0x260   :  { %v9584_v16 = vpack.c.bf16 %v1554_v38, %v1550_v24  ;;  %v1493_v18 = vadd.f32 %v1492_v43, %v1474_v42  ;;  %2594 = vmatpush.bf16.msrb.mxu3 %v6608_v15  ;;  %v6683_v43 = vld [vmem:[#allocation8 + $0x628] sm:$0xf]  ;;  %v1497_v24 = vpop.f32.mrf.mxu3  ;;  %v1516_v15 = vpop.f32.mrf.mxu0 }
 0x261   :  { %2481 = vmatpush.bf16.msra.mxu1 %v6840_v46  ;;  %v6684_v57 = vor.u32 %v8473_v49, %v6683_v43  ;;  %v8495_v46 = vld [vmem:[#allocation8 + $0x6ec] sm:$0xf]  ;;  %v6752_v43 = vor.u32 %v8487_v53, %v6749_v34  ;;  %v6845_v34 = vld [vmem:[#allocation8 + $0x778] sm:$0xf0] }
 0x262   :  { %2395 = vmatmul.bf16.gmra.mxu0 %v9584_v16  ;;  %2452 = vmatmul.bf16.gmra.mxu3 %v9551_v29  ;;  %v1512_v2 = vadd.f32 %v1511_v21, %v1493_v18  ;;  %v6667_v21 = vld [vmem:[#allocation8 + $0x608] sm:$0xf]  ;;  %v8529_v18 = vld [vmem:[#allocation8 + $0x7f4] sm:$0xf0]  ;;  %v8511_v53 = vld [vmem:[#allocation8 + $0x76c] sm:$0xf] }
 0x263   :  { %2509 = vmatmul.bf16.gmra.mxu2 %v9506_v14  ;;  %2538 = vmatpush.bf16.msrb.mxu0 %v6716_v63  ;;  %v6668_v42 = vor.u32 %v8469_v17, %v6667_v21  ;;  %v6908_v44 = vor.u32 %v8529_v18, %v6907_v39  ;;  %v6843_v21 = vld [vmem:[#allocation8 + $0x768] sm:$0xf]  ;;  %v8513_v17 = vld [vmem:[#allocation8 + $0x774] sm:$0xf0] }
 0x264   :  { %2595 = vmatpush.bf16.msrb.mxu3 %v6592_v4  ;;  %v1531_v11 = vadd.f32 %v9581_v48, %v1512_v2  ;;  %v6891_v4 = vld [vmem:[#allocation8 + $0x7c8] sm:$0xf] }
 0x265   :  { %v1475_v28 = vpop.f32.mrf.mxu2  ;;  %2482 = vmatpush.bf16.msra.mxu1 %v6824_v58  ;;  %v6892_v27 = vor.u32 %v8525_v52, %v6891_v4  ;;  %v6909_v4 = vld [vmem:[#allocation8 + $0x7f8] sm:$0xf0] }
 0x266   :  { %v1476_v61 = vadd.f32 %v1475_v28, %v9578_v45  ;;  %v1543_v7 = vmax.f32 %v1531_v11, 0.0  ;;  %v6768_v28 = vor.u32 %v8491_v0, %v6765_v30  ;;  %v6736_v11 = vor.u32 %v8483_v36, %v6733_v60  ;;  %v8523_v0 = vld [vmem:[#allocation8 + $0x7cc] sm:$0xf]  ;;  %v6877_v30 = vld [vmem:[#allocation8 + $0x7b8] sm:$0xf0] }
 0x267   :  { %2539 = vmatpush.bf16.msrb.mxu0 %v6700_v8  ;;  %v8521_v8 = vld [vmem:[#allocation8 + $0x7b4] sm:$0xf0] }
 0x268   :  { %v1495_v33 = vadd.f32 %v1494_v51, %v1476_v61  ;;  %2596 = vmatpush.bf16.msrb.mxu3 %v6576_v25  ;;  %v6784_v51 = vor.u32 %v8495_v46, %v6781_v37  ;;  %v6876_v2 = vor.u32 %v8521_v8, %v6875_v13  ;;  %v1518_v61 = vpop.f32.mrf.mxu0  ;;  %v1537_v25 = vpop.f32.mrf.mxu1  ;;  %v8501_v46 = vld [vmem:[#allocation8 + $0x714] sm:$0xf0]  ;;  %v6669_v37 = vld [vmem:[#allocation8 + $0x618] sm:$0xf0] }
 0x269   :  { %2483 = vmatpush.bf16.msra.mxu1 %v6808_v50  ;;  %v8517_v50 = vld [vmem:[#allocation8 + $0x794] sm:$0xf0] }
 0x26a   :  { %v1514_v40 = vadd.f32 %v1513_v56, %v1495_v33  ;;  %v1499_v56 = vpop.f32.mrf.mxu3 }
 0x26b   :  { %2540 = vmatpush.bf16.msrb.mxu0 %v6684_v57 }
 0x26c   :  { %v1533_v35 = vadd.f32 %v1532_v47, %v1514_v40  ;;  %2597 = vmatpush.bf16.msrb.mxu3 %v6560_v10  ;;  %v8479_v10 = vld [vmem:[#allocation8 + $0x66c] sm:$0xf] }
 0x26d   :  { %v1478_v38 = vpop.f32.mrf.mxu2  ;;  %2484 = vmatpush.bf16.msra.mxu1 %v6792_v3  ;;  %v6717_v3 = vld [vmem:[#allocation8 + $0x678] sm:$0xf0] }
 0x26e   :  { %v1547_v54 = vmax.f32 %v1533_v35, 0.0  ;;  %v1479_v9 = vadd.f32 %v1478_v38, %v9578_v45  ;;  %v6844_v35 = vor.u32 %v8513_v17, %v6843_v21  ;;  %v6827_v38 = vld [vmem:[#allocation8 + $0x748] sm:$0xf] }
 0x26f   :  { %2541 = vmatpush.bf16.msrb.mxu0 %v6668_v42  ;;  %v8509_v42 = vld [vmem:[#allocation8 + $0x754] sm:$0xf0] }
 0x270   :  { %v9592_v48 = vpack.c.bf16 %v1547_v54, %v1543_v7  ;;  %v1498_v20 = vadd.f32 %v1497_v24, %v1479_v9  ;;  %2598 = vmatpush.bf16.msrb.mxu3 %v6544_v55  ;;  %v6720_v24 = vor.u32 %v8479_v10, %v6717_v3  ;;  %v6828_v31 = vor.u32 %v8509_v42, %v6827_v38  ;;  %v6701_v7 = vld [vmem:[#allocation8 + $0x658] sm:$0xf0]  ;;  %v6811_v54 = vld [vmem:[#allocation8 + $0x728] sm:$0xf]  ;;  %v8505_v9 = vld [vmem:[#allocation8 + $0x734] sm:$0xf0] }
 0x271   :  { %v8471_v55 = vld [vmem:[#allocation8 + $0x62c] sm:$0xf]  ;;  %v6812_v39 = vor.u32 %v8505_v9, %v6811_v54  ;;  %v9619_v42 = vld [vmem:[#allocation13 + $0x2] ss:$8 sm:$0xf] }
 0x272   :  { %2409 = vmatmul.bf16.vlgmr.msrb.gmra.mxu1 %v9592_v48  ;;  %2466 = vmatmul.bf16.vlgmr.msra.gmra.mxu0 %v9569_v41  ;;  %v1517_v26 = vadd.f32 %v1516_v15, %v1498_v20  ;;  %v6704_v15 = vor.u32 %v8475_v62, %v6701_v7  ;;  %v8467_v20 = vld [vmem:[#allocation8 + $0x60c] sm:$0xf] }
 0x273   :  { %2523 = vmatmul.bf16.vlgmr.msra.gmra.mxu3 %v9524_v19  ;;  %2580 = vmatmul.bf16.vlgmr.msrb.gmra.mxu2 %v9481_v6 }
 0x274   :  { %2553 = vmatpush.bf16.msrb.mxu1 %v6908_v44  ;;  %2610 = vmatpush.bf16.msra.mxu0 %v6784_v51  ;;  %v1536_v49 = vadd.f32 %v1535_v22, %v1517_v26  ;;  %v6685_v22 = vld [vmem:[#allocation8 + $0x638] sm:$0xf0]  ;;  %v6672_v51 = vor.u32 %v8467_v20, %v6669_v37 }
 0x275   :  { %v1480_v63 = vpop.f32.mrf.mxu2  ;;  %v6688_v18 = vor.u32 %v8471_v55, %v6685_v22  ;;  %v6893_v26 = vld [vmem:[#allocation8 + $0x7d8] sm:$0xf0] }
 0x276   :  { %v1481_v58 = vadd.f32 %v1480_v63, %v9578_v45  ;;  %v6859_v45 = vld [vmem:[#allocation8 + $0x788] sm:$0xf]  ;;  %v1551_v12 = vmax.f32 %v1536_v49, 0.0  ;;  %v8527_v63 = vld [vmem:[#allocation8 + $0x7ec] sm:$0xf] }
 0x277   :  { %v6860_v59 = vor.u32 %v8517_v50, %v6859_v45  ;;  %v6912_v52 = vor.u32 %v8527_v63, %v6909_v4  ;;  %v6813_v49 = vld [vmem:[#allocation8 + $0x738] sm:$0xf0] }
 0x278   :  { %v1500_v6 = vadd.f32 %v1499_v56, %v1481_v58  ;;  %2554 = vmatpush.bf16.msrb.mxu1 %v6892_v27  ;;  %2611 = vmatpush.bf16.msra.mxu0 %v6768_v28  ;;  %v6896_v58 = vor.u32 %v8523_v0, %v6893_v26  ;;  %v8519_v27 = vld [vmem:[#allocation8 + $0x7ac] sm:$0xf]  ;;  %v6861_v28 = vld [vmem:[#allocation8 + $0x798] sm:$0xf0] }
 0x279   :  { %v6880_v13 = vor.u32 %v8519_v27, %v6877_v30  ;;  %v8515_v56 = vld [vmem:[#allocation8 + $0x78c] sm:$0xf] }
 0x27a   :  { %v1519_v47 = vadd.f32 %v1518_v61, %v1500_v6  ;;  %v6864_v8 = vor.u32 %v8515_v56, %v6861_v28  ;;  %v8507_v6 = vld [vmem:[#allocation8 + $0x74c] sm:$0xf] }
 0x27c   :  { %v1538_v33 = vadd.f32 %v1537_v25, %v1519_v47  ;;  %2555 = vmatpush.bf16.msrb.mxu1 %v6876_v2  ;;  %2612 = vmatpush.bf16.msra.mxu0 %v6752_v43  ;;  %v6829_v2 = vld [vmem:[#allocation8 + $0x758] sm:$0xf0]  ;;  %v8503_v43 = vld [vmem:[#allocation8 + $0x72c] sm:$0xf] }
 0x27d   :  { %v6832_v61 = vor.u32 %v8507_v6, %v6829_v2  ;;  %v6816_v47 = vor.u32 %v8503_v43, %v6813_v49  ;;  %v8499_v25 = vld [vmem:[#allocation8 + $0x70c] sm:$0xf] }
 0x27e   :  { %v1555_v57 = vmax.f32 %v1538_v33, 0.0  ;;  %v6797_v33 = vld [vmem:[#allocation8 + $0x718] sm:$0xf0] }
 0x27f   :  { %v6800_v45 = vor.u32 %v8499_v25, %v6797_v33  ;;  %v1697_v25 = vperm.slane %v9619_v42, 1 }
 0x280   :  { %v9599_v40 = vpack.c.bf16 %v1555_v57, %v1551_v12  ;;  %2556 = vmatpush.bf16.msrb.mxu1 %v6860_v59  ;;  %2613 = vmatpush.bf16.msra.mxu0 %v6736_v11 }
 0x282   :  { %2414 = vmatmul.bf16.gmra.mxu1 %v9599_v40  ;;  %2471 = vmatmul.bf16.gmra.mxu0 %v9584_v16 }
 0x283   :  { %2528 = vmatmul.bf16.gmra.mxu3 %v9551_v29  ;;  %2585 = vmatmul.bf16.gmra.mxu2 %v9506_v14  ;;  %v6795_v14 = vld [vmem:[#allocation8 + $0x708] sm:$0xf] }
 0x284   :  { %2557 = vmatpush.bf16.msrb.mxu1 %v6844_v35  ;;  %2614 = vmatpush.bf16.msra.mxu0 %v6720_v24  ;;  %v6796_v44 = vor.u32 %v8501_v46, %v6795_v14 }
 0x288   :  { %2558 = vmatpush.bf16.msrb.mxu1 %v6828_v31  ;;  %2615 = vmatpush.bf16.msra.mxu0 %v6704_v15  ;;  %v1696_v31 = vperm.slane %v9619_v42, 0 }
 0x28c   :  { %2559 = vmatpush.bf16.msrb.mxu1 %v6812_v39  ;;  %2616 = vmatpush.bf16.msra.mxu0 %v6688_v18 }
 0x290   :  { %2560 = vmatpush.bf16.msrb.mxu1 %v6796_v44  ;;  %2617 = vmatpush.bf16.msra.mxu0 %v6672_v51 }
 0x292   :  { %2485 = vmatmul.bf16.vlgmr.msra.gmra.mxu1 %v9592_v48  ;;  %2542 = vmatmul.bf16.vlgmr.msrb.gmra.mxu0 %v9569_v41 }
 0x293   :  { %2599 = vmatmul.bf16.vlgmr.msrb.gmra.mxu3 %v9524_v19  ;;  %v6848_v19 = vor.u32 %v8511_v53, %v6845_v34 }
 0x294   :  { %2629 = vmatpush.bf16.msra.mxu1 %v6912_v52 }
 0x298   :  { %2630 = vmatpush.bf16.msra.mxu1 %v6896_v58 }
 0x29c   :  { %2631 = vmatpush.bf16.msra.mxu1 %v6880_v13 }
 0x2a0   :  { %2632 = vmatpush.bf16.msra.mxu1 %v6864_v8 }
 0x2a2   :  { %2490 = vmatmul.bf16.gmra.mxu1 %v9599_v40  ;;  %2547 = vmatmul.bf16.gmra.mxu0 %v9584_v16 }
 0x2a3   :  { %2604 = vmatmul.bf16.gmra.mxu3 %v9551_v29  ;;  %v2353_v29 = vpop.f32.mrf.mxu2 }
 0x2a4   :  { %2633 = vmatpush.bf16.msra.mxu1 %v6848_v19  ;;  %v2354_v22 = vadd.f32 %v2353_v29, %v1696_v31 }
 0x2a8   :  { %2634 = vmatpush.bf16.msra.mxu1 %v6832_v61 }
 0x2ab   :  { %v2355_v12 = vpop.f32.mrf.mxu2 }
 0x2ac   :  { %2635 = vmatpush.bf16.msra.mxu1 %v6816_v47  ;;  %v2356_v15 = vadd.f32 %v2355_v12, %v1696_v31 }
 0x2b0   :  { %2636 = vmatpush.bf16.msra.mxu1 %v6800_v45 }
 0x2b2   :  { %2561 = vmatmul.bf16.vlgmr.msrb.gmra.mxu1 %v9592_v48  ;;  %2618 = vmatmul.bf16.vlgmr.msra.gmra.mxu0 %v9569_v41 }
 0x2b3   :  { %v2358_v60 = vpop.f32.mrf.mxu2 }
 0x2b4   :  { %v2359_v9 = vadd.f32 %v2358_v60, %v1696_v31 }
 0x2b5   :  { %v2372_v50 = vpop.f32.mrf.mxu3 }
 0x2b6   :  { %v2373_v20 = vadd.f32 %v2372_v50, %v2354_v22 }
 0x2bb   :  { %v2360_v17 = vpop.f32.mrf.mxu2 }
 0x2bd   :  { %v2374_v57 = vpop.f32.mrf.mxu3 }
 0x2be   :  { %v2375_v39 = vadd.f32 %v2374_v57, %v2356_v15 }
 0x2c2   :  { %2566 = vmatmul.bf16.gmra.mxu1 %v9599_v40  ;;  %2623 = vmatmul.bf16.gmra.mxu0 %v9584_v16 }
 0x2c3   :  { %v2429_v3 = vpop.f32.mrf.mxu2 }
 0x2c4   :  { %v2430_v57 = vadd.f32 %v2429_v3, %v1697_v25 }
 0x2c5   :  { %v2377_v11 = vpop.f32.mrf.mxu3 }
 0x2c6   :  { %v2378_v55 = vadd.f32 %v2377_v11, %v2359_v9 }
 0x2cd   :  { %v2379_v10 = vpop.f32.mrf.mxu3 }
 0x2cf   :  { %v2391_v36 = vpop.f32.mrf.mxu0 }
 0x2d0   :  { %v2392_v52 = vadd.f32 %v2391_v36, %v2373_v20 }
 0x2d2   :  { %2637 = vmatmul.bf16.vlgmr.msra.gmra.mxu1 %v9592_v48  ;;  %v2431_v48 = vpop.f32.mrf.mxu2 }
 0x2d3   :  { %v2432_v29 = vadd.f32 %v2431_v48, %v1697_v25 }
 0x2d5   :  { %v2448_v24 = vpop.f32.mrf.mxu3 }
 0x2d7   :  { %v2393_v59 = vpop.f32.mrf.mxu0 }
 0x2d8   :  { %v2394_v44 = vadd.f32 %v2393_v59, %v2375_v39 }
 0x2da   :  { %v2434_v46 = vpop.f32.mrf.mxu2 }
 0x2db   :  { %v2435_v45 = vadd.f32 %v2434_v46, %v1697_v25 }
 0x2dd   :  { %v2450_v62 = vpop.f32.mrf.mxu3 }
 0x2de   :  { %v2451_v59 = vadd.f32 %v2450_v62, %v2432_v29 }
 0x2df   :  { %v2396_v21 = vpop.f32.mrf.mxu0 }
 0x2e0   :  { %v2397_v14 = vadd.f32 %v2396_v21, %v2378_v55 }
 0x2e2   :  { %2642 = vmatmul.bf16.gmra.mxu1 %v9599_v40  ;;  %v2361_v40 = vadd.f32 %v2360_v17, %v1696_v31  ;;  %v2436_v53 = vpop.f32.mrf.mxu2  ;;  %v2449_v17 = vadd.f32 %v2448_v24, %v2430_v57 }
 0x2e3   :  { %v2437_v50 = vadd.f32 %v2436_v53, %v1697_v25 }
 0x2e4   :  { %v2380_v18 = vadd.f32 %v2379_v10, %v2361_v40 }
 0x2e5   :  { %v2453_v63 = vpop.f32.mrf.mxu3 }
 0x2e6   :  { %v2454_v36 = vadd.f32 %v2453_v63, %v2435_v45 }
 0x2e7   :  { %v2398_v41 = vpop.f32.mrf.mxu0 }
 0x2e8   :  { %v2399_v37 = vadd.f32 %v2398_v41, %v2380_v18 }
 0x2ea   :  { %v2505_v43 = vpop.f32.mrf.mxu2 }
 0x2ed   :  { %v2455_v6 = vpop.f32.mrf.mxu3 }
 0x2ee   :  { %v2456_v60 = vadd.f32 %v2455_v6, %v2437_v50 }
 0x2ef   :  { %v2410_v35 = vpop.f32.mrf.mxu1  ;;  %v9617_v16 = vpop.f32.mrf.mxu0 }
 0x2f0   :  { %v9628_v27 = vadd.f32 %v2410_v35, %v2392_v52  ;;  %v2468_v48 = vadd.f32 %v9617_v16, %v2449_v17 }
 0x2f2   :  { %v2648_v8 = vmax.f32 %v9628_v27, 0.0  ;;  %v2507_v12 = vpop.f32.mrf.mxu2 }
 0x2f6   :  { %v2524_v49 = vpop.f32.mrf.mxu3 }
 0x2f7   :  { %v2412_v38 = vpop.f32.mrf.mxu1  ;;  %v2469_v7 = vpop.f32.mrf.mxu0 }
 0x2f8   :  { %v9624_v0 = vadd.f32 %v2412_v38, %v2394_v44  ;;  %v2470_v10 = vadd.f32 %v2469_v7, %v2451_v59 }
 0x2fa   :  { %v2652_v56 = vmax.f32 %v9624_v0, 0.0  ;;  %v2510_v40 = vpop.f32.mrf.mxu2  ;;  %v8561_v0 = vld [vmem:[#allocation8 + $0x8f4] sm:$0xf0] }
 0x2fc   :  { %v2664_v19 = vpack.c.bf16 %v2652_v56, %v2648_v8 }
 0x2fe   :  { %v2526_v21 = vpop.f32.mrf.mxu3 }
 0x2ff   :  { %v2415_v54 = vpop.f32.mrf.mxu1  ;;  %v2472_v58 = vpop.f32.mrf.mxu0 }
 0x300   :  { %v9622_v51 = vadd.f32 %v2415_v54, %v2397_v14  ;;  %v2473_v11 = vadd.f32 %v2472_v58, %v2454_v36 }
 0x302   :  { %v2656_v30 = vmax.f32 %v9622_v51, 0.0  ;;  %v2512_v14 = vpop.f32.mrf.mxu2 }
 0x306   :  { %v2529_v55 = vpop.f32.mrf.mxu3 }
 0x307   :  { %v2417_v4 = vpop.f32.mrf.mxu1  ;;  %v2474_v2 = vpop.f32.mrf.mxu0 }
 0x308   :  { %v9626_v26 = vadd.f32 %v2417_v4, %v2399_v37  ;;  %v2475_v41 = vadd.f32 %v2474_v2, %v2456_v60  ;;  %v1698_v37 = vperm.slane %v9619_v42, 2 }
 0x30a   :  { %v2660_v13 = vmax.f32 %v9626_v26, 0.0  ;;  %v2511_v4 = vadd.f32 %v2510_v40, %v1698_v37  ;;  %v2581_v52 = vpop.f32.mrf.mxu2  ;;  %v2508_v58 = vadd.f32 %v2507_v12, %v1698_v37  ;;  %v8545_v26 = vld [vmem:[#allocation8 + $0x874] sm:$0xf0] }
 0x30c   :  { %v2668_v28 = vpack.c.bf16 %v2660_v13, %v2656_v30  ;;  %v2530_v53 = vadd.f32 %v2529_v55, %v2511_v4  ;;  %v2527_v6 = vadd.f32 %v2526_v21, %v2508_v58 }
 0x30e   :  { %2678 = vmatpush.bf16.msra.mxu2 %v2668_v28  ;;  %v2531_v20 = vpop.f32.mrf.mxu3  ;;  %v2513_v28 = vadd.f32 %v2512_v14, %v1698_v37 }
 0x30f   :  { %v2486_v34 = vpop.f32.mrf.mxu1  ;;  %v2543_v47 = vpop.f32.mrf.mxu0 }
 0x310   :  { %v9654_v3 = vadd.f32 %v2486_v34, %v2468_v48  ;;  %v2532_v2 = vadd.f32 %v2531_v20, %v2513_v28 }
 0x312   :  { %2679 = vmatpush.bf16.msra.mxu2 %v2664_v19  ;;  %v2649_v16 = vmax.f32 %v9654_v3, 0.0  ;;  %v2506_v19 = vadd.f32 %v2505_v43, %v1698_v37  ;;  %v2583_v21 = vpop.f32.mrf.mxu2  ;;  %v7171_v3 = vld [vmem:[#allocation8 + $0x9e8] sm:$0xf] }
 0x315   :  { %6913 = vmatmul.msk.bf16.vlgmr.msra.gmra.mxu2 %vm366_vm10, %v9319_v32 }
 0x316   :  { %v2600_v34 = vpop.f32.mrf.mxu3 }
 0x317   :  { %v2488_v61 = vpop.f32.mrf.mxu1  ;;  %v2545_v38 = vpop.f32.mrf.mxu0 }
 0x318   :  { %v9650_v54 = vadd.f32 %v2488_v61, %v2470_v10  ;;  %v2546_v45 = vadd.f32 %v2545_v38, %v2527_v6  ;;  %v8560_v6 = vld [vmem:[#allocation8 + $0x8ec] sm:$0xf0] }
 0x31a   :  { %v2653_v24 = vmax.f32 %v9650_v54, 0.0  ;;  %v2586_v48 = vpop.f32.mrf.mxu2 }
 0x31c   :  { %v2665_v39 = vpack.c.bf16 %v2653_v24, %v2649_v16 }
 0x31e   :  { %v2602_v10 = vpop.f32.mrf.mxu3 }
 0x31f   :  { %v2491_v33 = vpop.f32.mrf.mxu1  ;;  %v2548_v18 = vpop.f32.mrf.mxu0 }
 0x320   :  { %v9647_v35 = vadd.f32 %v2491_v33, %v2473_v11  ;;  %v2549_v61 = vadd.f32 %v2548_v18, %v2530_v53  ;;  %v2525_v33 = vadd.f32 %v2524_v49, %v2506_v19  ;;  %v7035_v19 = vld [vmem:[#allocation8 + $0x8e0] sm:$0xf] }
 0x322   :  { %v2657_v62 = vmax.f32 %v9647_v35, 0.0  ;;  %v2544_v57 = vadd.f32 %v2543_v47, %v2525_v33 }
 0x325   :  { %6914 = vmatmul.msk.bf16.gmra.mxu2 %vm366_vm10, %v9339_v5 }
 0x327   :  { %v2493_v31 = vpop.f32.mrf.mxu1  ;;  %v2550_v44 = vpop.f32.mrf.mxu0 }
 0x328   :  { %v9652_v9 = vadd.f32 %v2493_v31, %v2475_v41  ;;  %v2551_v29 = vadd.f32 %v2550_v44, %v2532_v2  ;;  %v7036_v2 = vor.u32 %v8560_v6, %v7035_v19  ;;  %v6923_v19 = vld [vmem:[#allocation8 + $0x800] sm:$0xf]  ;;  %v8532_v6 = vld [vmem:[#allocation8 + $0x80c] sm:$0xf0] }
 0x32a   :  { %v2661_v15 = vmax.f32 %v9652_v9, 0.0  ;;  %3536 = vmatpush.bf16.msrb.mxu2 %v7036_v2  ;;  %v6924_v2 = vor.u32 %v8532_v6, %v6923_v19  ;;  %v6973_v6 = vld [vmem:[#allocation8 + $0x870] sm:$0xf0]  ;;  %v8543_v9 = vld [vmem:[#allocation8 + $0x86c] sm:$0xf] }
 0x32c   :  { %v2669_v7 = vpack.c.bf16 %v2661_v15, %v2657_v62 }
 0x32e   :  { %2697 = vmatpush.bf16.msra.mxu3 %v2669_v7  ;;  %v2605_v7 = vpop.f32.mrf.mxu3 }
 0x32f   :  { %v2562_v22 = vpop.f32.mrf.mxu1  ;;  %v2619_v25 = vpop.f32.mrf.mxu0 }
 0x330   :  { %v9679_v60 = vadd.f32 %v2562_v22, %v2544_v57  ;;  %v1699_v22 = vperm.slane %v9619_v42, 3  ;;  %v8556_v42 = vld [vmem:[#allocation8 + $0x8cc] sm:$0xf0] }
 0x332   :  { %2698 = vmatpush.bf16.msra.mxu3 %v2665_v39  ;;  %v2650_v47 = vmax.f32 %v9679_v60, 0.0  ;;  %v2588_v39 = vpop.f32.mrf.mxu2  ;;  %v2587_v14 = vadd.f32 %v2586_v48, %v1699_v22  ;;  %v2584_v20 = vadd.f32 %v2583_v21, %v1699_v22  ;;  %v2582_v4 = vadd.f32 %v2581_v52, %v1699_v22  ;;  %v8552_v48 = vld [vmem:[#allocation8 + $0x8ac] sm:$0xf0]  ;;  %v8654_v60 = vld [vmem:[#allocation8 + $0xbe4] sm:$0xf] }
 0x333   :  { %v2589_v44 = vadd.f32 %v2588_v39, %v1699_v22  ;;  %v8548_v39 = vld [vmem:[#allocation8 + $0x88c] sm:$0xf0] }
 0x334   :  { %v2606_v37 = vadd.f32 %v2605_v7, %v2587_v14  ;;  %v2603_v58 = vadd.f32 %v2602_v10, %v2584_v20  ;;  %v2601_v33 = vadd.f32 %v2600_v34, %v2582_v4  ;;  %v8544_v20 = vld [vmem:[#allocation8 + $0x86c] sm:$0xf0] }
 0x335   :  { %6915 = vmatmul.msk.bf16.vlgmr.msra.gmra.mxu3 %vm366_vm10, %v9319_v32 }
 0x336   :  { %v2620_v52 = vadd.f32 %v2619_v25, %v2601_v33  ;;  %v8558_v33 = vld [vmem:[#allocation8 + $0x8e4] sm:$0xf] }
 0x337   :  { %v2564_v46 = vpop.f32.mrf.mxu1  ;;  %v2621_v41 = vpop.f32.mrf.mxu0 }
 0x338   :  { %v9675_v59 = vadd.f32 %v2564_v46, %v2546_v45  ;;  %v2607_v46 = vpop.f32.mrf.mxu3  ;;  %v2622_v45 = vadd.f32 %v2621_v41, %v2603_v58  ;;  %v6939_v58 = vld [vmem:[#allocation8 + $0x820] sm:$0xf] }
 0x339   :  { %v2608_v28 = vadd.f32 %v2607_v46, %v2589_v44  ;;  %v6971_v46 = vld [vmem:[#allocation8 + $0x860] sm:$0xf] }
 0x33a   :  { %v2654_v17 = vmax.f32 %v9675_v59, 0.0  ;;  %v6972_v44 = vor.u32 %v8544_v20, %v6971_v46  ;;  %v8580_v20 = vld [vmem:[#allocation8 + $0x98c] sm:$0xf0] }
 0x33c   :  { %v2666_v31 = vpack.c.bf16 %v2654_v17, %v2650_v47 }
 0x33f   :  { %v2567_v63 = vpop.f32.mrf.mxu1  ;;  %v2624_v55 = vpop.f32.mrf.mxu0 }
 0x340   :  { %v9673_v50 = vadd.f32 %v2567_v63, %v2549_v61  ;;  %v2625_v53 = vadd.f32 %v2624_v55, %v2606_v37  ;;  %v7019_v61 = vld [vmem:[#allocation8 + $0x8c0] sm:$0xf] }
 0x341   :  { %v7020_v21 = vor.u32 %v8556_v42, %v7019_v61  ;;  %v6955_v37 = vld [vmem:[#allocation8 + $0x840] sm:$0xf]  ;;  %v8592_v42 = vld [vmem:[#allocation8 + $0x9ec] sm:$0xf0] }
 0x342   :  { %v2658_v43 = vmax.f32 %v9673_v50, 0.0  ;;  %v7163_v61 = vld [vmem:[#allocation8 + $0x9e0] sm:$0xf] }
 0x343   :  { %3537 = vmatpush.bf16.msrb.mxu2 %v7020_v21  ;;  %v8588_v21 = vld [vmem:[#allocation8 + $0x9cc] sm:$0xf0] }
 0x345   :  { %6916 = vmatmul.msk.bf16.gmra.mxu3 %vm366_vm10, %v9339_v5 }
 0x347   :  { %v2569_v36 = vpop.f32.mrf.mxu1  ;;  %v2626_v63 = vpop.f32.mrf.mxu0 }
 0x348   :  { %v9677_v12 = vadd.f32 %v2569_v36, %v2551_v29  ;;  %v2627_v29 = vadd.f32 %v2626_v63, %v2608_v28  ;;  %v8540_v63 = vld [vmem:[#allocation8 + $0x84c] sm:$0xf0] }
 0x349   :  { %v6956_v4 = vor.u32 %v8540_v63, %v6955_v37  ;;  %v8536_v28 = vld [vmem:[#allocation8 + $0x82c] sm:$0xf0]  ;;  %v6989_v63 = vld [vmem:[#allocation8 + $0x890] sm:$0xf0] }
 0x34a   :  { %v2662_v11 = vmax.f32 %v9677_v12, 0.0  ;;  %v8609_v12 = vld [vmem:[#allocation8 + $0xa74] sm:$0xf0] }
 0x34c   :  { %v2670_v49 = vpack.c.bf16 %v2662_v11, %v2658_v43 }
 0x34e   :  { %2716 = vmatpush.bf16.msrb.mxu0 %v2670_v49 }
 0x34f   :  { %v2638_v38 = vpop.f32.mrf.mxu1 }
 0x350   :  { %v9704_v7 = vadd.f32 %v2638_v38, %v2620_v52  ;;  %v8554_v52 = vld [vmem:[#allocation8 + $0x8c4] sm:$0xf] }
 0x352   :  { %2717 = vmatpush.bf16.msrb.mxu0 %v2666_v31  ;;  %v7003_v31 = vld [vmem:[#allocation8 + $0x8a0] sm:$0xf] }
 0x353   :  { %v7004_v41 = vor.u32 %v8552_v48, %v7003_v31  ;;  %v7021_v48 = vld [vmem:[#allocation8 + $0x8d0] sm:$0xf0] }
 0x355   :  { %6917 = vmatmul.msk.bf16.vlgmr.msrb.gmra.mxu0 %vm366_vm10, %v9319_v32  ;;  %3538 = vmatpush.bf16.msrb.mxu2 %v7004_v41  ;;  %v7131_v41 = vld [vmem:[#allocation8 + $0x9a0] sm:$0xf] }
 0x357   :  { %v2640_v40 = vpop.f32.mrf.mxu1 }
 0x358   :  { %v9700_v49 = vadd.f32 %v2640_v40, %v2622_v45  ;;  %v6987_v40 = vld [vmem:[#allocation8 + $0x880] sm:$0xf]  ;;  %v7037_v45 = vld [vmem:[#allocation8 + $0x8f0] sm:$0xf0] }
 0x359   :  { %v6988_v38 = vor.u32 %v8548_v39, %v6987_v40  ;;  %v7024_v40 = vor.u32 %v8554_v52, %v7021_v48  ;;  %v8550_v39 = vld [vmem:[#allocation8 + $0x8a4] sm:$0xf]  ;;  %v6941_v48 = vld [vmem:[#allocation8 + $0x830] sm:$0xf0] }
 0x35a   :  { %v2655_v22 = vmax.f32 %v9700_v49, 0.0 }
 0x35b   :  { %3539 = vmatpush.bf16.msrb.mxu2 %v6988_v38  ;;  %v7005_v38 = vld [vmem:[#allocation8 + $0x8b0] sm:$0xf0] }
 0x35c   :  { %v7008_v46 = vor.u32 %v8550_v39, %v7005_v38  ;;  %v8624_v39 = vld [vmem:[#allocation8 + $0xaec] sm:$0xf0] }
 0x35f   :  { %v2643_v18 = vpop.f32.mrf.mxu1  ;;  %3540 = vmatpush.bf16.msrb.mxu2 %v6972_v44  ;;  %v8546_v44 = vld [vmem:[#allocation8 + $0x884] sm:$0xf] }
 0x360   :  { %v9698_v36 = vadd.f32 %v2643_v18, %v2625_v53  ;;  %v2651_v18 = vmax.f32 %v9704_v7, 0.0  ;;  %v6940_v53 = vor.u32 %v8536_v28, %v6939_v58  ;;  %v7099_v58 = vld [vmem:[#allocation8 + $0x960] sm:$0xf]  ;;  %v8576_v28 = vld [vmem:[#allocation8 + $0x96c] sm:$0xf0] }
 0x361   :  { %v7100_v19 = vor.u32 %v8576_v28, %v7099_v58  ;;  %v7275_v28 = vld [vmem:[#allocation8 + $0xac0] sm:$0xf]  ;;  %v8563_v7 = vld [vmem:[#allocation8 + $0x90c] sm:$0xf] }
 0x362   :  { %v2659_v55 = vmax.f32 %v9698_v36, 0.0  ;;  %v2667_v14 = vpack.c.bf16 %v2655_v22, %v2651_v18  ;;  %v7347_v36 = vld [vmem:[#allocation8 + $0xb48] sm:$0xf] }
 0x363   :  { %3541 = vmatpush.bf16.msrb.mxu2 %v6956_v4  ;;  %v6992_v4 = vor.u32 %v8546_v44, %v6989_v63 }
 0x365   :  { %6918 = vmatmul.msk.bf16.gmra.mxu0 %vm366_vm10, %v9339_v5 }
 0x367   :  { %v2645_v57 = vpop.f32.mrf.mxu1  ;;  %3542 = vmatpush.bf16.msrb.mxu2 %v6940_v53  ;;  %v8542_v53 = vld [vmem:[#allocation8 + $0x864] sm:$0xf] }
 0x368   :  { %v9702_v10 = vadd.f32 %v2645_v57, %v2627_v29  ;;  %v7040_v29 = vor.u32 %v8558_v33, %v7037_v45  ;;  %v7147_v57 = vld [vmem:[#allocation8 + $0x9c0] sm:$0xf]  ;;  %v8572_v33 = vld [vmem:[#allocation8 + $0x94c] sm:$0xf0] }
 0x369   :  { %v7148_v31 = vor.u32 %v8588_v21, %v7147_v57  ;;  %v7067_v57 = vld [vmem:[#allocation8 + $0x920] sm:$0xf]  ;;  %v8568_v21 = vld [vmem:[#allocation8 + $0x92c] sm:$0xf0] }
 0x36a   :  { %v2663_v34 = vmax.f32 %v9702_v10, 0.0 }
 0x36b   :  { %3543 = vmatpush.bf16.msrb.mxu2 %v6924_v2  ;;  %v6976_v2 = vor.u32 %v8542_v53, %v6973_v6  ;;  %v8620_v53 = vld [vmem:[#allocation8 + $0xacc] sm:$0xf0] }
 0x36c   :  { %v2671_v25 = vpack.c.bf16 %v2663_v34, %v2659_v55  ;;  %v7276_v6 = vor.u32 %v8620_v53, %v7275_v28  ;;  %v7117_v28 = vld [vmem:[#allocation8 + $0x990] sm:$0xf0]  ;;  %v6995_v53 = vld [vmem:[#allocation8 + $0x888] sm:$0xf] }
 0x36e   :  { %2735 = vmatpush.bf16.msrb.mxu1 %v2671_v25  ;;  %v8584_v25 = vld [vmem:[#allocation8 + $0x9ac] sm:$0xf0] }
 0x36f   :  { %3612 = vmatpush.bf16.msra.mxu2 %v7040_v29  ;;  %v6957_v29 = vld [vmem:[#allocation8 + $0x850] sm:$0xf0] }
 0x372   :  { %2736 = vmatpush.bf16.msrb.mxu1 %v2667_v14  ;;  %v7132_v14 = vor.u32 %v8584_v25, %v7131_v41  ;;  %v7068_v41 = vor.u32 %v8568_v21, %v7067_v57  ;;  %v7149_v57 = vld [vmem:[#allocation8 + $0x9d0] sm:$0xf0]  ;;  %v7027_v21 = vld [vmem:[#allocation8 + $0x8c8] sm:$0xf] }
 0x373   :  { %3613 = vmatpush.bf16.msra.mxu2 %v7024_v40  ;;  %v7291_v40 = vld [vmem:[#allocation8 + $0xae0] sm:$0xf] }
 0x374   :  { %v7292_v38 = vor.u32 %v8624_v39, %v7291_v40  ;;  %v8582_v39 = vld [vmem:[#allocation8 + $0x9a4] sm:$0xf] }
 0x375   :  { %6919 = vmatmul.msk.bf16.vlgmr.msrb.gmra.mxu1 %vm366_vm10, %v9319_v32  ;;  %v7164_v32 = vor.u32 %v8592_v42, %v7163_v61  ;;  %v7083_v42 = vld [vmem:[#allocation8 + $0x940] sm:$0xf] }
 0x376   :  { %v7084_v45 = vor.u32 %v8572_v33, %v7083_v42  ;;  %3574 = vmatpush.bf16.msra.mxu0 %v7292_v38  ;;  %v7165_v42 = vld [vmem:[#allocation8 + $0x9f0] sm:$0xf0]  ;;  %v7043_v33 = vld [vmem:[#allocation8 + $0x8e8] sm:$0xf] }
 0x377   :  { %3555 = vmatpush.bf16.msrb.mxu3 %v7164_v32  ;;  %3614 = vmatpush.bf16.msra.mxu2 %v7008_v46  ;;  %v8538_v32 = vld [vmem:[#allocation8 + $0x844] sm:$0xf]  ;;  %v7051_v46 = vld [vmem:[#allocation8 + $0x900] sm:$0xf]  ;;  %v7133_v38 = vld [vmem:[#allocation8 + $0x9b0] sm:$0xf0] }
 0x378   :  { %v6960_v52 = vor.u32 %v8538_v32, %v6957_v29  ;;  %v8586_v29 = vld [vmem:[#allocation8 + $0x9c4] sm:$0xf] }
 0x37a   :  { %3575 = vmatpush.bf16.msra.mxu0 %v7276_v6 }
 0x37b   :  { %3556 = vmatpush.bf16.msrb.mxu3 %v7148_v31  ;;  %3615 = vmatpush.bf16.msra.mxu2 %v6992_v4  ;;  %v8534_v31 = vld [vmem:[#allocation8 + $0x824] sm:$0xf]  ;;  %v6925_v4 = vld [vmem:[#allocation8 + $0x810] sm:$0xf0] }
 0x37c   :  { %v6944_v25 = vor.u32 %v8534_v31, %v6941_v48  ;;  %v8557_v31 = vld [vmem:[#allocation8 + $0x8d4] sm:$0xf0]  ;;  %v7243_v48 = vld [vmem:[#allocation8 + $0xa80] sm:$0xf] }
 0x37f   :  { %3557 = vmatpush.bf16.msrb.mxu3 %v7132_v14  ;;  %3616 = vmatpush.bf16.msra.mxu2 %v6976_v2  ;;  %v8590_v2 = vld [vmem:[#allocation8 + $0x9e4] sm:$0xf] }
 0x380   :  { %v7168_v27 = vor.u32 %v8590_v2, %v7165_v42 }
 0x383   :  { %3617 = vmatpush.bf16.msra.mxu2 %v6960_v52  ;;  %v7152_v52 = vor.u32 %v8586_v29, %v7149_v57  ;;  %v7101_v29 = vld [vmem:[#allocation8 + $0x970] sm:$0xf0]  ;;  %v6979_v57 = vld [vmem:[#allocation8 + $0x868] sm:$0xf] }
 0x385   :  { %6920 = vmatmul.msk.bf16.gmra.mxu1 %vm366_vm10, %v9339_v5  ;;  %v7115_v5 = vld [vmem:[#allocation8 + $0x980] sm:$0xf] }
 0x386   :  { %v7116_v37 = vor.u32 %v8580_v20, %v7115_v5  ;;  %v8564_v5 = vld [vmem:[#allocation8 + $0x90c] sm:$0xf0]  ;;  %v8530_v20 = vld [vmem:[#allocation8 + $0x804] sm:$0xf] }
 0x387   :  { %3618 = vmatpush.bf16.msra.mxu2 %v6944_v25  ;;  %v7052_v63 = vor.u32 %v8564_v5, %v7051_v46  ;;  %v6928_v58 = vor.u32 %v8530_v20, %v6925_v4  ;;  %v7028_v25 = vor.u32 %v8557_v31, %v7027_v21  ;;  %v7136_v46 = vor.u32 %v8582_v39, %v7133_v38  ;;  %v8553_v5 = vld [vmem:[#allocation8 + $0x8b4] sm:$0xf0]  ;;  %v8570_v31 = vld [vmem:[#allocation8 + $0x944] sm:$0xf]  ;;  %v7179_v38 = vld [vmem:[#allocation8 + $0xa00] sm:$0xf] }
 0x388   :  { %3558 = vmatpush.bf16.msrb.mxu3 %v7116_v37 }
 0x38b   :  { %3619 = vmatpush.bf16.msra.mxu2 %v6928_v58  ;;  %v8578_v58 = vld [vmem:[#allocation8 + $0x984] sm:$0xf] }
 0x38c   :  { %3559 = vmatpush.bf16.msrb.mxu3 %v7100_v19  ;;  %v7120_v42 = vor.u32 %v8578_v58, %v7117_v28  ;;  %v7419_v58 = vld [vmem:[#allocation8 + $0xbe0] sm:$0xf]  ;;  %v8656_v28 = vld [vmem:[#allocation8 + $0xbec] sm:$0xf0] }
 0x390   :  { %3560 = vmatpush.bf16.msrb.mxu3 %v7084_v45 }
 0x394   :  { %3561 = vmatpush.bf16.msrb.mxu3 %v7068_v41  ;;  %v8612_v41 = vld [vmem:[#allocation8 + $0xa8c] sm:$0xf0] }
 0x395   :  { %v7244_v40 = vor.u32 %v8612_v41, %v7243_v48  ;;  %v7085_v48 = vld [vmem:[#allocation8 + $0x950] sm:$0xf0]  ;;  %v6963_v41 = vld [vmem:[#allocation8 + $0x848] sm:$0xf] }
 0x398   :  { %v2681_v61 = vpop.f32.mrf.mxu2  ;;  %3562 = vmatpush.bf16.msrb.mxu3 %v7052_v63 }
 0x399   :  { %v2682_v44 = vadd.f32 %v2681_v61, %v2648_v8  ;;  %v7259_v8 = vld [vmem:[#allocation8 + $0xaa0] sm:$0xf]  ;;  %v8616_v61 = vld [vmem:[#allocation8 + $0xaac] sm:$0xf0] }
 0x39a   :  { %v7260_v32 = vor.u32 %v8616_v61, %v7259_v8 }
 0x39c   :  { %3631 = vmatpush.bf16.msra.mxu3 %v7168_v27  ;;  %3576 = vmatpush.bf16.msra.mxu0 %v7260_v32  ;;  %v8574_v32 = vld [vmem:[#allocation8 + $0x964] sm:$0xf] }
 0x39d   :  { %v7104_v51 = vor.u32 %v8574_v32, %v7101_v29 }
 0x3a0   :  { %v2683_v14 = vpop.f32.mrf.mxu2  ;;  %3632 = vmatpush.bf16.msra.mxu3 %v7152_v52  ;;  %3577 = vmatpush.bf16.msra.mxu0 %v7244_v40  ;;  %v8541_v40 = vld [vmem:[#allocation8 + $0x854] sm:$0xf0] }
 0x3a1   :  { %v2684_v37 = vadd.f32 %v2683_v14, %v2652_v56  ;;  %v7044_v56 = vor.u32 %v8561_v0, %v7043_v33  ;;  %v7011_v14 = vld [vmem:[#allocation8 + $0x8a8] sm:$0xf]  ;;  %v8549_v33 = vld [vmem:[#allocation8 + $0x894] sm:$0xf0]  ;;  %v7211_v0 = vld [vmem:[#allocation8 + $0xa40] sm:$0xf]  ;;  %v6964_v39 = vor.u32 %v8541_v40, %v6963_v41 }
 0x3a2   :  { %v7012_v20 = vor.u32 %v8553_v5, %v7011_v14  ;;  %v6996_v27 = vor.u32 %v8549_v33, %v6995_v53  ;;  %v8596_v14 = vld [vmem:[#allocation8 + $0xa0c] sm:$0xf0]  ;;  %v8566_v5 = vld [vmem:[#allocation8 + $0x924] sm:$0xf]  ;;  %v7387_v41 = vld [vmem:[#allocation8 + $0xba0] sm:$0xf] }
 0x3a3   :  { %v9726_v19 = vpack.c.bf16 %v2684_v37, %v2682_v44  ;;  %v7227_v44 = vld [vmem:[#allocation8 + $0xa60] sm:$0xf]  ;;  %v8608_v37 = vld [vmem:[#allocation8 + $0xa6c] sm:$0xf0]  ;;  %v8622_v53 = vld [vmem:[#allocation8 + $0xae4] sm:$0xf] }
 0x3a4   :  { %3633 = vmatpush.bf16.msra.mxu3 %v7136_v46  ;;  %v7228_v63 = vor.u32 %v8608_v37, %v7227_v44  ;;  %v7180_v46 = vor.u32 %v8596_v14, %v7179_v38  ;;  %v6947_v44 = vld [vmem:[#allocation8 + $0x828] sm:$0xf]  ;;  %v8614_v38 = vld [vmem:[#allocation8 + $0xaa4] sm:$0xf]  ;;  %v7261_v14 = vld [vmem:[#allocation8 + $0xab0] sm:$0xf0] }
 0x3a5   :  { %3544 = vmatmul.bf16.vlgmr.msrb.gmra.mxu2 %v9726_v19 }
 0x3a6   :  { %3688 = vmatpush.bf16.msrb.mxu2 %v7044_v56  ;;  %3578 = vmatpush.bf16.msra.mxu0 %v7228_v63  ;;  %v8604_v56 = vld [vmem:[#allocation8 + $0xa4c] sm:$0xf0]  ;;  %v8537_v63 = vld [vmem:[#allocation8 + $0x834] sm:$0xf0] }
 0x3a7   :  { %v7212_v61 = vor.u32 %v8604_v56, %v7211_v0  ;;  %v7053_v0 = vld [vmem:[#allocation8 + $0x910] sm:$0xf0]  ;;  %v6931_v56 = vld [vmem:[#allocation8 + $0x808] sm:$0xf] }
 0x3a8   :  { %v2686_v45 = vpop.f32.mrf.mxu2  ;;  %3634 = vmatpush.bf16.msra.mxu3 %v7120_v42 }
 0x3a9   :  { %v2687_v6 = vadd.f32 %v2686_v45, %v2656_v30  ;;  %v7195_v30 = vld [vmem:[#allocation8 + $0xa20] sm:$0xf]  ;;  %v6980_v45 = vor.u32 %v8545_v26, %v6979_v57  ;;  %v8533_v57 = vld [vmem:[#allocation8 + $0x814] sm:$0xf0] }
 0x3aa   :  { %3689 = vmatpush.bf16.msrb.mxu2 %v7028_v25  ;;  %3579 = vmatpush.bf16.msra.mxu0 %v7212_v61  ;;  %v7088_v25 = vor.u32 %v8570_v31, %v7085_v48  ;;  %v7403_v26 = vld [vmem:[#allocation8 + $0xbc0] sm:$0xf]  ;;  %v7277_v31 = vld [vmem:[#allocation8 + $0xad0] sm:$0xf0] }
 0x3ac   :  { %3635 = vmatpush.bf16.msra.mxu3 %v7104_v51  ;;  %v6932_v51 = vor.u32 %v8533_v57, %v6931_v56  ;;  %v8551_v56 = vld [vmem:[#allocation8 + $0x8ac] sm:$0xf]  ;;  %v7355_v57 = vld [vmem:[#allocation8 + $0xb60] sm:$0xf] }
 0x3ae   :  { %3690 = vmatpush.bf16.msrb.mxu2 %v7012_v20  ;;  %v7069_v20 = vld [vmem:[#allocation8 + $0x930] sm:$0xf0] }
 0x3af   :  { %v7072_v37 = vor.u32 %v8566_v5, %v7069_v20  ;;  %v7155_v20 = vld [vmem:[#allocation8 + $0x9c8] sm:$0xf] }
 0x3b0   :  { %v2688_v4 = vpop.f32.mrf.mxu2  ;;  %3636 = vmatpush.bf16.msra.mxu3 %v7088_v25  ;;  %v8648_v25 = vld [vmem:[#allocation8 + $0xbac] sm:$0xf0] }
 0x3b1   :  { %v2689_v2 = vadd.f32 %v2688_v4, %v2660_v13  ;;  %v8600_v13 = vld [vmem:[#allocation8 + $0xa2c] sm:$0xf0]  ;;  %v6948_v4 = vor.u32 %v8537_v63, %v6947_v44  ;;  %v8589_v44 = vld [vmem:[#allocation8 + $0x9d4] sm:$0xf0] }
 0x3b2   :  { %3691 = vmatpush.bf16.msrb.mxu2 %v6996_v27  ;;  %v7196_v21 = vor.u32 %v8600_v13, %v7195_v30  ;;  %v8562_v27 = vld [vmem:[#allocation8 + $0x904] sm:$0xf]  ;;  %v8652_v30 = vld [vmem:[#allocation8 + $0xbcc] sm:$0xf0]  ;;  %v7156_v63 = vor.u32 %v8589_v44, %v7155_v20  ;;  %v7213_v44 = vld [vmem:[#allocation8 + $0xa50] sm:$0xf0] }
 0x3b3   :  { %v9733_v8 = vpack.c.bf16 %v2689_v2, %v2687_v6  ;;  %v7420_v6 = vor.u32 %v8656_v28, %v7419_v58  ;;  %v7293_v2 = vld [vmem:[#allocation8 + $0xaf0] sm:$0xf0]  ;;  %v7056_v29 = vor.u32 %v8562_v27, %v7053_v0  ;;  %v8618_v13 = vld [vmem:[#allocation8 + $0xac4] sm:$0xf]  ;;  %v7371_v28 = vld [vmem:[#allocation8 + $0xb80] sm:$0xf] }
 0x3b4   :  { %3580 = vmatpush.bf16.msra.mxu0 %v7196_v21  ;;  %3637 = vmatpush.bf16.msra.mxu3 %v7072_v37  ;;  %v7296_v33 = vor.u32 %v8622_v53, %v7293_v2  ;;  %v7404_v21 = vor.u32 %v8652_v30, %v7403_v26  ;;  %v7280_v48 = vor.u32 %v8618_v13, %v7277_v31  ;;  %v8555_v37 = vld [vmem:[#allocation8 + $0x8cc] sm:$0xf]  ;;  %v8644_v53 = vld [vmem:[#allocation8 + $0xb8c] sm:$0xf0]  ;;  %v7139_v27 = vld [vmem:[#allocation8 + $0x9a8] sm:$0xf] }
 0x3b5   :  { %3549 = vmatmul.bf16.gmra.mxu2 %v9733_v8  ;;  %3593 = vmatpush.bf16.msra.mxu1 %v7420_v6  ;;  %v8610_v6 = vld [vmem:[#allocation8 + $0xa84] sm:$0xf]  ;;  %v7372_v2 = vor.u32 %v8644_v53, %v7371_v28  ;;  %v8585_v0 = vld [vmem:[#allocation8 + $0x9b4] sm:$0xf0]  ;;  %v7229_v13 = vld [vmem:[#allocation8 + $0xa70] sm:$0xf0] }
 0x3b6   :  { %3692 = vmatpush.bf16.msrb.mxu2 %v6980_v45  ;;  %v8606_v26 = vld [vmem:[#allocation8 + $0xa64] sm:$0xf] }
 0x3b7   :  { %v7232_v31 = vor.u32 %v8606_v26, %v7229_v13  ;;  %v8598_v53 = vld [vmem:[#allocation8 + $0xa24] sm:$0xf] }
 0x3b8   :  { %v2700_v52 = vpop.f32.mrf.mxu3  ;;  %3581 = vmatpush.bf16.msra.mxu0 %v7180_v46  ;;  %3638 = vmatpush.bf16.msra.mxu3 %v7056_v29  ;;  %v7264_v46 = vor.u32 %v8614_v38, %v7261_v14  ;;  %v8636_v38 = vld [vmem:[#allocation8 + $0xb4c] sm:$0xf0]  ;;  %v8602_v14 = vld [vmem:[#allocation8 + $0xa44] sm:$0xf] }
 0x3b9   :  { %v2701_v61 = vadd.f32 %v2700_v52, %v2649_v16  ;;  %v8593_v16 = vld [vmem:[#allocation8 + $0x9f4] sm:$0xf0]  ;;  %v8559_v52 = vld [vmem:[#allocation8 + $0x8ec] sm:$0xf]  ;;  %3594 = vmatpush.bf16.msra.mxu1 %v7404_v21  ;;  %v7216_v35 = vor.u32 %v8602_v14, %v7213_v44  ;;  %v6933_v44 = vld [vmem:[#allocation8 + $0x818] sm:$0xf0] }
 0x3ba   :  { %3693 = vmatpush.bf16.msrb.mxu2 %v6964_v39  ;;  %v7172_v54 = vor.u32 %v8593_v16, %v7171_v3  ;;  %v7388_v39 = vor.u32 %v8648_v25, %v7387_v41  ;;  %v8581_v3 = vld [vmem:[#allocation8 + $0x994] sm:$0xf0]  ;;  %v8547_v16 = vld [vmem:[#allocation8 + $0x88c] sm:$0xf]  ;;  %v6997_v41 = vld [vmem:[#allocation8 + $0x898] sm:$0xf0] }
 0x3bb   :  { %v8531_v14 = vld [vmem:[#allocation8 + $0x80c] sm:$0xf] }
 0x3bc   :  { %3650 = vmatpush.bf16.msrb.mxu0 %v7296_v33 }
 0x3bd   :  { %3595 = vmatpush.bf16.msra.mxu1 %v7388_v39  ;;  %v7339_v39 = vld [vmem:[#allocation8 + $0xb40] sm:$0xf] }
 0x3be   :  { %3694 = vmatpush.bf16.msrb.mxu2 %v6948_v4  ;;  %v7029_v4 = vld [vmem:[#allocation8 + $0x8d8] sm:$0xf0]  ;;  %v7340_v20 = vor.u32 %v8636_v38, %v7339_v39  ;;  %v7059_v39 = vld [vmem:[#allocation8 + $0x908] sm:$0xf]  ;;  %v8565_v38 = vld [vmem:[#allocation8 + $0x914] sm:$0xf0] }
 0x3bf   :  { %v7032_v58 = vor.u32 %v8555_v37, %v7029_v4  ;;  %v6981_v37 = vld [vmem:[#allocation8 + $0x878] sm:$0xf0]  ;;  %v8632_v4 = vld [vmem:[#allocation8 + $0xb2c] sm:$0xf0] }
 0x3c0   :  { %v2702_v42 = vpop.f32.mrf.mxu3  ;;  %3651 = vmatpush.bf16.msrb.mxu0 %v7280_v48  ;;  %v7123_v48 = vld [vmem:[#allocation8 + $0x988] sm:$0xf] }
 0x3c1   :  { %v2703_v32 = vadd.f32 %v2702_v42, %v2653_v24  ;;  %v7045_v24 = vld [vmem:[#allocation8 + $0x8f8] sm:$0xf0]  ;;  %v7245_v42 = vld [vmem:[#allocation8 + $0xa90] sm:$0xf0]  ;;  %3596 = vmatpush.bf16.msra.mxu1 %v7372_v2 }
 0x3c2   :  { %3695 = vmatpush.bf16.msrb.mxu2 %v6932_v51  ;;  %v7048_v40 = vor.u32 %v8559_v52, %v7045_v24  ;;  %v7248_v33 = vor.u32 %v8610_v6, %v7245_v42  ;;  %v8640_v51 = vld [vmem:[#allocation8 + $0xb6c] sm:$0xf0]  ;;  %v7124_v24 = vor.u32 %v8581_v3, %v7123_v48  ;;  %v7197_v6 = vld [vmem:[#allocation8 + $0xa30] sm:$0xf0]  ;;  %v7091_v42 = vld [vmem:[#allocation8 + $0x948] sm:$0xf] }
 0x3c3   :  { %v9740_v45 = vpack.c.bf16 %v2703_v32, %v2701_v61  ;;  %v7140_v61 = vor.u32 %v8585_v0, %v7139_v27  ;;  %v7013_v32 = vld [vmem:[#allocation8 + $0x8b8] sm:$0xf0]  ;;  %v7356_v30 = vor.u32 %v8640_v51, %v7355_v57  ;;  %v7200_v2 = vor.u32 %v8598_v53, %v7197_v6  ;;  %v8539_v27 = vld [vmem:[#allocation8 + $0x84c] sm:$0xf]  ;;  %v8628_v57 = vld [vmem:[#allocation8 + $0xb0c] sm:$0xf0] }
 0x3c4   :  { %3652 = vmatpush.bf16.msrb.mxu0 %v7264_v46  ;;  %v7016_v29 = vor.u32 %v8551_v56, %v7013_v32  ;;  %v6965_v56 = vld [vmem:[#allocation8 + $0x858] sm:$0xf0]  ;;  %v8594_v51 = vld [vmem:[#allocation8 + $0xa04] sm:$0xf]  ;;  %v7075_v48 = vld [vmem:[#allocation8 + $0x928] sm:$0xf] }
 0x3c5   :  { %3563 = vmatmul.bf16.vlgmr.msrb.gmra.mxu3 %v9740_v45  ;;  %3620 = vmatmul.bf16.vlgmr.msra.gmra.mxu2 %v9726_v19  ;;  %v6968_v32 = vor.u32 %v8539_v27, %v6965_v56  ;;  %v8569_v3 = vld [vmem:[#allocation8 + $0x934] sm:$0xf0]  ;;  %v8646_v6 = vld [vmem:[#allocation8 + $0xba4] sm:$0xf]  ;;  %v8587_v56 = vld [vmem:[#allocation8 + $0x9cc] sm:$0xf] }
 0x3c6   :  { %3707 = vmatpush.bf16.msrb.mxu3 %v7172_v54  ;;  %3764 = vmatpush.bf16.msra.mxu2 %v7048_v40  ;;  %v7000_v40 = vor.u32 %v8547_v16, %v6997_v41  ;;  %v8535_v16 = vld [vmem:[#allocation8 + $0x82c] sm:$0xf]  ;;  %v8617_v27 = vld [vmem:[#allocation8 + $0xab4] sm:$0xf0] }
 0x3c7   :  { %3597 = vmatpush.bf16.msra.mxu1 %v7356_v30 }
 0x3c8   :  { %v2705_v5 = vpop.f32.mrf.mxu3  ;;  %3653 = vmatpush.bf16.msrb.mxu0 %v7248_v33  ;;  %v8573_v33 = vld [vmem:[#allocation8 + $0x954] sm:$0xf0] }
 0x3c9   :  { %v2706_v52 = vadd.f32 %v2705_v5, %v2657_v62  ;;  %v7107_v62 = vld [vmem:[#allocation8 + $0x968] sm:$0xf]  ;;  %v8577_v5 = vld [vmem:[#allocation8 + $0x974] sm:$0xf0]  ;;  %v7092_v0 = vor.u32 %v8573_v33, %v7091_v42 }
 0x3ca   :  { %3708 = vmatpush.bf16.msrb.mxu3 %v7156_v63  ;;  %3765 = vmatpush.bf16.msra.mxu2 %v7032_v58  ;;  %v7323_v63 = vld [vmem:[#allocation8 + $0xb20] sm:$0xf]  ;;  %v6984_v58 = vor.u32 %v8543_v9, %v6981_v37  ;;  %v7405_v9 = vld [vmem:[#allocation8 + $0xbd0] sm:$0xf0]  ;;  %v7267_v42 = vld [vmem:[#allocation8 + $0xaa8] sm:$0xf] }
 0x3cb   :  { %3598 = vmatpush.bf16.msra.mxu1 %v7340_v20  ;;  %v7324_v28 = vor.u32 %v8632_v4, %v7323_v63  ;;  %v7060_v20 = vor.u32 %v8565_v38, %v7059_v39  ;;  %v8621_v63 = vld [vmem:[#allocation8 + $0xad4] sm:$0xf0]  ;;  %v7219_v39 = vld [vmem:[#allocation8 + $0xa48] sm:$0xf] }
 0x3cc   :  { %3654 = vmatpush.bf16.msrb.mxu0 %v7232_v31  ;;  %v8605_v38 = vld [vmem:[#allocation8 + $0xa54] sm:$0xf0] }
 0x3ce   :  { %3709 = vmatpush.bf16.msrb.mxu3 %v7140_v61  ;;  %3766 = vmatpush.bf16.msra.mxu2 %v7016_v29  ;;  %v7307_v29 = vld [vmem:[#allocation8 + $0xb00] sm:$0xf] }
 0x3cf   :  { %3599 = vmatpush.bf16.msra.mxu1 %v7324_v28  ;;  %v7308_v13 = vor.u32 %v8628_v57, %v7307_v29  ;;  %v7173_v28 = vld [vmem:[#allocation8 + $0x9f8] sm:$0xf0]  ;;  %v8642_v57 = vld [vmem:[#allocation8 + $0xb84] sm:$0xf] }
 0x3d0   :  { %v2707_v21 = vpop.f32.mrf.mxu3  ;;  %3655 = vmatpush.bf16.msrb.mxu0 %v7216_v35 }
 0x3d1   :  { %v2708_v54 = vadd.f32 %v2707_v21, %v2661_v15  ;;  %v7108_v15 = vor.u32 %v8577_v5, %v7107_v62  ;;  %v7181_v21 = vld [vmem:[#allocation8 + $0xa10] sm:$0xf0]  ;;  %v6936_v62 = vor.u32 %v8531_v14, %v6933_v44  ;;  %v8650_v5 = vld [vmem:[#allocation8 + $0xbc4] sm:$0xf]  ;;  %v7220_v44 = vor.u32 %v8605_v38, %v7219_v39  ;;  %v7379_v39 = vld [vmem:[#allocation8 + $0xb88] sm:$0xf] }
 0x3d2   :  { %v2719_v25 = vpop.f32.mrf.mxu0  ;;  %3710 = vmatpush.bf16.msrb.mxu3 %v7124_v24  ;;  %3767 = vmatpush.bf16.msra.mxu2 %v7000_v40  ;;  %v7184_v31 = vor.u32 %v8594_v51, %v7181_v21  ;;  %v6949_v24 = vld [vmem:[#allocation8 + $0x838] sm:$0xf0]  ;;  %v7408_v37 = vor.u32 %v8650_v5, %v7405_v9  ;;  %v7373_v51 = vld [vmem:[#allocation8 + $0xb90] sm:$0xf0]  ;;  %v8630_v9 = vld [vmem:[#allocation8 + $0xb24] sm:$0xf] }
 0x3d3   :  { %v9748_v46 = vpack.c.bf16 %v2708_v54, %v2706_v52  ;;  %v2720_v26 = vadd.f32 %v2719_v25, %v2650_v47  ;;  %v7076_v54 = vor.u32 %v8569_v3, %v7075_v48  ;;  %3600 = vmatpush.bf16.msra.mxu1 %v7308_v13  ;;  %v6952_v41 = vor.u32 %v8535_v16, %v6949_v24  ;;  %v7421_v47 = vld [vmem:[#allocation8 + $0xbf0] sm:$0xf0]  ;;  %v7299_v25 = vld [vmem:[#allocation8 + $0xae8] sm:$0xf]  ;;  %v8583_v3 = vld [vmem:[#allocation8 + $0x9ac] sm:$0xf] }
 0x3d4   :  { %3656 = vmatpush.bf16.msrb.mxu0 %v7200_v2  ;;  %v7424_v59 = vor.u32 %v8654_v60, %v7421_v47  ;;  %v7389_v2 = vld [vmem:[#allocation8 + $0xbb0] sm:$0xf0]  ;;  %v7376_v21 = vor.u32 %v8642_v57, %v7373_v51  ;;  %v7141_v16 = vld [vmem:[#allocation8 + $0x9b8] sm:$0xf0]  ;;  %v7235_v47 = vld [vmem:[#allocation8 + $0xa68] sm:$0xf] }
 0x3d5   :  { %3568 = vmatmul.bf16.gmra.mxu3 %v9748_v46  ;;  %3625 = vmatmul.bf16.gmra.mxu2 %v9733_v8  ;;  %v7392_v33 = vor.u32 %v8646_v6, %v7389_v2  ;;  %v7144_v24 = vor.u32 %v8583_v3, %v7141_v16  ;;  %v7357_v60 = vld [vmem:[#allocation8 + $0xb70] sm:$0xf0]  ;;  %v8626_v2 = vld [vmem:[#allocation8 + $0xb04] sm:$0xf]  ;;  %v7301_v3 = vld [vmem:[#allocation8 + $0xaf8] sm:$0xf0] }
 0x3d6   :  { %3711 = vmatpush.bf16.msrb.mxu3 %v7108_v15  ;;  %3768 = vmatpush.bf16.msra.mxu2 %v6984_v58  ;;  %v7283_v15 = vld [vmem:[#allocation8 + $0xac8] sm:$0xf]  ;;  %v8591_v58 = vld [vmem:[#allocation8 + $0x9ec] sm:$0xf]  ;;  %v8645_v38 = vld [vmem:[#allocation8 + $0xb94] sm:$0xf0] }
 0x3d7   :  { %3669 = vmatpush.bf16.msrb.mxu1 %v7424_v59  ;;  %v7284_v4 = vor.u32 %v8621_v63, %v7283_v15  ;;  %v7176_v53 = vor.u32 %v8591_v58, %v7173_v28  ;;  %v7325_v15 = vld [vmem:[#allocation8 + $0xb30] sm:$0xf0]  ;;  %v8571_v58 = vld [vmem:[#allocation8 + $0x94c] sm:$0xf]  ;;  %v7093_v28 = vld [vmem:[#allocation8 + $0x958] sm:$0xf0] }
 0x3d8   :  { %3657 = vmatpush.bf16.msrb.mxu0 %v7184_v31  ;;  %v8613_v31 = vld [vmem:[#allocation8 + $0xa94] sm:$0xf0]  ;;  %v7328_v63 = vor.u32 %v8630_v9, %v7325_v15  ;;  %v7096_v6 = vor.u32 %v8571_v58, %v7093_v28  ;;  %v7411_v16 = vld [vmem:[#allocation8 + $0xbc8] sm:$0xf]  ;;  %v7237_v58 = vld [vmem:[#allocation8 + $0xa78] sm:$0xf0] }
 0x3d9   :  { %v7363_v15 = vld [vmem:[#allocation8 + $0xb68] sm:$0xf] }
 0x3da   :  { %v2721_v61 = vpop.f32.mrf.mxu0  ;;  %3712 = vmatpush.bf16.msrb.mxu3 %v7092_v0  ;;  %3769 = vmatpush.bf16.msra.mxu2 %v6968_v32  ;;  %v7268_v0 = vor.u32 %v8617_v27, %v7267_v42  ;;  %v7309_v42 = vld [vmem:[#allocation8 + $0xb10] sm:$0xf0]  ;;  %v8597_v27 = vld [vmem:[#allocation8 + $0xa14] sm:$0xf0] }
 0x3db   :  { %v2722_v30 = vadd.f32 %v2721_v61, %v2654_v17  ;;  %v8625_v17 = vld [vmem:[#allocation8 + $0xaf4] sm:$0xf0]  ;;  %3670 = vmatpush.bf16.msrb.mxu1 %v7408_v37  ;;  %v7157_v61 = vld [vmem:[#allocation8 + $0x9d8] sm:$0xf0]  ;;  %v7203_v37 = vld [vmem:[#allocation8 + $0xa28] sm:$0xf] }
 0x3dc   :  { %v7300_v40 = vor.u32 %v8625_v17, %v7299_v25  ;;  %v7160_v32 = vor.u32 %v8587_v56, %v7157_v61  ;;  %v7236_v25 = vor.u32 %v8609_v12, %v7235_v47  ;;  %v8634_v17 = vld [vmem:[#allocation8 + $0xb44] sm:$0xf]  ;;  %v7077_v56 = vld [vmem:[#allocation8 + $0x938] sm:$0xf0] }
 0x3dd   :  { %v9756_v52 = vpack.c.bf16 %v2722_v30, %v2720_v26  ;;  %v7251_v26 = vld [vmem:[#allocation8 + $0xa88] sm:$0xf] }
 0x3de   :  { %3713 = vmatpush.bf16.msrb.mxu3 %v7076_v54  ;;  %3770 = vmatpush.bf16.msra.mxu2 %v6952_v41  ;;  %v7252_v48 = vor.u32 %v8613_v31, %v7251_v26  ;;  %v8638_v41 = vld [vmem:[#allocation8 + $0xb64] sm:$0xf]  ;;  %v8623_v31 = vld [vmem:[#allocation8 + $0xaec] sm:$0xf] }
 0x3df   :  { %3582 = vmatmul.bf16.vlgmr.msra.gmra.mxu0 %v9756_v52  ;;  %3671 = vmatpush.bf16.msrb.mxu1 %v7392_v33  ;;  %v7360_v50 = vor.u32 %v8638_v41, %v7357_v60  ;;  %v7187_v33 = vld [vmem:[#allocation8 + $0xa08] sm:$0xf]  ;;  %v7304_v49 = vor.u32 %v8623_v31, %v7301_v3  ;;  %v8619_v41 = vld [vmem:[#allocation8 + $0xacc] sm:$0xf]  ;;  %v7285_v60 = vld [vmem:[#allocation8 + $0xad8] sm:$0xf0] }
 0x3e0   :  { %3726 = vmatpush.bf16.msra.mxu0 %v7300_v40  ;;  %v7341_v40 = vld [vmem:[#allocation8 + $0xb50] sm:$0xf0]  ;;  %v7288_v12 = vor.u32 %v8619_v41, %v7285_v60  ;;  %v8651_v31 = vld [vmem:[#allocation8 + $0xbcc] sm:$0xf]  ;;  %v7365_v60 = vld [vmem:[#allocation8 + $0xb78] sm:$0xf0] }
 0x3e1   :  { %v8639_v41 = vld [vmem:[#allocation8 + $0xb6c] sm:$0xf] }
 0x3e2   :  { %v2724_v35 = vpop.f32.mrf.mxu0  ;;  %3714 = vmatpush.bf16.msrb.mxu3 %v7060_v20  ;;  %3771 = vmatpush.bf16.msra.mxu2 %v6936_v62  ;;  %v7344_v20 = vor.u32 %v8634_v17, %v7341_v40  ;;  %v7109_v62 = vld [vmem:[#allocation8 + $0x978] sm:$0xf0] }
 0x3e3   :  { %v2725_v30 = vadd.f32 %v2724_v35, %v2658_v43  ;;  %3672 = vmatpush.bf16.msrb.mxu1 %v7376_v21  ;;  %v8579_v43 = vld [vmem:[#allocation8 + $0x98c] sm:$0xf]  ;;  %v8657_v21 = vld [vmem:[#allocation8 + $0xbf4] sm:$0xf0]  ;;  %v7269_v17 = vld [vmem:[#allocation8 + $0xab8] sm:$0xf0] }
 0x3e4   :  { %3727 = vmatpush.bf16.msra.mxu0 %v7284_v4  ;;  %v8575_v35 = vld [vmem:[#allocation8 + $0x96c] sm:$0xf]  ;;  %v8601_v4 = vld [vmem:[#allocation8 + $0xa34] sm:$0xf0] }
 0x3e5   :  { %3639 = vmatmul.bf16.vlgmr.msra.gmra.mxu3 %v9740_v45  ;;  %3696 = vmatmul.bf16.vlgmr.msrb.gmra.mxu2 %v9726_v19  ;;  %v7112_v5 = vor.u32 %v8575_v35, %v7109_v62  ;;  %v7253_v35 = vld [vmem:[#allocation8 + $0xa98] sm:$0xf0] }
 0x3e6   :  { %3783 = vmatpush.bf16.msra.mxu3 %v7176_v53  ;;  %v7204_v53 = vor.u32 %v8601_v4, %v7203_v37  ;;  %v8641_v37 = vld [vmem:[#allocation8 + $0xb74] sm:$0xf0] }
 0x3e7   :  { %3673 = vmatpush.bf16.msrb.mxu1 %v7360_v50  ;;  %v7364_v4 = vor.u32 %v8641_v37, %v7363_v15  ;;  %v7499_v15 = vld [vmem:[#allocation8 + $0xc80] sm:$0xf] }
 0x3e8   :  { %3728 = vmatpush.bf16.msra.mxu0 %v7268_v0  ;;  %v8567_v0 = vld [vmem:[#allocation8 + $0x92c] sm:$0xf] }
 0x3e9   :  { %v7080_v26 = vor.u32 %v8567_v0, %v7077_v56  ;;  %v7205_v0 = vld [vmem:[#allocation8 + $0xa38] sm:$0xf0] }
 0x3ea   :  { %v2726_v29 = vpop.f32.mrf.mxu0  ;;  %3784 = vmatpush.bf16.msra.mxu3 %v7160_v32  ;;  %v7312_v32 = vor.u32 %v8626_v2, %v7309_v42  ;;  %v7331_v2 = vld [vmem:[#allocation8 + $0xb28] sm:$0xf]  ;;  %v8633_v42 = vld [vmem:[#allocation8 + $0xb34] sm:$0xf0] }
 0x3eb   :  { %v2727_v13 = vadd.f32 %v2726_v29, %v2662_v11  ;;  %v7125_v11 = vld [vmem:[#allocation8 + $0x998] sm:$0xf0]  ;;  %3674 = vmatpush.bf16.msrb.mxu1 %v7344_v20  ;;  %v7188_v29 = vor.u32 %v8597_v27, %v7187_v33  ;;  %v8599_v33 = vld [vmem:[#allocation8 + $0xa2c] sm:$0xf]  ;;  %v7332_v27 = vor.u32 %v8633_v42, %v7331_v2  ;;  %v8664_v2 = vld [vmem:[#allocation8 + $0xc2c] sm:$0xf0] }
 0x3ec   :  { %3729 = vmatpush.bf16.msra.mxu0 %v7252_v48  ;;  %v7128_v59 = vor.u32 %v8579_v43, %v7125_v11  ;;  %v7395_v43 = vld [vmem:[#allocation8 + $0xba8] sm:$0xf]  ;;  %v8649_v11 = vld [vmem:[#allocation8 + $0xbb4] sm:$0xf0]  ;;  %v7208_v56 = vor.u32 %v8599_v33, %v7205_v0  ;;  %v8660_v0 = vld [vmem:[#allocation8 + $0xc0c] sm:$0xf0] }
 0x3ed   :  { %v9765_v54 = vpack.c.bf16 %v2727_v13, %v2725_v30  ;;  %v7427_v13 = vld [vmem:[#allocation8 + $0xbe8] sm:$0xf] }
 0x3ee   :  { %3785 = vmatpush.bf16.msra.mxu3 %v7144_v24  ;;  %v7428_v48 = vor.u32 %v8657_v21, %v7427_v13  ;;  %v8653_v24 = vld [vmem:[#allocation8 + $0xbd4] sm:$0xf0]  ;;  %v8655_v13 = vld [vmem:[#allocation8 + $0xbec] sm:$0xf] }
 0x3ef   :  { %3587 = vmatmul.bf16.gmra.mxu0 %v9765_v54  ;;  %3675 = vmatpush.bf16.msrb.mxu1 %v7328_v63  ;;  %v7412_v50 = vor.u32 %v8653_v24, %v7411_v16  ;;  %v8607_v63 = vld [vmem:[#allocation8 + $0xa6c] sm:$0xf]  ;;  %v7381_v16 = vld [vmem:[#allocation8 + $0xb98] sm:$0xf0] }
 0x3f0   :  { %3730 = vmatpush.bf16.msra.mxu0 %v7236_v25  ;;  %v7396_v25 = vor.u32 %v8649_v11, %v7395_v43  ;;  %v7240_v28 = vor.u32 %v8607_v63, %v7237_v58  ;;  %v8631_v43 = vld [vmem:[#allocation8 + $0xb2c] sm:$0xf]  ;;  %v7333_v11 = vld [vmem:[#allocation8 + $0xb38] sm:$0xf0]  ;;  %v8672_v58 = vld [vmem:[#allocation8 + $0xc6c] sm:$0xf0] }
 0x3f2   :  { %v2738_v14 = vpop.f32.mrf.mxu1  ;;  %3786 = vmatpush.bf16.msra.mxu3 %v7128_v59  ;;  %v8615_v59 = vld [vmem:[#allocation8 + $0xaac] sm:$0xf] }
 0x3f3   :  { %v2739_v57 = vadd.f32 %v2738_v14, %v2651_v18  ;;  %3676 = vmatpush.bf16.msrb.mxu1 %v7312_v32  ;;  %v7061_v18 = vld [vmem:[#allocation8 + $0x918] sm:$0xf0]  ;;  %v7272_v40 = vor.u32 %v8615_v59, %v7269_v17  ;;  %v8611_v14 = vld [vmem:[#allocation8 + $0xa8c] sm:$0xf]  ;;  %v8629_v32 = vld [vmem:[#allocation8 + $0xb14] sm:$0xf0] }
 0x3f4   :  { %3731 = vmatpush.bf16.msra.mxu0 %v7220_v44  ;;  %v7380_v44 = vor.u32 %v8645_v38, %v7379_v39  ;;  %v8627_v59 = vld [vmem:[#allocation8 + $0xb0c] sm:$0xf]  ;;  %v7317_v17 = vld [vmem:[#allocation8 + $0xb18] sm:$0xf0]  ;;  %v7547_v39 = vld [vmem:[#allocation8 + $0xce0] sm:$0xf] }
 0x3f5   :  { %3644 = vmatmul.bf16.gmra.mxu3 %v9748_v46  ;;  %3701 = vmatmul.bf16.gmra.mxu2 %v9733_v8  ;;  %v8688_v38 = vld [vmem:[#allocation8 + $0xcec] sm:$0xf0] }
 0x3f6   :  { %3787 = vmatpush.bf16.msra.mxu3 %v7112_v5  ;;  %v7256_v5 = vor.u32 %v8611_v14, %v7253_v35  ;;  %v7548_v14 = vor.u32 %v8688_v38, %v7547_v39  ;;  %v7515_v35 = vld [vmem:[#allocation8 + $0xca0] sm:$0xf]  ;;  %v8704_v38 = vld [vmem:[#allocation8 + $0xd6c] sm:$0xf0] }
 0x3f7   :  { %v7611_v39 = vld [vmem:[#allocation8 + $0xd60] sm:$0xf] }
 0x3f8   :  { %3732 = vmatpush.bf16.msra.mxu0 %v7204_v53  ;;  %v8603_v53 = vld [vmem:[#allocation8 + $0xa4c] sm:$0xf]  ;;  %4644 = vmatpush.bf16.msrb.mxu2 %v7548_v14  ;;  %v8670_v14 = vld [vmem:[#allocation8 + $0xc64] sm:$0xf] }
 0x3fa   :  { %v2740_v61 = vpop.f32.mrf.mxu1  ;;  %3788 = vmatpush.bf16.msra.mxu3 %v7096_v6 }
 0x3fb   :  { %v2741_v51 = vadd.f32 %v2740_v61, %v2655_v22  ;;  %v7064_v22 = vor.u32 %v8563_v7, %v7061_v18  ;;  %v7315_v61 = vld [vmem:[#allocation8 + $0xb08] sm:$0xf]  ;;  %v8647_v7 = vld [vmem:[#allocation8 + $0xbac] sm:$0xf]  ;;  %v7397_v18 = vld [vmem:[#allocation8 + $0xbb8] sm:$0xf0] }
 0x3fc   :  { %3733 = vmatpush.bf16.msra.mxu0 %v7188_v29  ;;  %v8595_v29 = vld [vmem:[#allocation8 + $0xa0c] sm:$0xf] }
 0x3fd   :  { %v9774_v30 = vpack.c.bf16 %v2741_v51, %v2739_v57  ;;  %v7316_v57 = vor.u32 %v8629_v32, %v7315_v61  ;;  %v7189_v51 = vld [vmem:[#allocation8 + $0xa18] sm:$0xf0]  ;;  %v7675_v32 = vld [vmem:[#allocation8 + $0xde0] sm:$0xf] }
 0x3fe   :  { %3789 = vmatpush.bf16.msra.mxu3 %v7080_v26  ;;  %v7192_v26 = vor.u32 %v8595_v29, %v7189_v51  ;;  %v8686_v29 = vld [vmem:[#allocation8 + $0xce4] sm:$0xf]  ;;  %v7549_v51 = vld [vmem:[#allocation8 + $0xcf0] sm:$0xf0] }
 0x3ff   :  { %3601 = vmatmul.bf16.vlgmr.msra.gmra.mxu1 %v9774_v30  ;;  %3658 = vmatmul.bf16.vlgmr.msrb.gmra.mxu0 %v9756_v52 }
 0x400   :  { %3745 = vmatpush.bf16.msra.mxu1 %v7428_v48  ;;  %3802 = vmatpush.bf16.msrb.mxu0 %v7304_v49  ;;  %v7413_v48 = vld [vmem:[#allocation8 + $0xbd8] sm:$0xf0]  ;;  %v7400_v49 = vor.u32 %v8647_v7, %v7397_v18  ;;  %v7533_v7 = vld [vmem:[#allocation8 + $0xcd0] sm:$0xf0] }
 0x401   :  { %v7416_v3 = vor.u32 %v8651_v31, %v7413_v48  ;;  %v8716_v31 = vld [vmem:[#allocation8 + $0xdcc] sm:$0xf0]  ;;  %v8682_v48 = vld [vmem:[#allocation8 + $0xcc4] sm:$0xf] }
 0x402   :  { %v2743_v47 = vpop.f32.mrf.mxu1  ;;  %3790 = vmatpush.bf16.msra.mxu3 %v7064_v22  ;;  %v8643_v22 = vld [vmem:[#allocation8 + $0xb8c] sm:$0xf]  ;;  %v7536_v18 = vor.u32 %v8682_v48, %v7533_v7  ;;  %v7437_v48 = vld [vmem:[#allocation8 + $0xc10] sm:$0xf0] }
 0x403   :  { %v2744_v62 = vadd.f32 %v2743_v47, %v2659_v55  ;;  %v8637_v55 = vld [vmem:[#allocation8 + $0xb54] sm:$0xf0]  ;;  %v7384_v24 = vor.u32 %v8643_v22, %v7381_v16  ;;  %v7368_v47 = vor.u32 %v8639_v41, %v7365_v60  ;;  %v8712_v22 = vld [vmem:[#allocation8 + $0xdac] sm:$0xf0]  ;;  %v8678_v16 = vld [vmem:[#allocation8 + $0xca4] sm:$0xf] }
 0x404   :  { %3746 = vmatpush.bf16.msra.mxu1 %v7412_v50  ;;  %3803 = vmatpush.bf16.msrb.mxu0 %v7288_v12  ;;  %v7348_v10 = vor.u32 %v8637_v55, %v7347_v36  ;;  %v8635_v50 = vld [vmem:[#allocation8 + $0xb4c] sm:$0xf]  ;;  %v7349_v12 = vld [vmem:[#allocation8 + $0xb58] sm:$0xf0]  ;;  %v8668_v55 = vld [vmem:[#allocation8 + $0xc4c] sm:$0xf0] }
 0x405   :  { %3715 = vmatmul.bf16.vlgmr.msrb.gmra.mxu3 %v9740_v45  ;;  %3772 = vmatmul.bf16.vlgmr.msra.gmra.mxu2 %v9726_v19  ;;  %v7517_v41 = vld [vmem:[#allocation8 + $0xcb0] sm:$0xf0] }
 0x408   :  { %3747 = vmatpush.bf16.msra.mxu1 %v7396_v25  ;;  %3804 = vmatpush.bf16.msrb.mxu0 %v7272_v40  ;;  %v7336_v25 = vor.u32 %v8631_v43, %v7333_v11  ;;  %v7320_v40 = vor.u32 %v8627_v59, %v7317_v17  ;;  %v8674_v43 = vld [vmem:[#allocation8 + $0xc84] sm:$0xf] }
 0x40a   :  { %v2745_v20 = vpop.f32.mrf.mxu1 }
 0x40b   :  { %v2746_v19 = vadd.f32 %v2745_v20, %v2663_v34  ;;  %v7221_v34 = vld [vmem:[#allocation8 + $0xa58] sm:$0xf0]  ;;  %v7531_v20 = vld [vmem:[#allocation8 + $0xcc0] sm:$0xf] }
 0x40c   :  { %3748 = vmatpush.bf16.msra.mxu1 %v7380_v44  ;;  %3805 = vmatpush.bf16.msrb.mxu0 %v7256_v5  ;;  %v7224_v6 = vor.u32 %v8603_v53, %v7221_v34  ;;  %v8684_v44 = vld [vmem:[#allocation8 + $0xccc] sm:$0xf0] }
 0x40d   :  { %v9784_v9 = vpack.c.bf16 %v2746_v19, %v2744_v62  ;;  %v8680_v62 = vld [vmem:[#allocation8 + $0xcac] sm:$0xf0] }
 0x40e   :  { %v7516_v19 = vor.u32 %v8680_v62, %v7515_v35 }
 0x40f   :  { %3606 = vmatmul.bf16.gmra.mxu1 %v9784_v9  ;;  %3663 = vmatmul.bf16.gmra.mxu0 %v9765_v54 }
 0x410   :  { %3749 = vmatpush.bf16.msra.mxu1 %v7364_v4  ;;  %3806 = vmatpush.bf16.msrb.mxu0 %v7240_v28  ;;  %v7483_v4 = vld [vmem:[#allocation8 + $0xc60] sm:$0xf] }
 0x411   :  { %v7484_v28 = vor.u32 %v8672_v58, %v7483_v4 }
 0x414   :  { %3750 = vmatpush.bf16.msra.mxu1 %v7348_v10  ;;  %3807 = vmatpush.bf16.msrb.mxu0 %v7224_v6  ;;  %v7451_v6 = vld [vmem:[#allocation8 + $0xc20] sm:$0xf] }
 0x415   :  { %3720 = vmatmul.bf16.gmra.mxu3 %v9748_v46  ;;  %3777 = vmatmul.bf16.gmra.mxu2 %v9733_v8  ;;  %v7429_v8 = vld [vmem:[#allocation8 + $0xbf8] sm:$0xf0]  ;;  %v7452_v42 = vor.u32 %v8664_v2, %v7451_v6 }
 0x416   :  { %v7432_v21 = vor.u32 %v8655_v13, %v7429_v8  ;;  %v7552_v13 = vor.u32 %v8686_v29, %v7549_v51  ;;  %v8692_v51 = vld [vmem:[#allocation8 + $0xd0c] sm:$0xf0] }
 0x418   :  { %3751 = vmatpush.bf16.msra.mxu1 %v7332_v27  ;;  %3808 = vmatpush.bf16.msrb.mxu0 %v7208_v56  ;;  %v7435_v27 = vld [vmem:[#allocation8 + $0xc00] sm:$0xf] }
 0x419   :  { %v7436_v56 = vor.u32 %v8660_v0, %v7435_v27  ;;  %v8696_v27 = vld [vmem:[#allocation8 + $0xd2c] sm:$0xf0]  ;;  %v8662_v0 = vld [vmem:[#allocation8 + $0xc24] sm:$0xf] }
 0x41c   :  { %3752 = vmatpush.bf16.msra.mxu1 %v7316_v57  ;;  %3809 = vmatpush.bf16.msrb.mxu0 %v7192_v26 }
 0x41f   :  { %3677 = vmatmul.bf16.vlgmr.msrb.gmra.mxu1 %v9774_v30  ;;  %3734 = vmatmul.bf16.vlgmr.msra.gmra.mxu0 %v9756_v52 }
 0x420   :  { %3821 = vmatpush.bf16.msrb.mxu1 %v7432_v21  ;;  %v7659_v21 = vld [vmem:[#allocation8 + $0xdc0] sm:$0xf] }
 0x424   :  { %3822 = vmatpush.bf16.msrb.mxu1 %v7416_v3  ;;  %v7660_v3 = vor.u32 %v8716_v31, %v7659_v21 }
 0x425   :  { %3791 = vmatmul.bf16.vlgmr.msra.gmra.mxu3 %v9740_v45  ;;  %v7352_v45 = vor.u32 %v8635_v50, %v7349_v12  ;;  %v9822_v50 = vld [vmem:[#allocation13 + $0x3] ss:$8 sm:$0xf] }
 0x428   :  { %3823 = vmatpush.bf16.msrb.mxu1 %v7400_v49  ;;  %v9800_v5 = vpop.f32.mrf.mxu2  ;;  %v7643_v49 = vld [vmem:[#allocation8 + $0xda0] sm:$0xf] }
 0x42c   :  { %3824 = vmatpush.bf16.msrb.mxu1 %v7384_v24  ;;  %v7644_v24 = vor.u32 %v8712_v22, %v7643_v49  ;;  %v7803_v49 = vld [vmem:[#allocation8 + $0xee0] sm:$0xf]  ;;  %v8752_v22 = vld [vmem:[#allocation8 + $0xeec] sm:$0xf0] }
 0x42f   :  { %3682 = vmatmul.bf16.gmra.mxu1 %v9784_v9  ;;  %3739 = vmatmul.bf16.gmra.mxu0 %v9765_v54 }
 0x430   :  { %3825 = vmatpush.bf16.msrb.mxu1 %v7368_v47  ;;  %v9807_v10 = vpop.f32.mrf.mxu2  ;;  %v7520_v47 = vor.u32 %v8678_v16, %v7517_v41  ;;  %v8718_v16 = vld [vmem:[#allocation8 + $0xde4] sm:$0xf]  ;;  %v7677_v41 = vld [vmem:[#allocation8 + $0xdf0] sm:$0xf0] }
 0x434   :  { %3826 = vmatpush.bf16.msrb.mxu1 %v7352_v45  ;;  %v8708_v45 = vld [vmem:[#allocation8 + $0xd8c] sm:$0xf0] }
 0x435   :  { %3796 = vmatmul.bf16.gmra.mxu3 %v9748_v46  ;;  %v7532_v46 = vor.u32 %v8684_v44, %v7531_v20  ;;  %v7612_v20 = vor.u32 %v8704_v38, %v7611_v39  ;;  %v7485_v44 = vld [vmem:[#allocation8 + $0xc70] sm:$0xf0]  ;;  %v7787_v39 = vld [vmem:[#allocation8 + $0xec0] sm:$0xf]  ;;  %v8748_v38 = vld [vmem:[#allocation8 + $0xecc] sm:$0xf0] }
 0x436   :  { %v7488_v35 = vor.u32 %v8670_v14, %v7485_v44  ;;  %v8714_v14 = vld [vmem:[#allocation8 + $0xdc4] sm:$0xf] }
 0x437   :  { %4645 = vmatpush.bf16.msrb.mxu2 %v7532_v46 }
 0x438   :  { %3827 = vmatpush.bf16.msrb.mxu1 %v7336_v25  ;;  %v9813_v61 = vpop.f32.mrf.mxu2  ;;  %v7501_v25 = vld [vmem:[#allocation8 + $0xc90] sm:$0xf0] }
 0x439   :  { %v7504_v17 = vor.u32 %v8674_v43, %v7501_v25 }
 0x43b   :  { %4646 = vmatpush.bf16.msrb.mxu2 %v7516_v19 }
 0x43c   :  { %3828 = vmatpush.bf16.msrb.mxu1 %v7320_v40  ;;  %v9829_v40 = vperm.slane %v9822_v50, 0 }
 0x43e   :  { %v3546_v62 = vadd.f32 %v9800_v5, %v9829_v40  ;;  %v3548_v4 = vadd.f32 %v9807_v10, %v9829_v40 }
 0x43f   :  { %3753 = vmatmul.bf16.vlgmr.msra.gmra.mxu1 %v9774_v30  ;;  %3810 = vmatmul.bf16.vlgmr.msrb.gmra.mxu0 %v9756_v52  ;;  %v8676_v52 = vld [vmem:[#allocation8 + $0xc8c] sm:$0xf0] }
 0x440   :  { %v7500_v37 = vor.u32 %v8676_v52, %v7499_v15  ;;  %v9820_v60 = vpop.f32.mrf.mxu2  ;;  %v7595_v15 = vld [vmem:[#allocation8 + $0xd40] sm:$0xf]  ;;  %v8700_v52 = vld [vmem:[#allocation8 + $0xd4c] sm:$0xf0] }
 0x442   :  { %4647 = vmatpush.bf16.msrb.mxu2 %v7500_v37  ;;  %v8666_v37 = vld [vmem:[#allocation8 + $0xc44] sm:$0xf] }
 0x446   :  { %4648 = vmatpush.bf16.msrb.mxu2 %v7484_v28  ;;  %v7596_v28 = vor.u32 %v8700_v52, %v7595_v15  ;;  %v8685_v52 = vld [vmem:[#allocation8 + $0xcd4] sm:$0xf0] }
 0x448   :  { %v9802_v63 = vpop.f32.mrf.mxu3  ;;  %v9833_v19 = vpop.f32.mrf.mxu2 }
 0x449   :  { %v3565_v58 = vadd.f32 %v9802_v63, %v3546_v62  ;;  %v7539_v62 = vld [vmem:[#allocation8 + $0xcc8] sm:$0xf] }
 0x44f   :  { %3758 = vmatmul.bf16.gmra.mxu1 %v9784_v9  ;;  %3815 = vmatmul.bf16.gmra.mxu0 %v9765_v54  ;;  %v7467_v54 = vld [vmem:[#allocation8 + $0xc40] sm:$0xf] }
 0x450   :  { %v7468_v53 = vor.u32 %v8668_v55, %v7467_v54  ;;  %v9809_v34 = vpop.f32.mrf.mxu3  ;;  %v7469_v54 = vld [vmem:[#allocation8 + $0xc50] sm:$0xf0] }
 0x451   :  { %v3567_v6 = vadd.f32 %v9809_v34, %v3548_v4  ;;  %v7563_v34 = vld [vmem:[#allocation8 + $0xd00] sm:$0xf]  ;;  %v7540_v4 = vor.u32 %v8685_v52, %v7539_v62  ;;  %v7597_v62 = vld [vmem:[#allocation8 + $0xd50] sm:$0xf0] }
 0x452   :  { %4649 = vmatpush.bf16.msrb.mxu2 %v7468_v53  ;;  %v7472_v53 = vor.u32 %v8666_v37, %v7469_v54  ;;  %v7564_v31 = vor.u32 %v8692_v51, %v7563_v34  ;;  %v8744_v54 = vld [vmem:[#allocation8 + $0xeac] sm:$0xf0]  ;;  %v7629_v34 = vld [vmem:[#allocation8 + $0xd90] sm:$0xf0]  ;;  %v7507_v51 = vld [vmem:[#allocation8 + $0xc88] sm:$0xf] }
 0x456   :  { %4650 = vmatpush.bf16.msrb.mxu2 %v7452_v42  ;;  %v7579_v42 = vld [vmem:[#allocation8 + $0xd20] sm:$0xf] }
 0x457   :  { %v7580_v63 = vor.u32 %v8696_v27, %v7579_v42  ;;  %v8681_v42 = vld [vmem:[#allocation8 + $0xcb4] sm:$0xf0] }
 0x458   :  { %v9815_v26 = vpop.f32.mrf.mxu3 }
 0x45a   :  { %4651 = vmatpush.bf16.msrb.mxu2 %v7436_v56 }
 0x45c   :  { %v9804_v36 = vpop.f32.mrf.mxu0 }
 0x45d   :  { %v3584_v5 = vadd.f32 %v9804_v36, %v3565_v58  ;;  %v8658_v36 = vld [vmem:[#allocation8 + $0xc04] sm:$0xf] }
 0x45e   :  { %4720 = vmatpush.bf16.msra.mxu2 %v7552_v13  ;;  %v7440_v7 = vor.u32 %v8658_v36, %v7437_v48 }
 0x45f   :  { %3829 = vmatmul.bf16.vlgmr.msrb.gmra.mxu1 %v9774_v30  ;;  %v8720_v30 = vld [vmem:[#allocation8 + $0xdec] sm:$0xf0] }
 0x460   :  { %v7676_v57 = vor.u32 %v8720_v30, %v7675_v32  ;;  %v9824_v12 = vpop.f32.mrf.mxu3  ;;  %v7453_v32 = vld [vmem:[#allocation8 + $0xc30] sm:$0xf0] }
 0x461   :  { %v7456_v29 = vor.u32 %v8662_v0, %v7453_v32  ;;  %v8740_v32 = vld [vmem:[#allocation8 + $0xe8c] sm:$0xf0] }
 0x462   :  { %4663 = vmatpush.bf16.msrb.mxu3 %v7676_v57  ;;  %4721 = vmatpush.bf16.msra.mxu2 %v7536_v18 }
 0x464   :  { %v9811_v33 = vpop.f32.mrf.mxu0 }
 0x465   :  { %v3586_v10 = vadd.f32 %v9811_v33, %v3567_v6  ;;  %v7645_v6 = vld [vmem:[#allocation8 + $0xdb0] sm:$0xf0] }
 0x466   :  { %4664 = vmatpush.bf16.msrb.mxu3 %v7660_v3  ;;  %4722 = vmatpush.bf16.msra.mxu2 %v7520_v47  ;;  %v9845_v3 = vpop.f32.mrf.mxu2  ;;  %v7555_v47 = vld [vmem:[#allocation8 + $0xce8] sm:$0xf] }
 0x468   :  { %v9838_v55 = vpop.f32.mrf.mxu3 }
 0x46a   :  { %4665 = vmatpush.bf16.msrb.mxu3 %v7644_v24  ;;  %4723 = vmatpush.bf16.msra.mxu2 %v7504_v17  ;;  %v7804_v24 = vor.u32 %v8752_v22, %v7803_v49  ;;  %v3551_v17 = vadd.f32 %v9813_v61, %v9829_v40  ;;  %v8736_v49 = vld [vmem:[#allocation8 + $0xe6c] sm:$0xf0]  ;;  %v8702_v22 = vld [vmem:[#allocation8 + $0xd64] sm:$0xf] }
 0x46c   :  { %v9817_v8 = vpop.f32.mrf.mxu0  ;;  %4682 = vmatpush.bf16.msra.mxu0 %v7804_v24  ;;  %v3570_v44 = vadd.f32 %v9815_v26, %v3551_v17  ;;  %v7613_v24 = vld [vmem:[#allocation8 + $0xd70] sm:$0xf0] }
 0x46e   :  { %4724 = vmatpush.bf16.msra.mxu2 %v7488_v35  ;;  %v7661_v35 = vld [vmem:[#allocation8 + $0xdd0] sm:$0xf0]  ;;  %v3589_v61 = vadd.f32 %v9817_v8, %v3570_v44  ;;  %v9861_v58 = vpop.f32.mrf.mxu2 }
 0x46f   :  { %3834 = vmatmul.bf16.gmra.mxu1 %v9784_v9  ;;  %v7627_v9 = vld [vmem:[#allocation8 + $0xd80] sm:$0xf]  ;;  %v7664_v15 = vor.u32 %v8714_v14, %v7661_v35  ;;  %v8732_v14 = vld [vmem:[#allocation8 + $0xe4c] sm:$0xf0] }
 0x470   :  { %v7628_v11 = vor.u32 %v8708_v45, %v7627_v9  ;;  %v9849_v33 = vpop.f32.mrf.mxu3  ;;  %v8689_v9 = vld [vmem:[#allocation8 + $0xcf4] sm:$0xf0] }
 0x471   :  { %v7556_v25 = vor.u32 %v8689_v9, %v7555_v47  ;;  %v8673_v47 = vld [vmem:[#allocation8 + $0xc74] sm:$0xf0] }
 0x472   :  { %4666 = vmatpush.bf16.msrb.mxu3 %v7628_v11  ;;  %4725 = vmatpush.bf16.msra.mxu2 %v7472_v53  ;;  %v7680_v11 = vor.u32 %v8718_v16, %v7677_v41  ;;  %v8710_v53 = vld [vmem:[#allocation8 + $0xda4] sm:$0xf]  ;;  %v7491_v41 = vld [vmem:[#allocation8 + $0xc68] sm:$0xf] }
 0x473   :  { %v7648_v8 = vor.u32 %v8710_v53, %v7645_v6  ;;  %v8728_v53 = vld [vmem:[#allocation8 + $0xe2c] sm:$0xf0]  ;;  %v7459_v6 = vld [vmem:[#allocation8 + $0xc28] sm:$0xf] }
 0x474   :  { %v9826_v59 = vpop.f32.mrf.mxu0 }
 0x476   :  { %4667 = vmatpush.bf16.msrb.mxu3 %v7612_v20  ;;  %4726 = vmatpush.bf16.msra.mxu2 %v7456_v29  ;;  %v3553_v20 = vadd.f32 %v9820_v60, %v9829_v40  ;;  %v9874_v9 = vpop.f32.mrf.mxu2 }
 0x478   :  { %v3572_v37 = vadd.f32 %v9824_v12, %v3553_v20  ;;  %v9864_v27 = vpop.f32.mrf.mxu3  ;;  %v8698_v20 = vld [vmem:[#allocation8 + $0xd44] sm:$0xf] }
 0x47a   :  { %4668 = vmatpush.bf16.msrb.mxu3 %v7596_v28  ;;  %4727 = vmatpush.bf16.msra.mxu2 %v7440_v7  ;;  %v7771_v28 = vld [vmem:[#allocation8 + $0xea0] sm:$0xf]  ;;  %v3591_v60 = vadd.f32 %v9826_v59, %v3572_v37  ;;  %v7600_v37 = vor.u32 %v8698_v20, %v7597_v62 }
 0x47b   :  { %v7772_v40 = vor.u32 %v8744_v54, %v7771_v28  ;;  %v7739_v7 = vld [vmem:[#allocation8 + $0xe60] sm:$0xf] }
 0x47c   :  { %v3602_v46 = vpop.f32.mrf.mxu1  ;;  %v9842_v2 = vpop.f32.mrf.mxu0  ;;  %v7740_v16 = vor.u32 %v8736_v49, %v7739_v7  ;;  %v7707_v54 = vld [vmem:[#allocation8 + $0xe20] sm:$0xf]  ;;  %v8784_v49 = vld [vmem:[#allocation8 + $0xfec] sm:$0xf0] }
 0x47d   :  { %v3603_v56 = vadd.f32 %v3602_v46, %v3584_v5  ;;  %v7788_v46 = vor.u32 %v8748_v38, %v7787_v39  ;;  %v7523_v5 = vld [vmem:[#allocation8 + $0xca8] sm:$0xf]  ;;  %v7723_v38 = vld [vmem:[#allocation8 + $0xe40] sm:$0xf] }
 0x47e   :  { %4669 = vmatpush.bf16.msrb.mxu3 %v7580_v63  ;;  %v7524_v0 = vor.u32 %v8681_v42, %v7523_v5  ;;  %v7755_v63 = vld [vmem:[#allocation8 + $0xe80] sm:$0xf]  ;;  %v7724_v35 = vor.u32 %v8732_v14, %v7723_v38  ;;  %v8665_v5 = vld [vmem:[#allocation8 + $0xc34] sm:$0xf0]  ;;  %v7557_v38 = vld [vmem:[#allocation8 + $0xcf8] sm:$0xf0] }
 0x47f   :  { %v3840_v13 = vmax.f32 %v3603_v56, 0.0  ;;  %4683 = vmatpush.bf16.msra.mxu0 %v7788_v46  ;;  %v7931_v7 = vld [vmem:[#allocation8 + $0xfe0] sm:$0xf] }
 0x480   :  { %v9878_v39 = vpop.f32.mrf.mxu3 }
 0x482   :  { %4670 = vmatpush.bf16.msrb.mxu3 %v7564_v31 }
 0x483   :  { %4684 = vmatpush.bf16.msra.mxu0 %v7772_v40  ;;  %v7581_v40 = vld [vmem:[#allocation8 + $0xd30] sm:$0xf0] }
 0x484   :  { %v3604_v30 = vpop.f32.mrf.mxu1  ;;  %v9852_v45 = vpop.f32.mrf.mxu0 }
 0x485   :  { %v3605_v57 = vadd.f32 %v3604_v30, %v3586_v10  ;;  %v8706_v30 = vld [vmem:[#allocation8 + $0xd84] sm:$0xf] }
 0x486   :  { %4739 = vmatpush.bf16.msra.mxu3 %v7680_v11  ;;  %v7632_v36 = vor.u32 %v8706_v30, %v7629_v34  ;;  %v7616_v11 = vor.u32 %v8702_v22, %v7613_v24  ;;  %v8750_v22 = vld [vmem:[#allocation8 + $0xee4] sm:$0xf]  ;;  %v7805_v24 = vld [vmem:[#allocation8 + $0xef0] sm:$0xf0] }
 0x487   :  { %v3844_v21 = vmax.f32 %v3605_v57, 0.0  ;;  %v7756_v57 = vor.u32 %v8740_v32, %v7755_v63  ;;  %v8690_v63 = vld [vmem:[#allocation8 + $0xd04] sm:$0xf] }
 0x489   :  { %v9847_v18 = vpack.c.bf16 %v3844_v21, %v3840_v13  ;;  %v8677_v13 = vld [vmem:[#allocation8 + $0xc94] sm:$0xf0]  ;;  %v9869_v21 = vperm.slane %v9822_v50, 1  ;;  %4685 = vmatpush.bf16.msra.mxu0 %v7756_v57  ;;  %v9890_v57 = vpop.f32.mrf.mxu3 }
 0x48a   :  { %4740 = vmatpush.bf16.msra.mxu3 %v7664_v15  ;;  %v7508_v48 = vor.u32 %v8677_v13, %v7507_v51  ;;  %v7475_v15 = vld [vmem:[#allocation8 + $0xc48] sm:$0xf]  ;;  %v8661_v51 = vld [vmem:[#allocation8 + $0xc14] sm:$0xf0] }
 0x48b   :  { %4652 = vmatmul.bf16.vlgmr.msrb.gmra.mxu2 %v9847_v18  ;;  %v3622_v17 = vadd.f32 %v9833_v19, %v9869_v21  ;;  %v3624_v44 = vadd.f32 %v9845_v3, %v9869_v21  ;;  %v8669_v19 = vld [vmem:[#allocation8 + $0xc54] sm:$0xf0]  ;;  %v8694_v3 = vld [vmem:[#allocation8 + $0xd24] sm:$0xf]  ;;  %v3627_v14 = vadd.f32 %v9861_v58, %v9869_v21  ;;  %v3629_v62 = vadd.f32 %v9874_v9, %v9869_v21  ;;  %v8776_v9 = vld [vmem:[#allocation8 + $0xfac] sm:$0xf0] }
 0x48c   :  { %v3607_v43 = vpop.f32.mrf.mxu1  ;;  %4796 = vmatpush.bf16.msrb.mxu2 %v7556_v25  ;;  %v9866_v56 = vpop.f32.mrf.mxu0  ;;  %v7492_v25 = vor.u32 %v8673_v47, %v7491_v41  ;;  %v7476_v28 = vor.u32 %v8669_v19, %v7475_v15  ;;  %v7683_v41 = vld [vmem:[#allocation8 + $0xde8] sm:$0xf]  ;;  %v8721_v47 = vld [vmem:[#allocation8 + $0xdf4] sm:$0xf0]  ;;  %v7789_v19 = vld [vmem:[#allocation8 + $0xed0] sm:$0xf0] }
 0x48d   :  { %v3608_v26 = vadd.f32 %v3607_v43, %v3589_v61  ;;  %4686 = vmatpush.bf16.msra.mxu0 %v7740_v16  ;;  %v3641_v46 = vadd.f32 %v9838_v55, %v3622_v17  ;;  %v3643_v61 = vadd.f32 %v9849_v33, %v3624_v44  ;;  %v7932_v16 = vor.u32 %v8784_v49, %v7931_v7  ;;  %v8687_v17 = vld [vmem:[#allocation8 + $0xcec] sm:$0xf]  ;;  %v7915_v44 = vld [vmem:[#allocation8 + $0xfc0] sm:$0xf]  ;;  %v8717_v58 = vld [vmem:[#allocation8 + $0xdd4] sm:$0xf0] }
 0x48e   :  { %4741 = vmatpush.bf16.msra.mxu3 %v7648_v8  ;;  %v7460_v8 = vor.u32 %v8665_v5, %v7459_v6  ;;  %v7560_v20 = vor.u32 %v8687_v17, %v7557_v38  ;;  %v3646_v15 = vadd.f32 %v9864_v27, %v3627_v14  ;;  %v7899_v27 = vld [vmem:[#allocation8 + $0xfa0] sm:$0xf]  ;;  %v7757_v7 = vld [vmem:[#allocation8 + $0xe90] sm:$0xf0]  ;;  %v7635_v49 = vld [vmem:[#allocation8 + $0xd88] sm:$0xf] }
 0x48f   :  { %v3848_v59 = vmax.f32 %v3608_v26, 0.0  ;;  %v3662_v55 = vadd.f32 %v9852_v45, %v3643_v61  ;;  %v7708_v26 = vor.u32 %v8728_v53, %v7707_v54  ;;  %4701 = vmatpush.bf16.msra.mxu1 %v7932_v16  ;;  %v7667_v61 = vld [vmem:[#allocation8 + $0xdc8] sm:$0xf]  ;;  %v8683_v54 = vld [vmem:[#allocation8 + $0xccc] sm:$0xf] }
 0x490   :  { %4797 = vmatpush.bf16.msrb.mxu2 %v7540_v4  ;;  %v3660_v4 = vadd.f32 %v9842_v2, %v3641_v46  ;;  %v9888_v2 = vpop.f32.mrf.mxu2  ;;  %v8780_v46 = vld [vmem:[#allocation8 + $0xfcc] sm:$0xf0]  ;;  %v7541_v53 = vld [vmem:[#allocation8 + $0xcd8] sm:$0xf0]  ;;  %v8709_v16 = vld [vmem:[#allocation8 + $0xd94] sm:$0xf0] }
 0x491   :  { %4687 = vmatpush.bf16.msra.mxu0 %v7724_v35  ;;  %v8746_v35 = vld [vmem:[#allocation8 + $0xec4] sm:$0xf]  ;;  %v9907_v21 = vpop.f32.mrf.mxu3  ;;  %v7867_v38 = vld [vmem:[#allocation8 + $0xf60] sm:$0xf]  ;;  %v8768_v14 = vld [vmem:[#allocation8 + $0xf6c] sm:$0xf0] }
 0x492   :  { %4742 = vmatpush.bf16.msra.mxu3 %v7632_v36 }
 0x494   :  { %v3609_v12 = vpop.f32.mrf.mxu1  ;;  %4798 = vmatpush.bf16.msrb.mxu2 %v7524_v0  ;;  %v9883_v52 = vpop.f32.mrf.mxu0  ;;  %v7691_v0 = vld [vmem:[#allocation8 + $0xe00] sm:$0xf] }
 0x495   :  { %v3610_v10 = vadd.f32 %v3609_v12, %v3591_v60  ;;  %v7584_v12 = vor.u32 %v8694_v3, %v7581_v40  ;;  %4688 = vmatpush.bf16.msra.mxu0 %v7708_v26  ;;  %v3648_v3 = vadd.f32 %v9878_v39, %v3629_v62  ;;  %v7544_v26 = vor.u32 %v8683_v54, %v7541_v53  ;;  %v8742_v40 = vld [vmem:[#allocation8 + $0xea4] sm:$0xf]  ;;  %v8713_v39 = vld [vmem:[#allocation8 + $0xdb4] sm:$0xf0] }
 0x496   :  { %4743 = vmatpush.bf16.msra.mxu3 %v7616_v11  ;;  %v7808_v11 = vor.u32 %v8750_v22, %v7805_v24  ;;  %v8675_v24 = vld [vmem:[#allocation8 + $0xc8c] sm:$0xf]  ;;  %v8705_v62 = vld [vmem:[#allocation8 + $0xd74] sm:$0xf0] }
 0x497   :  { %v3852_v29 = vmax.f32 %v3610_v10, 0.0  ;;  %v8724_v10 = vld [vmem:[#allocation8 + $0xe0c] sm:$0xf0]  ;;  %v3667_v6 = vadd.f32 %v9883_v52, %v3648_v3 }
 0x498   :  { %4799 = vmatpush.bf16.msrb.mxu2 %v7508_v48  ;;  %v7692_v45 = vor.u32 %v8724_v10, %v7691_v0  ;;  %v8772_v52 = vld [vmem:[#allocation8 + $0xf8c] sm:$0xf0] }
 0x499   :  { %v9871_v31 = vpack.c.bf16 %v3852_v29, %v3848_v59  ;;  %v7565_v59 = vld [vmem:[#allocation8 + $0xd10] sm:$0xf0]  ;;  %v7443_v29 = vld [vmem:[#allocation8 + $0xc08] sm:$0xf] }
 0x49a   :  { %4744 = vmatpush.bf16.msra.mxu3 %v7600_v37  ;;  %v7568_v34 = vor.u32 %v8690_v63, %v7565_v59  ;;  %4689 = vmatpush.bf16.msra.mxu0 %v7692_v45  ;;  %v7444_v13 = vor.u32 %v8661_v51, %v7443_v29  ;;  %v7916_v37 = vor.u32 %v8780_v46, %v7915_v44  ;;  %v8679_v63 = vld [vmem:[#allocation8 + $0xcac] sm:$0xf]  ;;  %v7883_v59 = vld [vmem:[#allocation8 + $0xf80] sm:$0xf]  ;;  %v8738_v29 = vld [vmem:[#allocation8 + $0xe84] sm:$0xf] }
 0x49b   :  { %4657 = vmatmul.bf16.gmra.mxu2 %v9871_v31  ;;  %v7760_v22 = vor.u32 %v8738_v29, %v7757_v7  ;;  %v7868_v44 = vor.u32 %v8768_v14, %v7867_v38  ;;  %v7741_v46 = vld [vmem:[#allocation8 + $0xe70] sm:$0xf0]  ;;  %v8697_v29 = vld [vmem:[#allocation8 + $0xd34] sm:$0xf0]  ;;  %v7461_v7 = vld [vmem:[#allocation8 + $0xc38] sm:$0xf0] }
 0x49c   :  { %v3678_v43 = vpop.f32.mrf.mxu1  ;;  %4800 = vmatpush.bf16.msrb.mxu2 %v7492_v25  ;;  %v9894_v48 = vpop.f32.mrf.mxu0  ;;  %v7684_v25 = vor.u32 %v8721_v47, %v7683_v41  ;;  %4702 = vmatpush.bf16.msra.mxu1 %v7916_v37  ;;  %v7509_v41 = vld [vmem:[#allocation8 + $0xc98] sm:$0xf0]  ;;  %v9913_v47 = vperm.slane %v9822_v50, 2  ;;  %v7693_v14 = vld [vmem:[#allocation8 + $0xe10] sm:$0xf0] }
 0x49d   :  { %v3679_v60 = vadd.f32 %v3678_v43, %v3660_v4  ;;  %v9903_v4 = vpop.f32.mrf.mxu2 }
 0x49e   :  { %4745 = vmatpush.bf16.msra.mxu3 %v7584_v12  ;;  %4758 = vmatpush.bf16.msrb.mxu0 %v7808_v11  ;;  %v7773_v12 = vld [vmem:[#allocation8 + $0xeb0] sm:$0xf0]  ;;  %v7636_v11 = vor.u32 %v8709_v16, %v7635_v49  ;;  %v3698_v54 = vadd.f32 %v9888_v2, %v9913_v47  ;;  %v8701_v2 = vld [vmem:[#allocation8 + $0xd54] sm:$0xf0] }
 0x49f   :  { %v3841_v32 = vmax.f32 %v3679_v60, 0.0  ;;  %v7668_v60 = vor.u32 %v8717_v58, %v7667_v61  ;;  %v7776_v0 = vor.u32 %v8742_v40, %v7773_v12  ;;  %v7493_v58 = vld [vmem:[#allocation8 + $0xc78] sm:$0xf0]  ;;  %v8667_v12 = vld [vmem:[#allocation8 + $0xc4c] sm:$0xf] }
 0x4a0   :  { %4801 = vmatpush.bf16.msrb.mxu2 %v7476_v28  ;;  %v7792_v28 = vor.u32 %v8746_v35, %v7789_v19  ;;  %v7619_v35 = vld [vmem:[#allocation8 + $0xd68] sm:$0xf] }
 0x4a1   :  { %v7620_v61 = vor.u32 %v8705_v62, %v7619_v35  ;;  %v8693_v35 = vld [vmem:[#allocation8 + $0xd14] sm:$0xf0]  ;;  %v8659_v62 = vld [vmem:[#allocation8 + $0xc0c] sm:$0xf] }
 0x4a2   :  { %4746 = vmatpush.bf16.msra.mxu3 %v7568_v34  ;;  %4759 = vmatpush.bf16.msrb.mxu0 %v7792_v28  ;;  %v8671_v28 = vld [vmem:[#allocation8 + $0xc6c] sm:$0xf] }
 0x4a3   :  { %v7496_v53 = vor.u32 %v8671_v28, %v7493_v58  ;;  %v8782_v58 = vld [vmem:[#allocation8 + $0xfe4] sm:$0xf] }
 0x4a4   :  { %v3680_v42 = vpop.f32.mrf.mxu1  ;;  %4802 = vmatpush.bf16.msrb.mxu2 %v7460_v8  ;;  %v7651_v8 = vld [vmem:[#allocation8 + $0xda8] sm:$0xf] }
 0x4a5   :  { %v3681_v33 = vadd.f32 %v3680_v42, %v3662_v55  ;;  %v3665_v55 = vadd.f32 %v9866_v56, %v3646_v15  ;;  %v7900_v42 = vor.u32 %v8776_v9, %v7899_v27  ;;  %v7652_v10 = vor.u32 %v8713_v39, %v7651_v8  ;;  %v9917_v17 = vpop.f32.mrf.mxu2  ;;  %v9921_v15 = vpop.f32.mrf.mxu3  ;;  %v7477_v8 = vld [vmem:[#allocation8 + $0xc58] sm:$0xf0] }
 0x4a6   :  { %4760 = vmatpush.bf16.msrb.mxu0 %v7776_v0  ;;  %v3700_v27 = vadd.f32 %v9903_v4, %v9913_v47  ;;  %v3717_v9 = vadd.f32 %v9890_v57, %v3698_v54  ;;  %v7835_v4 = vld [vmem:[#allocation8 + $0xf20] sm:$0xf]  ;;  %v8726_v57 = vld [vmem:[#allocation8 + $0xe24] sm:$0xf]  ;;  %v7933_v54 = vld [vmem:[#allocation8 + $0xff0] sm:$0xf0] }
 0x4a7   :  { %v3845_v30 = vmax.f32 %v3681_v33, 0.0  ;;  %v9910_v33 = vpop.f32.mrf.mxu0  ;;  %4703 = vmatpush.bf16.msra.mxu1 %v7900_v42 }
 0x4a8   :  { %4803 = vmatpush.bf16.msrb.mxu2 %v7444_v13  ;;  %v7884_v13 = vor.u32 %v8772_v52, %v7883_v59  ;;  %v3719_v39 = vadd.f32 %v9907_v21, %v3700_v27  ;;  %v7709_v59 = vld [vmem:[#allocation8 + $0xe30] sm:$0xf0]  ;;  %v7587_v52 = vld [vmem:[#allocation8 + $0xd28] sm:$0xf]  ;;  %v7685_v27 = vld [vmem:[#allocation8 + $0xdf8] sm:$0xf0] }
 0x4a9   :  { %v9892_v36 = vpack.c.bf16 %v3845_v30, %v3841_v32  ;;  %v7525_v32 = vld [vmem:[#allocation8 + $0xcb8] sm:$0xf0]  ;;  %v7712_v21 = vor.u32 %v8726_v57, %v7709_v59 }
 0x4aa   :  { %v7528_v45 = vor.u32 %v8679_v63, %v7525_v32  ;;  %4761 = vmatpush.bf16.msrb.mxu0 %v7760_v22  ;;  %v8760_v63 = vld [vmem:[#allocation8 + $0xf2c] sm:$0xf0]  ;;  %v3738_v32 = vadd.f32 %v9910_v33, %v3719_v39 }
 0x4ab   :  { %4671 = vmatmul.bf16.vlgmr.msrb.gmra.mxu3 %v9892_v36  ;;  %4728 = vmatmul.bf16.vlgmr.msra.gmra.mxu2 %v9847_v18  ;;  %v8756_v33 = vld [vmem:[#allocation8 + $0xf0c] sm:$0xf0] }
 0x4ac   :  { %v3683_v43 = vpop.f32.mrf.mxu1  ;;  %4815 = vmatpush.bf16.msrb.mxu3 %v7684_v25  ;;  %4872 = vmatpush.bf16.msra.mxu2 %v7560_v20  ;;  %v7512_v25 = vor.u32 %v8675_v24, %v7509_v41  ;;  %v8734_v20 = vld [vmem:[#allocation8 + $0xe64] sm:$0xf]  ;;  %v7819_v24 = vld [vmem:[#allocation8 + $0xf00] sm:$0xf] }
 0x4ad   :  { %v3684_v5 = vadd.f32 %v3683_v43, %v3665_v55  ;;  %4704 = vmatpush.bf16.msra.mxu1 %v7884_v13  ;;  %v7744_v19 = vor.u32 %v8734_v20, %v7741_v46  ;;  %v7851_v55 = vld [vmem:[#allocation8 + $0xf40] sm:$0xf]  ;;  %v8663_v13 = vld [vmem:[#allocation8 + $0xc2c] sm:$0xf]  ;;  %v3723_v16 = vpop.f32.mrf.mxu3  ;;  %v8722_v41 = vld [vmem:[#allocation8 + $0xe04] sm:$0xf]  ;;  %v7820_v38 = vor.u32 %v8756_v33, %v7819_v24 }
 0x4ae   :  { %v7464_v22 = vor.u32 %v8663_v13, %v7461_v7  ;;  %v7571_v20 = vld [vmem:[#allocation8 + $0xd08] sm:$0xf]  ;;  %v7696_v46 = vor.u32 %v8722_v41, %v7693_v14  ;;  %v7653_v13 = vld [vmem:[#allocation8 + $0xdb8] sm:$0xf0]  ;;  %v7885_v24 = vld [vmem:[#allocation8 + $0xf90] sm:$0xf0] }
 0x4af   :  { %v3849_v34 = vmax.f32 %v3684_v5, 0.0  ;;  %v9925_v3 = vpop.f32.mrf.mxu0  ;;  %4762 = vmatpush.bf16.msrb.mxu0 %v7744_v19  ;;  %v7603_v5 = vld [vmem:[#allocation8 + $0xd48] sm:$0xf]  ;;  %v8707_v14 = vld [vmem:[#allocation8 + $0xd8c] sm:$0xf] }
 0x4b0   :  { %4816 = vmatpush.bf16.msrb.mxu3 %v7668_v60  ;;  %4873 = vmatpush.bf16.msra.mxu2 %v7544_v26  ;;  %v8764_v60 = vld [vmem:[#allocation8 + $0xf4c] sm:$0xf0]  ;;  %v8730_v26 = vld [vmem:[#allocation8 + $0xe44] sm:$0xf]  ;;  %v7604_v0 = vor.u32 %v8701_v2, %v7603_v5  ;;  %v3703_v5 = vadd.f32 %v9917_v17, %v9913_v47  ;;  %v7669_v17 = vld [vmem:[#allocation8 + $0xdd8] sm:$0xf0] }
 0x4b1   :  { %4705 = vmatpush.bf16.msra.mxu1 %v7868_v44  ;;  %v7852_v40 = vor.u32 %v8764_v60, %v7851_v55  ;;  %v7936_v55 = vor.u32 %v8782_v58, %v7933_v54  ;;  %v8753_v60 = vld [vmem:[#allocation8 + $0xef4] sm:$0xf0]  ;;  %v8778_v2 = vld [vmem:[#allocation8 + $0xfc4] sm:$0xf]  ;;  %v7763_v33 = vld [vmem:[#allocation8 + $0xe88] sm:$0xf] }
 0x4b2   :  { %v7869_v58 = vld [vmem:[#allocation8 + $0xf70] sm:$0xf0]  ;;  %v7747_v54 = vld [vmem:[#allocation8 + $0xe68] sm:$0xf] }
 0x4b4   :  { %v3685_v56 = vpop.f32.mrf.mxu1  ;;  %4817 = vmatpush.bf16.msrb.mxu3 %v7652_v10  ;;  %4874 = vmatpush.bf16.msra.mxu2 %v7528_v45  ;;  %v7480_v10 = vor.u32 %v8667_v12, %v7477_v8  ;;  %v7836_v45 = vor.u32 %v8760_v63, %v7835_v4  ;;  %v7917_v12 = vld [vmem:[#allocation8 + $0xfd0] sm:$0xf0]  ;;  %v7795_v8 = vld [vmem:[#allocation8 + $0xec8] sm:$0xf]  ;;  %v8715_v4 = vld [vmem:[#allocation8 + $0xdcc] sm:$0xf] }
 0x4b5   :  { %v3686_v30 = vadd.f32 %v3685_v56, %v3667_v6  ;;  %v7725_v6 = vld [vmem:[#allocation8 + $0xe50] sm:$0xf0]  ;;  %v3736_v56 = vadd.f32 %v9894_v48, %v3717_v9  ;;  %4706 = vmatpush.bf16.msra.mxu1 %v7852_v40  ;;  %v7588_v48 = vor.u32 %v8697_v29, %v7587_v52  ;;  %v9944_v63 = vpop.f32.mrf.mxu3  ;;  %v8774_v52 = vld [vmem:[#allocation8 + $0xfa4] sm:$0xf] }
 0x4b6   :  { %v7728_v42 = vor.u32 %v8730_v26, %v7725_v6  ;;  %v8719_v26 = vld [vmem:[#allocation8 + $0xdec] sm:$0xf]  ;;  %v7901_v29 = vld [vmem:[#allocation8 + $0xfb0] sm:$0xf0] }
 0x4b7   :  { %v3853_v51 = vmax.f32 %v3686_v30, 0.0  ;;  %v3742_v44 = vpop.f32.mrf.mxu0  ;;  %v7688_v6 = vor.u32 %v8719_v26, %v7685_v27  ;;  %v7621_v26 = vld [vmem:[#allocation8 + $0xd78] sm:$0xf0] }
 0x4b8   :  { %4818 = vmatpush.bf16.msrb.mxu3 %v7636_v11  ;;  %4875 = vmatpush.bf16.msra.mxu2 %v7512_v25 }
 0x4b9   :  { %v9915_v43 = vpack.c.bf16 %v3853_v51, %v3849_v34  ;;  %4763 = vmatpush.bf16.msrb.mxu0 %v7728_v42  ;;  %v3704_v34 = vpop.f32.mrf.mxu2  ;;  %4707 = vmatpush.bf16.msra.mxu1 %v7836_v45  ;;  %v7672_v45 = vor.u32 %v8715_v4, %v7669_v17  ;;  %v8758_v4 = vld [vmem:[#allocation8 + $0xf24] sm:$0xf] }
 0x4ba   :  { %v3705_v39 = vadd.f32 %v3704_v34, %v9913_v47  ;;  %v7779_v47 = vld [vmem:[#allocation8 + $0xea8] sm:$0xf] }
 0x4bb   :  { %4676 = vmatmul.bf16.gmra.mxu3 %v9915_v43  ;;  %4733 = vmatmul.bf16.gmra.mxu2 %v9871_v31 }
 0x4bc   :  { %v3754_v37 = vpop.f32.mrf.mxu1  ;;  %4819 = vmatpush.bf16.msrb.mxu3 %v7620_v61  ;;  %4876 = vmatpush.bf16.msra.mxu2 %v7496_v53  ;;  %v7572_v61 = vor.u32 %v8693_v35, %v7571_v20  ;;  %v7811_v53 = vld [vmem:[#allocation8 + $0xee8] sm:$0xf]  ;;  %v9950_v35 = vperm.slane %v9822_v50, 3 }
 0x4bd   :  { %v3755_v30 = vadd.f32 %v3754_v37, %v3736_v56  ;;  %4764 = vmatpush.bf16.msrb.mxu0 %v7712_v21  ;;  %v7445_v37 = vld [vmem:[#allocation8 + $0xc18] sm:$0xf0]  ;;  %4708 = vmatpush.bf16.msra.mxu1 %v7820_v38  ;;  %v7812_v40 = vor.u32 %v8753_v60, %v7811_v53  ;;  %v3722_v56 = vadd.f32 %v9921_v15, %v3703_v5  ;;  %v8745_v21 = vld [vmem:[#allocation8 + $0xeb4] sm:$0xf0]  ;;  %v8703_v60 = vld [vmem:[#allocation8 + $0xd6c] sm:$0xf] }
 0x4be   :  { %v7448_v28 = vor.u32 %v8659_v62, %v7445_v37  ;;  %v8741_v38 = vld [vmem:[#allocation8 + $0xe94] sm:$0xf0]  ;;  %v7853_v5 = vld [vmem:[#allocation8 + $0xf50] sm:$0xf0] }
 0x4bf   :  { %v3842_v11 = vmax.f32 %v3755_v30, 0.0  ;;  %v3741_v30 = vadd.f32 %v9925_v3, %v3722_v56  ;;  %v9947_v59 = vpop.f32.mrf.mxu0  ;;  %v8770_v3 = vld [vmem:[#allocation8 + $0xf84] sm:$0xf]  ;;  %v8699_v56 = vld [vmem:[#allocation8 + $0xd4c] sm:$0xf] }
 0x4c0   :  { %4820 = vmatpush.bf16.msrb.mxu3 %v7604_v0  ;;  %4877 = vmatpush.bf16.msra.mxu2 %v7480_v10  ;;  %v7920_v0 = vor.u32 %v8778_v2, %v7917_v12  ;;  %v8749_v10 = vld [vmem:[#allocation8 + $0xed4] sm:$0xf0]  ;;  %v7731_v2 = vld [vmem:[#allocation8 + $0xe48] sm:$0xf] }
 0x4c1   :  { %4765 = vmatpush.bf16.msrb.mxu0 %v7696_v46  ;;  %4777 = vmatpush.bf16.msrb.mxu1 %v7936_v55  ;;  %v9940_v42 = vpop.f32.mrf.mxu2  ;;  %v7796_v57 = vor.u32 %v8749_v10, %v7795_v8  ;;  %v7637_v46 = vld [vmem:[#allocation8 + $0xd98] sm:$0xf0]  ;;  %v8737_v55 = vld [vmem:[#allocation8 + $0xe74] sm:$0xf0] }
 0x4c2   :  { %v7640_v37 = vor.u32 %v8707_v14, %v7637_v46  ;;  %v3774_v12 = vadd.f32 %v9940_v42, %v9950_v35 }
 0x4c4   :  { %v3756_v51 = vpop.f32.mrf.mxu1  ;;  %4821 = vmatpush.bf16.msrb.mxu3 %v7588_v48  ;;  %4878 = vmatpush.bf16.msra.mxu2 %v7464_v22  ;;  %v8711_v48 = vld [vmem:[#allocation8 + $0xdac] sm:$0xf] }
 0x4c5   :  { %v3757_v49 = vadd.f32 %v3756_v51, %v3738_v32  ;;  %v3724_v32 = vadd.f32 %v3723_v16, %v3705_v39  ;;  %4778 = vmatpush.bf16.msrb.mxu1 %v7920_v0  ;;  %v7904_v51 = vor.u32 %v8774_v52, %v7901_v29  ;;  %v7656_v22 = vor.u32 %v8711_v48, %v7653_v13  ;;  %v8733_v39 = vld [vmem:[#allocation8 + $0xe54] sm:$0xf0]  ;;  %v7605_v0 = vld [vmem:[#allocation8 + $0xd58] sm:$0xf0]  ;;  %v8754_v48 = vld [vmem:[#allocation8 + $0xf04] sm:$0xf] }
 0x4c6   :  { %v7732_v10 = vor.u32 %v8733_v39, %v7731_v2  ;;  %v7608_v52 = vor.u32 %v8699_v56, %v7605_v0  ;;  %v7821_v13 = vld [vmem:[#allocation8 + $0xf10] sm:$0xf0]  ;;  %v8743_v0 = vld [vmem:[#allocation8 + $0xeac] sm:$0xf] }
 0x4c7   :  { %v3846_v25 = vmax.f32 %v3757_v49, 0.0  ;;  %v3743_v34 = vadd.f32 %v3742_v44, %v3724_v32  ;;  %v7780_v49 = vor.u32 %v8745_v21, %v7779_v47  ;;  %v7764_v44 = vor.u32 %v8741_v38, %v7763_v33  ;;  %v3813_v27 = vpop.f32.mrf.mxu0  ;;  %v7573_v38 = vld [vmem:[#allocation8 + $0xd18] sm:$0xf0] }
 0x4c8   :  { %4822 = vmatpush.bf16.msrb.mxu3 %v7572_v61  ;;  %4879 = vmatpush.bf16.msra.mxu2 %v7448_v28  ;;  %v3794_v61 = vpop.f32.mrf.mxu3  ;;  %v8766_v28 = vld [vmem:[#allocation8 + $0xf64] sm:$0xf]  ;;  %v3793_v32 = vadd.f32 %v9944_v63, %v3774_v12  ;;  %v8725_v63 = vld [vmem:[#allocation8 + $0xe14] sm:$0xf0]  ;;  %v7797_v12 = vld [vmem:[#allocation8 + $0xed8] sm:$0xf0] }
 0x4c9   :  { %v9933_v19 = vpack.c.bf16 %v3846_v25, %v3842_v11  ;;  %4779 = vmatpush.bf16.msrb.mxu1 %v7904_v51  ;;  %v7888_v25 = vor.u32 %v8770_v3, %v7885_v24  ;;  %v3775_v20 = vpop.f32.mrf.mxu2  ;;  %v7872_v53 = vor.u32 %v8766_v28, %v7869_v58  ;;  %v8751_v28 = vld [vmem:[#allocation8 + $0xeec] sm:$0xf] }
 0x4ca   :  { %v3776_v17 = vadd.f32 %v3775_v20, %v9950_v35  ;;  %v3812_v42 = vadd.f32 %v9947_v59, %v3793_v32  ;;  %v7824_v59 = vor.u32 %v8754_v48, %v7821_v13 }
 0x4cb   :  { %4690 = vmatmul.bf16.vlgmr.msra.gmra.mxu0 %v9933_v19  ;;  %4747 = vmatmul.bf16.vlgmr.msra.gmra.mxu3 %v9892_v36 }
 0x4cc   :  { %4804 = vmatmul.bf16.vlgmr.msrb.gmra.mxu2 %v9847_v18  ;;  %v3759_v9 = vpop.f32.mrf.mxu1  ;;  %4834 = vmatpush.bf16.msra.mxu0 %v7812_v40  ;;  %v7624_v40 = vor.u32 %v8703_v60, %v7621_v26  ;;  %v3795_v29 = vadd.f32 %v3794_v61, %v3776_v17  ;;  %v8785_v61 = vld [vmem:[#allocation8 + $0xff4] sm:$0xf0] }
 0x4cd   :  { %4891 = vmatpush.bf16.msra.mxu3 %v7688_v6  ;;  %v3760_v15 = vadd.f32 %v3759_v9, %v3741_v30  ;;  %4780 = vmatpush.bf16.msrb.mxu1 %v7888_v25  ;;  %v7748_v9 = vor.u32 %v8737_v55, %v7747_v54  ;;  %v8762_v6 = vld [vmem:[#allocation8 + $0xf44] sm:$0xf]  ;;  %v7715_v30 = vld [vmem:[#allocation8 + $0xe28] sm:$0xf]  ;;  %v8691_v25 = vld [vmem:[#allocation8 + $0xd0c] sm:$0xf] }
 0x4ce   :  { %v7856_v8 = vor.u32 %v8762_v6, %v7853_v5  ;;  %v7576_v46 = vor.u32 %v8691_v25, %v7573_v38  ;;  %v7813_v54 = vld [vmem:[#allocation8 + $0xef8] sm:$0xf0]  ;;  %v7843_v25 = vld [vmem:[#allocation8 + $0xf28] sm:$0xf]  ;;  %v8761_v38 = vld [vmem:[#allocation8 + $0xf34] sm:$0xf0] }
 0x4cf   :  { %v3850_v41 = vmax.f32 %v3760_v15, 0.0  ;;  %v7589_v15 = vld [vmem:[#allocation8 + $0xd38] sm:$0xf0]  ;;  %v7816_v60 = vor.u32 %v8751_v28, %v7813_v54  ;;  %v8757_v28 = vld [vmem:[#allocation8 + $0xf14] sm:$0xf0] }
 0x4d0   :  { %4835 = vmatpush.bf16.msra.mxu0 %v7796_v57  ;;  %v7837_v57 = vld [vmem:[#allocation8 + $0xf30] sm:$0xf0] }
 0x4d1   :  { %4892 = vmatpush.bf16.msra.mxu3 %v7672_v45  ;;  %4781 = vmatpush.bf16.msrb.mxu1 %v7872_v53  ;;  %v8729_v45 = vld [vmem:[#allocation8 + $0xe34] sm:$0xf0]  ;;  %v7840_v47 = vor.u32 %v8758_v4, %v7837_v57  ;;  %v3778_v51 = vpop.f32.mrf.mxu2 }
 0x4d2   :  { %v7716_v21 = vor.u32 %v8729_v45, %v7715_v30  ;;  %v3779_v26 = vadd.f32 %v3778_v51, %v9950_v35 }
 0x4d4   :  { %v3761_v7 = vpop.f32.mrf.mxu1  ;;  %4836 = vmatpush.bf16.msra.mxu0 %v7780_v49 }
 0x4d5   :  { %v3762_v16 = vadd.f32 %v3761_v7, %v3743_v34  ;;  %4893 = vmatpush.bf16.msra.mxu3 %v7656_v22  ;;  %4782 = vmatpush.bf16.msrb.mxu1 %v7856_v8  ;;  %v8695_v34 = vld [vmem:[#allocation8 + $0xd2c] sm:$0xf]  ;;  %v3814_v7 = vadd.f32 %v3813_v27, %v3795_v29  ;;  %v7699_v22 = vld [vmem:[#allocation8 + $0xe08] sm:$0xf] }
 0x4d6   :  { %v7592_v24 = vor.u32 %v8695_v34, %v7589_v15  ;;  %v7907_v8 = vld [vmem:[#allocation8 + $0xfa8] sm:$0xf] }
 0x4d7   :  { %v3854_v11 = vmax.f32 %v3762_v16, 0.0  ;;  %v3797_v16 = vpop.f32.mrf.mxu3 }
 0x4d8   :  { %4837 = vmatpush.bf16.msra.mxu0 %v7764_v44  ;;  %v3798_v5 = vadd.f32 %v3797_v16, %v3779_v26  ;;  %v7749_v16 = vld [vmem:[#allocation8 + $0xe78] sm:$0xf0] }
 0x4d9   :  { %v9952_v62 = vpack.c.bf16 %v3854_v11, %v3850_v41  ;;  %4894 = vmatpush.bf16.msra.mxu3 %v7640_v37  ;;  %4783 = vmatpush.bf16.msrb.mxu1 %v7840_v47  ;;  %v3816_v41 = vpop.f32.mrf.mxu0  ;;  %v7700_v11 = vor.u32 %v8725_v63, %v7699_v22  ;;  %v7939_v37 = vld [vmem:[#allocation8 + $0xfe8] sm:$0xf]  ;;  %v3780_v53 = vpop.f32.mrf.mxu2  ;;  %v8739_v47 = vld [vmem:[#allocation8 + $0xe8c] sm:$0xf]  ;;  %v7941_v26 = vld [vmem:[#allocation8 + $0xff8] sm:$0xf0] }
 0x4da   :  { %v7940_v58 = vor.u32 %v8785_v61, %v7939_v37  ;;  %v3781_v6 = vadd.f32 %v3780_v53, %v9950_v35  ;;  %v3817_v57 = vadd.f32 %v3816_v41, %v3798_v5  ;;  %v7891_v35 = vld [vmem:[#allocation8 + $0xf88] sm:$0xf]  ;;  %v8735_v22 = vld [vmem:[#allocation8 + $0xe6c] sm:$0xf]  ;;  %v7844_v37 = vor.u32 %v8761_v38, %v7843_v25  ;;  %v7701_v53 = vld [vmem:[#allocation8 + $0xe18] sm:$0xf0] }
 0x4db   :  { %4695 = vmatmul.bf16.gmra.mxu0 %v9952_v62  ;;  %4752 = vmatmul.bf16.gmra.mxu3 %v9915_v43  ;;  %v7909_v5 = vld [vmem:[#allocation8 + $0xfb8] sm:$0xf0] }
 0x4dc   :  { %4809 = vmatmul.bf16.gmra.mxu2 %v9871_v31  ;;  %v3830_v50 = vpop.f32.mrf.mxu1  ;;  %4838 = vmatpush.bf16.msra.mxu0 %v7748_v9  ;;  %v8781_v9 = vld [vmem:[#allocation8 + $0xfd4] sm:$0xf0] }
 0x4dd   :  { %4895 = vmatpush.bf16.msra.mxu3 %v7624_v40  ;;  %v3831_v49 = vadd.f32 %v3830_v50, %v3812_v42  ;;  %4784 = vmatpush.bf16.msrb.mxu1 %v7824_v59  ;;  %v7923_v50 = vld [vmem:[#allocation8 + $0xfc8] sm:$0xf]  ;;  %v8747_v40 = vld [vmem:[#allocation8 + $0xecc] sm:$0xf]  ;;  %v8773_v42 = vld [vmem:[#allocation8 + $0xf94] sm:$0xf0] }
 0x4de   :  { %v7924_v2 = vor.u32 %v8781_v9, %v7923_v50  ;;  %v7800_v56 = vor.u32 %v8747_v40, %v7797_v12  ;;  %v7892_v51 = vor.u32 %v8773_v42, %v7891_v35  ;;  %v8731_v59 = vld [vmem:[#allocation8 + $0xe4c] sm:$0xf]  ;;  %v7925_v9 = vld [vmem:[#allocation8 + $0xfd8] sm:$0xf0] }
 0x4df   :  { %v3843_v14 = vmax.f32 %v3831_v49, 0.0  ;;  %v3799_v27 = vpop.f32.mrf.mxu3  ;;  %v8769_v49 = vld [vmem:[#allocation8 + $0xf74] sm:$0xf0]  ;;  %v8779_v50 = vld [vmem:[#allocation8 + $0xfcc] sm:$0xf] }
 0x4e0   :  { %4839 = vmatpush.bf16.msra.mxu0 %v7732_v10  ;;  %v7781_v10 = vld [vmem:[#allocation8 + $0xeb8] sm:$0xf0]  ;;  %v3800_v4 = vadd.f32 %v3799_v27, %v3781_v6  ;;  %v7928_v40 = vor.u32 %v8779_v50, %v7925_v9  ;;  %v8775_v6 = vld [vmem:[#allocation8 + $0xfac] sm:$0xf] }
 0x4e1   :  { %4896 = vmatpush.bf16.msra.mxu3 %v7608_v52  ;;  %v3818_v39 = vpop.f32.mrf.mxu0  ;;  %v7784_v32 = vor.u32 %v8743_v0, %v7781_v10  ;;  %v8771_v12 = vld [vmem:[#allocation8 + $0xf8c] sm:$0xf]  ;;  %v7861_v10 = vld [vmem:[#allocation8 + $0xf58] sm:$0xf0] }
 0x4e2   :  { %v3819_v30 = vadd.f32 %v3818_v39, %v3800_v4  ;;  %v8763_v0 = vld [vmem:[#allocation8 + $0xf4c] sm:$0xf] }
 0x4e3   :  { %v7864_v4 = vor.u32 %v8763_v0, %v7861_v10 }
 0x4e4   :  { %v3832_v3 = vpop.f32.mrf.mxu1  ;;  %4840 = vmatpush.bf16.msra.mxu0 %v7716_v21  ;;  %v7765_v21 = vld [vmem:[#allocation8 + $0xe98] sm:$0xf0] }
 0x4e5   :  { %v3833_v33 = vadd.f32 %v3832_v3, %v3814_v7  ;;  %4897 = vmatpush.bf16.msra.mxu3 %v7592_v24  ;;  %v7768_v48 = vor.u32 %v8739_v47, %v7765_v21  ;;  %v7875_v7 = vld [vmem:[#allocation8 + $0xf68] sm:$0xf]  ;;  %v7752_v3 = vor.u32 %v8735_v22, %v7749_v16 }
 0x4e6   :  { %v7876_v63 = vor.u32 %v8769_v49, %v7875_v7  ;;  %v7859_v24 = vld [vmem:[#allocation8 + $0xf48] sm:$0xf] }
 0x4e7   :  { %v3847_v20 = vmax.f32 %v3833_v33, 0.0  ;;  %v8765_v33 = vld [vmem:[#allocation8 + $0xf54] sm:$0xf0] }
 0x4e8   :  { %4841 = vmatpush.bf16.msra.mxu0 %v7700_v11  ;;  %v7860_v41 = vor.u32 %v8765_v33, %v7859_v24  ;;  %v7733_v11 = vld [vmem:[#allocation8 + $0xe58] sm:$0xf0] }
 0x4e9   :  { %v9962_v44 = vpack.c.bf16 %v3847_v20, %v3843_v14  ;;  %4898 = vmatpush.bf16.msra.mxu3 %v7576_v46  ;;  %v7736_v14 = vor.u32 %v8731_v59, %v7733_v11  ;;  %v8727_v20 = vld [vmem:[#allocation8 + $0xe2c] sm:$0xf]  ;;  %v7717_v46 = vld [vmem:[#allocation8 + $0xe38] sm:$0xf0] }
 0x4ea   :  { %v7720_v61 = vor.u32 %v8727_v20, %v7717_v46 }
 0x4eb   :  { %4709 = vmatmul.bf16.vlgmr.msra.gmra.mxu1 %v9962_v44  ;;  %4766 = vmatmul.bf16.vlgmr.msrb.gmra.mxu0 %v9933_v19 }
 0x4ec   :  { %4823 = vmatmul.bf16.vlgmr.msrb.gmra.mxu3 %v9892_v36  ;;  %4880 = vmatmul.bf16.vlgmr.msra.gmra.mxu2 %v9847_v18  ;;  %v3835_v55 = vpop.f32.mrf.mxu1  ;;  %v8777_v18 = vld [vmem:[#allocation8 + $0xfb4] sm:$0xf0] }
 0x4ed   :  { %4853 = vmatpush.bf16.msra.mxu1 %v7940_v58  ;;  %4910 = vmatpush.bf16.msrb.mxu0 %v7816_v60  ;;  %v7908_v17 = vor.u32 %v8777_v18, %v7907_v8  ;;  %v3836_v45 = vadd.f32 %v3835_v55, %v3817_v57  ;;  %v8723_v58 = vld [vmem:[#allocation8 + $0xe0c] sm:$0xf]  ;;  %v7893_v8 = vld [vmem:[#allocation8 + $0xf98] sm:$0xf0] }
 0x4ee   :  { %v7704_v55 = vor.u32 %v8723_v58, %v7701_v53  ;;  %v8783_v60 = vld [vmem:[#allocation8 + $0xfec] sm:$0xf]  ;;  %v7896_v39 = vor.u32 %v8771_v12, %v7893_v8  ;;  %v7877_v18 = vld [vmem:[#allocation8 + $0xf78] sm:$0xf0] }
 0x4ef   :  { %v3851_v34 = vmax.f32 %v3836_v45, 0.0  ;;  %v7944_v27 = vor.u32 %v8783_v60, %v7941_v26  ;;  %v8759_v57 = vld [vmem:[#allocation8 + $0xf2c] sm:$0xf]  ;;  %v7829_v45 = vld [vmem:[#allocation8 + $0xf18] sm:$0xf0] }
 0x4f1   :  { %4854 = vmatpush.bf16.msra.mxu1 %v7924_v2  ;;  %4911 = vmatpush.bf16.msrb.mxu0 %v7800_v56  ;;  %v7912_v2 = vor.u32 %v8775_v6, %v7909_v5  ;;  %v8767_v56 = vld [vmem:[#allocation8 + $0xf6c] sm:$0xf] }
 0x4f4   :  { %v3837_v52 = vpop.f32.mrf.mxu1 }
 0x4f5   :  { %v3838_v29 = vadd.f32 %v3837_v52, %v3819_v30  ;;  %4855 = vmatpush.bf16.msra.mxu1 %v7908_v17  ;;  %4912 = vmatpush.bf16.msrb.mxu0 %v7784_v32  ;;  %v7845_v17 = vld [vmem:[#allocation8 + $0xf38] sm:$0xf0]  ;;  %v8755_v30 = vld [vmem:[#allocation8 + $0xf0c] sm:$0xf] }
 0x4f6   :  { %v7848_v32 = vor.u32 %v8759_v57, %v7845_v17  ;;  %v7832_v52 = vor.u32 %v8755_v30, %v7829_v45 }
 0x4f7   :  { %v3855_v15 = vmax.f32 %v3838_v29, 0.0 }
 0x4f9   :  { %v9970_v13 = vpack.c.bf16 %v3855_v15, %v3851_v34  ;;  %4856 = vmatpush.bf16.msra.mxu1 %v7892_v51  ;;  %4913 = vmatpush.bf16.msrb.mxu0 %v7768_v48 }
 0x4fb   :  { %4714 = vmatmul.bf16.gmra.mxu1 %v9970_v13  ;;  %4771 = vmatmul.bf16.gmra.mxu0 %v9952_v62 }
 0x4fc   :  { %4828 = vmatmul.bf16.gmra.mxu3 %v9915_v43  ;;  %4885 = vmatmul.bf16.gmra.mxu2 %v9871_v31  ;;  %v7827_v31 = vld [vmem:[#allocation8 + $0xf08] sm:$0xf] }
 0x4fd   :  { %4857 = vmatpush.bf16.msra.mxu1 %v7876_v63  ;;  %4914 = vmatpush.bf16.msrb.mxu0 %v7752_v3  ;;  %v7828_v54 = vor.u32 %v8757_v28, %v7827_v31  ;;  %v9988_v3 = vld [vmem:[#allocation13 + $0x4] ss:$8 sm:$0xf] }
 0x4fe   :  { %v3996_v33 = vperm.slane %v9988_v3, 0  ;;  %v3997_v17 = vperm.slane %v9988_v3, 1 }
 0x501   :  { %4858 = vmatpush.bf16.msra.mxu1 %v7860_v41  ;;  %4915 = vmatpush.bf16.msrb.mxu0 %v7736_v14 }
 0x505   :  { %4859 = vmatpush.bf16.msra.mxu1 %v7844_v37  ;;  %4916 = vmatpush.bf16.msrb.mxu0 %v7720_v61 }
 0x509   :  { %4860 = vmatpush.bf16.msra.mxu1 %v7828_v54  ;;  %4917 = vmatpush.bf16.msrb.mxu0 %v7704_v55 }
 0x50b   :  { %4785 = vmatmul.bf16.vlgmr.msrb.gmra.mxu1 %v9962_v44  ;;  %4842 = vmatmul.bf16.vlgmr.msra.gmra.mxu0 %v9933_v19 }
 0x50c   :  { %4899 = vmatmul.bf16.vlgmr.msra.gmra.mxu3 %v9892_v36  ;;  %v7880_v36 = vor.u32 %v8767_v56, %v7877_v18 }
 0x50d   :  { %4929 = vmatpush.bf16.msrb.mxu1 %v7944_v27 }
 0x511   :  { %4930 = vmatpush.bf16.msrb.mxu1 %v7928_v40 }
 0x515   :  { %4931 = vmatpush.bf16.msrb.mxu1 %v7912_v2 }
 0x519   :  { %4932 = vmatpush.bf16.msrb.mxu1 %v7896_v39 }
 0x51b   :  { %4790 = vmatmul.bf16.gmra.mxu1 %v9970_v13  ;;  %4847 = vmatmul.bf16.gmra.mxu0 %v9952_v62 }
 0x51c   :  { %4904 = vmatmul.bf16.gmra.mxu3 %v9915_v43  ;;  %v4653_v43 = vpop.f32.mrf.mxu2 }
 0x51d   :  { %4933 = vmatpush.bf16.msrb.mxu1 %v7880_v36  ;;  %v4654_v14 = vadd.f32 %v4653_v43, %v3996_v33 }
 0x521   :  { %4934 = vmatpush.bf16.msrb.mxu1 %v7864_v4 }
 0x524   :  { %v4655_v42 = vpop.f32.mrf.mxu2 }
 0x525   :  { %4935 = vmatpush.bf16.msrb.mxu1 %v7848_v32  ;;  %v4656_v25 = vadd.f32 %v4655_v42, %v3996_v33 }
 0x529   :  { %4936 = vmatpush.bf16.msrb.mxu1 %v7832_v52 }
 0x52b   :  { %4861 = vmatmul.bf16.vlgmr.msra.gmra.mxu1 %v9962_v44  ;;  %4918 = vmatmul.bf16.vlgmr.msrb.gmra.mxu0 %v9933_v19 }
 0x52c   :  { %v4658_v15 = vpop.f32.mrf.mxu2 }
 0x52d   :  { %v4659_v11 = vadd.f32 %v4658_v15, %v3996_v33 }
 0x52e   :  { %v4672_v29 = vpop.f32.mrf.mxu3 }
 0x52f   :  { %v4673_v31 = vadd.f32 %v4672_v29, %v4654_v14 }
 0x534   :  { %v4660_v48 = vpop.f32.mrf.mxu2 }
 0x535   :  { %v4661_v38 = vadd.f32 %v4660_v48, %v3996_v33 }
 0x536   :  { %v4674_v47 = vpop.f32.mrf.mxu3 }
 0x537   :  { %v4675_v20 = vadd.f32 %v4674_v47, %v4656_v25 }
 0x53b   :  { %4866 = vmatmul.bf16.gmra.mxu1 %v9970_v13  ;;  %4923 = vmatmul.bf16.gmra.mxu0 %v9952_v62 }
 0x53c   :  { %v4729_v22 = vpop.f32.mrf.mxu2 }
 0x53d   :  { %v4730_v29 = vadd.f32 %v4729_v22, %v3997_v17 }
 0x53e   :  { %v4677_v51 = vpop.f32.mrf.mxu3 }
 0x544   :  { %v4731_v24 = vpop.f32.mrf.mxu2 }
 0x545   :  { %v4732_v45 = vadd.f32 %v4731_v24, %v3997_v17 }
 0x546   :  { %v4679_v7 = vpop.f32.mrf.mxu3 }
 0x547   :  { %v4680_v46 = vadd.f32 %v4679_v7, %v4661_v38 }
 0x548   :  { %v4691_v35 = vpop.f32.mrf.mxu0 }
 0x549   :  { %v4692_v60 = vadd.f32 %v4691_v35, %v4673_v31 }
 0x54b   :  { %4937 = vmatmul.bf16.vlgmr.msrb.gmra.mxu1 %v9962_v44 }
 0x54c   :  { %v4734_v61 = vpop.f32.mrf.mxu2 }
 0x54d   :  { %v4735_v30 = vadd.f32 %v4734_v61, %v3997_v17 }
 0x54e   :  { %v4748_v63 = vpop.f32.mrf.mxu3 }
 0x54f   :  { %v4749_v15 = vadd.f32 %v4748_v63, %v4730_v29 }
 0x550   :  { %v4693_v34 = vpop.f32.mrf.mxu0 }
 0x551   :  { %v4694_v28 = vadd.f32 %v4693_v34, %v4675_v20 }
 0x554   :  { %v4736_v8 = vpop.f32.mrf.mxu2 }
 0x555   :  { %v4737_v52 = vadd.f32 %v4736_v8, %v3997_v17 }
 0x556   :  { %v4750_v44 = vpop.f32.mrf.mxu3 }
 0x557   :  { %v4751_v42 = vadd.f32 %v4750_v44, %v4732_v45 }
 0x558   :  { %v4696_v21 = vpop.f32.mrf.mxu0 }
 0x55b   :  { %4942 = vmatmul.bf16.gmra.mxu1 %v9970_v13  ;;  %v4678_v13 = vadd.f32 %v4677_v51, %v4659_v11 }
 0x55c   :  { %v4805_v10 = vpop.f32.mrf.mxu2 }
 0x55d   :  { %v4697_v37 = vadd.f32 %v4696_v21, %v4678_v13  ;;  %v8886_v21 = vld [vmem:[#allocation5] ss:$0 sm:$0xff] }
 0x55e   :  { %v4753_v53 = vpop.f32.mrf.mxu3  ;;  %vm210_vm11 = vcmp.eq.s32.totalorder %v9215_v1, %v8886_v21 }
 0x55f   :  { %v4754_v43 = vadd.f32 %v4753_v53, %v4735_v30  ;;  %v5856_v11 = vsel %vm210_vm11, 1.0, %v9140_v23 }
 0x560   :  { %v4698_v19 = vpop.f32.mrf.mxu0  ;;  %v214_v22 = vsel %vm213_vm12, %v5856_v11, 0.0  ;;  %v9996_v63 = vpack.c.bf16 %v5856_v11, %v5856_v11  ;;  %v8799_v11 = vld [vmem:[#allocation10 + $0x64] sm:$0xf0] }
 0x561   :  { %v4699_v58 = vadd.f32 %v4698_v19, %v4680_v46  ;;  %215 = vadd.xlane.f32.xlu0 %v214_v22  ;;  %v8063_v22 = vld [vmem:[#allocation10 + $0xe0] sm:$0xf] }
 0x564   :  { %v4807_v35 = vpop.f32.mrf.mxu2 }
 0x566   :  { %v4755_v18 = vpop.f32.mrf.mxu3 }
 0x567   :  { %v4756_v47 = vadd.f32 %v4755_v18, %v4737_v52 }
 0x568   :  { %v4710_v49 = vpop.f32.mrf.mxu1  ;;  %v4767_v62 = vpop.f32.mrf.mxu0 }
 0x569   :  { %v4711_v9 = vadd.f32 %v4710_v49, %v4692_v60  ;;  %v4768_v49 = vadd.f32 %v4767_v62, %v4749_v15  ;;  %v8801_v15 = vld [vmem:[#allocation10 + $0x74] sm:$0xf0] }
 0x56b   :  { %v4948_v12 = vmax.f32 %v4711_v9, 0.0 }
 0x56c   :  { %v4810_v14 = vpop.f32.mrf.mxu2 }
 0x56f   :  { %v4824_v4 = vpop.f32.mrf.mxu3 }
 0x570   :  { %v4712_v16 = vpop.f32.mrf.mxu1  ;;  %v4769_v59 = vpop.f32.mrf.mxu0 }
 0x571   :  { %v4713_v26 = vadd.f32 %v4712_v16, %v4694_v28  ;;  %v4770_v48 = vadd.f32 %v4769_v59, %v4751_v42 }
 0x573   :  { %v4952_v5 = vmax.f32 %v4713_v26, 0.0 }
 0x575   :  { %v4964_v56 = vpack.c.bf16 %v4952_v5, %v4948_v12 }
 0x577   :  { %v4826_v51 = vpop.f32.mrf.mxu3 }
 0x578   :  { %v4715_v41 = vpop.f32.mrf.mxu1  ;;  %v4772_v50 = vpop.f32.mrf.mxu0 }
 0x579   :  { %v4716_v54 = vadd.f32 %v4715_v41, %v4697_v37  ;;  %v4773_v34 = vadd.f32 %v4772_v50, %v4754_v43  ;;  %v4812_v37 = vpop.f32.mrf.mxu2 }
 0x57b   :  { %v4956_v40 = vmax.f32 %v4716_v54, 0.0 }
 0x57f   :  { %v4829_v1 = vpop.f32.mrf.mxu3 }
 0x580   :  { %v4717_v55 = vpop.f32.mrf.mxu1  ;;  %v4774_v36 = vpop.f32.mrf.mxu0 }
 0x581   :  { %v4718_v27 = vadd.f32 %v4717_v55, %v4699_v58  ;;  %v4775_v7 = vadd.f32 %v4774_v36, %v4756_v47  ;;  %v3998_v58 = vperm.slane %v9988_v3, 2  ;;  %v10003_v55 = vpop.f32.mrf.mxu2 }
 0x583   :  { %v4960_v6 = vmax.f32 %v4718_v27, 0.0  ;;  %v4811_v53 = vadd.f32 %v4810_v14, %v3998_v58  ;;  %v4808_v60 = vadd.f32 %v4807_v35, %v3998_v58  ;;  %v4813_v26 = vadd.f32 %v4812_v37, %v3998_v58  ;;  %v8119_v37 = vld [vmem:[#allocation10 + $0x150] sm:$0xf] }
 0x584   :  { %v4806_v9 = vadd.f32 %v4805_v10, %v3998_v58 }
 0x585   :  { %v4968_v2 = vpack.c.bf16 %v4960_v6, %v4956_v40  ;;  %v4830_v27 = vadd.f32 %v4829_v1, %v4811_v53  ;;  %v4827_v40 = vadd.f32 %v4826_v51, %v4808_v60  ;;  %v8071_v51 = vld [vmem:[#allocation10 + $0xf0] sm:$0xf]  ;;  %v7983_v53 = vld [vmem:[#allocation10 + $0x40] sm:$0xf]  ;;  %v8795_v60 = vld [vmem:[#allocation10 + $0x44] sm:$0xf0] }
 0x586   :  { %v4825_v12 = vadd.f32 %v4824_v4, %v4806_v9  ;;  %v7991_v1 = vld [vmem:[#allocation10 + $0x50] sm:$0xf]  ;;  %v8111_v9 = vld [vmem:[#allocation10 + $0x140] sm:$0xf] }
 0x587   :  { %4981 = vmatpush.bf16.msrb.mxu2 %v4968_v2  ;;  %v4831_v31 = vpop.f32.mrf.mxu3 }
 0x588   :  { %v4786_v39 = vpop.f32.mrf.mxu1  ;;  %v9991_v57 = vpop.f32.mrf.mxu0  ;;  %v4832_v6 = vadd.f32 %v4831_v31, %v4813_v26  ;;  %v3999_v31 = vperm.slane %v9988_v3, 3  ;;  %v8047_v26 = vld [vmem:[#allocation10 + $0xc0] sm:$0xf] }
 0x589   :  { %v4787_v44 = vadd.f32 %v4786_v39, %v4768_v49  ;;  %v4844_v36 = vadd.f32 %v9991_v57, %v4825_v12  ;;  %v10010_v52 = vpop.f32.mrf.mxu2 }
 0x58b   :  { %4982 = vmatpush.bf16.msrb.mxu2 %v4964_v56  ;;  %v4949_v62 = vmax.f32 %v4787_v44, 0.0 }
 0x58e   :  { %7945 = vmatmul.msk.bf16.vlgmr.msrb.gmra.mxu2 %vm366_vm10, %v9996_v63 }
 0x58f   :  { %v10005_v50 = vpop.f32.mrf.mxu3 }
 0x590   :  { %v4788_v0 = vpop.f32.mrf.mxu1  ;;  %v4845_v16 = vpop.f32.mrf.mxu0 }
 0x591   :  { %v4789_v41 = vadd.f32 %v4788_v0, %v4770_v48  ;;  %v4846_v8 = vadd.f32 %v4845_v16, %v4827_v40  ;;  %v4886_v57 = vpop.f32.mrf.mxu2  ;;  %v8817_v48 = vld [vmem:[#allocation10 + $0xf4] sm:$0xf0]  ;;  %v8827_v40 = vld [vmem:[#allocation10 + $0x144] sm:$0xf0] }
 0x592   :  { %v4887_v12 = vadd.f32 %v4886_v57, %v3999_v31 }
 0x593   :  { %v4953_v59 = vmax.f32 %v4789_v41, 0.0 }
 0x595   :  { %v4965_v46 = vpack.c.bf16 %v4953_v59, %v4949_v62  ;;  %v8831_v59 = vld [vmem:[#allocation10 + $0x164] sm:$0xf0] }
 0x597   :  { %v10012_v29 = vpop.f32.mrf.mxu3 }
 0x598   :  { %v4791_v32 = vpop.f32.mrf.mxu1  ;;  %v4848_v23 = vpop.f32.mrf.mxu0 }
 0x599   :  { %v4792_v19 = vadd.f32 %v4791_v32, %v4773_v34  ;;  %v4849_v5 = vadd.f32 %v4848_v23, %v4830_v27  ;;  %v8007_v34 = vld [vmem:[#allocation10 + $0x70] sm:$0xf]  ;;  %v8813_v23 = vld [vmem:[#allocation10 + $0xd4] sm:$0xf0]  ;;  %v8811_v27 = vld [vmem:[#allocation10 + $0xc4] sm:$0xf0] }
 0x59a   :  { %v8008_v21 = vor.u32 %v8801_v15, %v8007_v34  ;;  %v8048_v3 = vor.u32 %v8811_v27, %v8047_v26  ;;  %v8087_v26 = vld [vmem:[#allocation10 + $0x110] sm:$0xf]  ;;  %v8821_v27 = vld [vmem:[#allocation10 + $0x114] sm:$0xf0] }
 0x59b   :  { %v4957_v25 = vmax.f32 %v4792_v19, 0.0  ;;  %v8833_v19 = vld [vmem:[#allocation10 + $0x174] sm:$0xf0] }
 0x59c   :  { %5440 = vmatpush.bf16.msra.mxu1 %v8008_v21 }
 0x59f   :  { %v4905_v49 = vpop.f32.mrf.mxu3 }
 0x5a0   :  { %v4793_v33 = vpop.f32.mrf.mxu1  ;;  %v4850_v28 = vpop.f32.mrf.mxu0 }
 0x5a1   :  { %v4794_v24 = vadd.f32 %v4793_v33, %v4775_v7  ;;  %v4851_v39 = vadd.f32 %v4850_v28, %v4832_v6  ;;  %v8135_v7 = vld [vmem:[#allocation10 + $0x170] sm:$0xf]  ;;  %v8072_v33 = vor.u32 %v8817_v48, %v8071_v51  ;;  %v4888_v6 = vpop.f32.mrf.mxu2 }
 0x5a2   :  { %v8136_v41 = vor.u32 %v8833_v19, %v8135_v7 }
 0x5a3   :  { %v4961_v38 = vmax.f32 %v4794_v24, 0.0  ;;  %v7999_v24 = vld [vmem:[#allocation10 + $0x60] sm:$0xf] }
 0x5a4   :  { %v8000_v44 = vor.u32 %v8799_v11, %v7999_v24 }
 0x5a5   :  { %v4969_v13 = vpack.c.bf16 %v4961_v38, %v4957_v25  ;;  %v8815_v25 = vld [vmem:[#allocation10 + $0xe4] sm:$0xf0]  ;;  %v8127_v38 = vld [vmem:[#allocation10 + $0x160] sm:$0xf] }
 0x5a6   :  { %v8064_v14 = vor.u32 %v8815_v25, %v8063_v22  ;;  %v8128_v62 = vor.u32 %v8831_v59, %v8127_v38  ;;  %5441 = vmatpush.bf16.msra.mxu1 %v8000_v44  ;;  %v8849_v38 = vld [vmem:[#allocation10 + $0x1f4] sm:$0xf0] }
 0x5a7   :  { %4994 = vmatpush.bf16.msrb.mxu3 %v4969_v13 }
 0x5a8   :  { %v4862_v20 = vpop.f32.mrf.mxu1  ;;  %v10007_v2 = vpop.f32.mrf.mxu0 }
 0x5a9   :  { %v4863_v32 = vadd.f32 %v4862_v20, %v4844_v36  ;;  %v8797_v20 = vld [vmem:[#allocation10 + $0x54] sm:$0xf0] }
 0x5aa   :  { %v7992_v28 = vor.u32 %v8797_v20, %v7991_v1  ;;  %v8793_v36 = vld [vmem:[#allocation10 + $0x34] sm:$0xf0]  ;;  %v8095_v1 = vld [vmem:[#allocation10 + $0x120] sm:$0xf]  ;;  %v8823_v20 = vld [vmem:[#allocation10 + $0x124] sm:$0xf0] }
 0x5ab   :  { %4995 = vmatpush.bf16.msrb.mxu3 %v4965_v46  ;;  %v4950_v35 = vmax.f32 %v4863_v32, 0.0  ;;  %v8055_v46 = vld [vmem:[#allocation10 + $0xd0] sm:$0xf]  ;;  %v4889_v32 = vadd.f32 %v4888_v6, %v3999_v31  ;;  %v8845_v6 = vld [vmem:[#allocation10 + $0x1d4] sm:$0xf0] }
 0x5ac   :  { %v8056_v58 = vor.u32 %v8813_v23, %v8055_v46  ;;  %5442 = vmatpush.bf16.msra.mxu1 %v7992_v28  ;;  %v8096_v23 = vor.u32 %v8823_v20, %v8095_v1 }
 0x5ae   :  { %7946 = vmatmul.msk.bf16.vlgmr.msrb.gmra.mxu3 %vm366_vm10, %v9996_v63 }
 0x5af   :  { %5453 = vmatpush.bf16.msra.mxu3 %v8072_v33 }
 0x5b0   :  { %v4864_v61 = vpop.f32.mrf.mxu1  ;;  %v10014_v4 = vpop.f32.mrf.mxu0 }
 0x5b1   :  { %v4865_v0 = vadd.f32 %v4864_v61, %v4846_v8  ;;  %v8829_v61 = vld [vmem:[#allocation10 + $0x154] sm:$0xf0]  ;;  %v7984_v8 = vor.u32 %v8795_v60, %v7983_v53 }
 0x5b2   :  { %v8805_v53 = vld [vmem:[#allocation10 + $0x94] sm:$0xf0] }
 0x5b3   :  { %v4954_v10 = vmax.f32 %v4865_v0, 0.0  ;;  %5454 = vmatpush.bf16.msra.mxu3 %v8064_v14  ;;  %v8039_v0 = vld [vmem:[#allocation10 + $0xb0] sm:$0xf]  ;;  %5443 = vmatpush.bf16.msra.mxu1 %v7984_v8  ;;  %v8031_v14 = vld [vmem:[#allocation10 + $0xa0] sm:$0xf] }
 0x5b5   :  { %v4966_v47 = vpack.c.bf16 %v4954_v10, %v4950_v35  ;;  %v8103_v10 = vld [vmem:[#allocation10 + $0x130] sm:$0xf]  ;;  %v4882_v35 = vadd.f32 %v10003_v55, %v3999_v31 }
 0x5b7   :  { %5455 = vmatpush.bf16.msra.mxu3 %v8056_v58  ;;  %v8789_v58 = vld [vmem:[#allocation10 + $0x14] sm:$0xf0] }
 0x5b8   :  { %v4867_v54 = vpop.f32.mrf.mxu1  ;;  %v4924_v13 = vpop.f32.mrf.mxu0 }
 0x5b9   :  { %v4868_v56 = vadd.f32 %v4867_v54, %v4849_v5  ;;  %v8120_v54 = vor.u32 %v8829_v61, %v8119_v37  ;;  %v8191_v37 = vld [vmem:[#allocation10 + $0x1e0] sm:$0xf]  ;;  %v8847_v61 = vld [vmem:[#allocation10 + $0x1e4] sm:$0xf0] }
 0x5ba   :  { %v8192_v28 = vor.u32 %v8847_v61, %v8191_v37 }
 0x5bb   :  { %v4958_v30 = vmax.f32 %v4868_v56, 0.0  ;;  %v8112_v56 = vor.u32 %v8827_v40, %v8111_v9  ;;  %5456 = vmatpush.bf16.msra.mxu3 %v8048_v3  ;;  %v8183_v9 = vld [vmem:[#allocation10 + $0x1d0] sm:$0xf]  ;;  %v8088_v40 = vor.u32 %v8821_v27, %v8087_v26  ;;  %v8803_v3 = vld [vmem:[#allocation10 + $0x84] sm:$0xf0] }
 0x5bc   :  { %v8184_v8 = vor.u32 %v8845_v6, %v8183_v9  ;;  %v8810_v26 = vld [vmem:[#allocation10 + $0xc4] sm:$0xf]  ;;  %v8049_v6 = vld [vmem:[#allocation10 + $0xc8] sm:$0xf0] }
 0x5c0   :  { %v4869_v18 = vpop.f32.mrf.mxu1 }
 0x5c1   :  { %v4870_v17 = vadd.f32 %v4869_v18, %v4851_v39  ;;  %v4907_v39 = vpop.f32.mrf.mxu3  ;;  %v7975_v18 = vld [vmem:[#allocation10 + $0x30] sm:$0xf] }
 0x5c2   :  { %v4908_v34 = vadd.f32 %v4907_v39, %v4889_v32  ;;  %v7976_v51 = vor.u32 %v8793_v36, %v7975_v18  ;;  %v8015_v39 = vld [vmem:[#allocation10 + $0x80] sm:$0xf]  ;;  %v8819_v36 = vld [vmem:[#allocation10 + $0x104] sm:$0xf0] }
 0x5c3   :  { %v4962_v45 = vmax.f32 %v4870_v17, 0.0  ;;  %v4884_v17 = vadd.f32 %v10010_v52, %v3999_v31  ;;  %v4901_v52 = vadd.f32 %v10005_v50, %v4882_v35  ;;  %v8199_v50 = vld [vmem:[#allocation10 + $0x1f0] sm:$0xf]  ;;  %v8016_v32 = vor.u32 %v8803_v3, %v8015_v39  ;;  %v8113_v39 = vld [vmem:[#allocation10 + $0x148] sm:$0xf0] }
 0x5c4   :  { %5444 = vmatpush.bf16.msra.mxu1 %v7976_v51  ;;  %v8200_v59 = vor.u32 %v8849_v38, %v8199_v50  ;;  %v7959_v31 = vld [vmem:[#allocation10 + $0x10] sm:$0xf]  ;;  %v8796_v50 = vld [vmem:[#allocation10 + $0x54] sm:$0xf]  ;;  %v7993_v38 = vld [vmem:[#allocation10 + $0x58] sm:$0xf0] }
 0x5c5   :  { %v4970_v43 = vpack.c.bf16 %v4962_v45, %v4958_v30  ;;  %v4906_v30 = vadd.f32 %v4905_v49, %v4887_v12  ;;  %v8809_v45 = vld [vmem:[#allocation10 + $0xb4] sm:$0xf0]  ;;  %v4903_v57 = vadd.f32 %v10012_v29, %v4884_v17  ;;  %v4920_v55 = vadd.f32 %v10007_v2, %v4901_v52  ;;  %v7967_v2 = vld [vmem:[#allocation10 + $0x20] sm:$0xf]  ;;  %v8787_v12 = vld [vmem:[#allocation10 + $0x4] sm:$0xf0] }
 0x5c6   :  { %v8040_v21 = vor.u32 %v8809_v45, %v8039_v0  ;;  %v8175_v0 = vld [vmem:[#allocation10 + $0x1c0] sm:$0xf]  ;;  %v8843_v17 = vld [vmem:[#allocation10 + $0x1c4] sm:$0xf0]  ;;  %v8800_v45 = vld [vmem:[#allocation10 + $0x74] sm:$0xf] }
 0x5c7   :  { %5007 = vmatpush.bf16.msra.mxu0 %v4970_v43  ;;  %v8825_v43 = vld [vmem:[#allocation10 + $0x134] sm:$0xf0]  ;;  %v4925_v15 = vadd.f32 %v4924_v13, %v4906_v30  ;;  %v4922_v7 = vadd.f32 %v10014_v4, %v4903_v57  ;;  %v8176_v35 = vor.u32 %v8843_v17, %v8175_v0  ;;  %v8073_v57 = vld [vmem:[#allocation10 + $0xf8] sm:$0xf0]  ;;  %v8808_v0 = vld [vmem:[#allocation10 + $0xb4] sm:$0xf] }
 0x5c8   :  { %v10016_v42 = vpop.f32.mrf.mxu1  ;;  %v8104_v48 = vor.u32 %v8825_v43, %v8103_v10  ;;  %5457 = vmatpush.bf16.msra.mxu3 %v8040_v21  ;;  %v8009_v10 = vld [vmem:[#allocation10 + $0x78] sm:$0xf0]  ;;  %v8816_v43 = vld [vmem:[#allocation10 + $0xf4] sm:$0xf]  ;;  %v8841_v52 = vld [vmem:[#allocation10 + $0x1b4] sm:$0xf0] }
 0x5c9   :  { %v4939_v24 = vadd.f32 %v10016_v42, %v4920_v55  ;;  %v8807_v42 = vld [vmem:[#allocation10 + $0xa4] sm:$0xf0]  ;;  %v8076_v51 = vor.u32 %v8816_v43, %v8073_v57  ;;  %v8830_v55 = vld [vmem:[#allocation10 + $0x164] sm:$0xf]  ;;  %v8143_v57 = vld [vmem:[#allocation10 + $0x180] sm:$0xf] }
 0x5ca   :  { %v8032_v46 = vor.u32 %v8807_v42, %v8031_v14  ;;  %v7996_v14 = vor.u32 %v8796_v50, %v7993_v38  ;;  %v8193_v50 = vld [vmem:[#allocation10 + $0x1e8] sm:$0xf0] }
 0x5cb   :  { %5008 = vmatpush.bf16.msra.mxu0 %v4966_v47  ;;  %v4926_v47 = vpop.f32.mrf.mxu0  ;;  %v4951_v4 = vmax.f32 %v4939_v24, 0.0 }
 0x5cc   :  { %v4927_v19 = vadd.f32 %v4926_v47, %v4908_v34  ;;  %5458 = vmatpush.bf16.msra.mxu3 %v8032_v46  ;;  %v8012_v47 = vor.u32 %v8800_v45, %v8009_v10  ;;  %v8832_v34 = vld [vmem:[#allocation10 + $0x174] sm:$0xf]  ;;  %v8837_v45 = vld [vmem:[#allocation10 + $0x194] sm:$0xf0] }
 0x5ce   :  { %7947 = vmatmul.msk.bf16.vlgmr.msra.gmra.mxu0 %vm366_vm10, %v9996_v63 }
 0x5cf   :  { %5466 = vmatpush.bf16.msrb.mxu0 %v8136_v41 }
 0x5d0   :  { %v10020_v16 = vpop.f32.mrf.mxu1 }
 0x5d1   :  { %v4941_v41 = vadd.f32 %v10020_v16, %v4922_v7  ;;  %v8791_v16 = vld [vmem:[#allocation10 + $0x24] sm:$0xf0]  ;;  %v8798_v7 = vld [vmem:[#allocation10 + $0x64] sm:$0xf] }
 0x5d3   :  { %5467 = vmatpush.bf16.msrb.mxu0 %v8128_v62  ;;  %v4955_v44 = vmax.f32 %v4941_v41, 0.0  ;;  %v7968_v62 = vor.u32 %v8791_v16, %v7967_v2  ;;  %v8129_v41 = vld [vmem:[#allocation10 + $0x168] sm:$0xf0]  ;;  %v8121_v2 = vld [vmem:[#allocation10 + $0x158] sm:$0xf0] }
 0x5d4   :  { %v216_v1 = vpop.xlane.xlu0 %215 }
 0x5d5   :  { %v4967_v13 = vpack.c.bf16 %v4955_v44, %v4951_v4  ;;  %5445 = vmatpush.bf16.msra.mxu1 %v7968_v62  ;;  %v8812_v4 = vld [vmem:[#allocation10 + $0xd4] sm:$0xf]  ;;  %v217_v20 = vmax.f32 %v216_v1, 1.0 }
 0x5d7   :  { %5468 = vmatpush.bf16.msrb.mxu0 %v8120_v54  ;;  %v8023_v54 = vld [vmem:[#allocation10 + $0x90] sm:$0xf]  ;;  %8887 = vrcp.f32 %v217_v20  ;;  %v5038_v37 = vand.u32 2147483648, %v217_v20  ;;  %vm5032_vm13 = vweird.f32 %v217_v20 }
 0x5d8   :  { %v4943_v5 = vpop.f32.mrf.mxu1  ;;  %v8024_v60 = vor.u32 %v8805_v53, %v8023_v54 }
 0x5d9   :  { %v4944_v49 = vadd.f32 %v4943_v5, %v4925_v15  ;;  %v7951_v5 = vld [vmem:[#allocation10] sm:$0xf]  ;;  %v8137_v15 = vld [vmem:[#allocation10 + $0x178] sm:$0xf0] }
 0x5da   :  { %v7952_v18 = vor.u32 %v8787_v12, %v7951_v5  ;;  %5459 = vmatpush.bf16.msra.mxu3 %v8024_v60  ;;  %v8140_v21 = vor.u32 %v8832_v34, %v8137_v15  ;;  %v7985_v60 = vld [vmem:[#allocation10 + $0x48] sm:$0xf0]  ;;  %v8052_v12 = vor.u32 %v8810_v26, %v8049_v6  ;;  %v8835_v34 = vld [vmem:[#allocation10 + $0x184] sm:$0xf0]  ;;  %v8818_v26 = vld [vmem:[#allocation10 + $0x104] sm:$0xf] }
 0x5db   :  { %5469 = vmatpush.bf16.msrb.mxu0 %v8112_v56  ;;  %v4959_v11 = vmax.f32 %v4944_v49, 0.0  ;;  %v8079_v56 = vld [vmem:[#allocation10 + $0x100] sm:$0xf]  ;;  %v8814_v49 = vld [vmem:[#allocation10 + $0xe4] sm:$0xf] }
 0x5dc   :  { %v8080_v30 = vor.u32 %v8819_v36, %v8079_v56  ;;  %v7977_v36 = vld [vmem:[#allocation10 + $0x38] sm:$0xf0] }
 0x5dd   :  { %v8888_v46 = vpop.eup %8887 }
 0x5de   :  { %5460 = vmatpush.bf16.msra.mxu3 %v8016_v32  ;;  %vm5033_vm14 = vweird.f32 %v8888_v46  ;;  %v8041_v32 = vld [vmem:[#allocation10 + $0xb8] sm:$0xf0] }
 0x5df   :  { %5470 = vmatpush.bf16.msrb.mxu0 %v8104_v48  ;;  %v8167_v48 = vld [vmem:[#allocation10 + $0x1b0] sm:$0xf]  ;;  %vm5034_vm15 = vmor %vm5032_vm13, %vm5033_vm14  ;;  %v8044_v10 = vor.u32 %v8808_v0, %v8041_v32  ;;  %v8169_v0 = vld [vmem:[#allocation10 + $0x1b8] sm:$0xf0] }
 0x5e0   :  { %v4945_v33 = vpop.f32.mrf.mxu1  ;;  %v8838_v32 = vld [vmem:[#allocation10 + $0x1a4] sm:$0xf] }
 0x5e1   :  { %v4946_v29 = vadd.f32 %v4945_v33, %v4927_v19  ;;  %v8001_v19 = vld [vmem:[#allocation10 + $0x68] sm:$0xf0] }
 0x5e2   :  { %v8065_v33 = vld [vmem:[#allocation10 + $0xe8] sm:$0xf0]  ;;  %v8004_v24 = vor.u32 %v8798_v7, %v8001_v19  ;;  %5505 = vmatpush.bf16.msrb.mxu3 %v8076_v51  ;;  %v8848_v51 = vld [vmem:[#allocation10 + $0x1f4] sm:$0xf]  ;;  %v8790_v19 = vld [vmem:[#allocation10 + $0x24] sm:$0xf] }
 0x5e3   :  { %v4963_v22 = vmax.f32 %v4946_v29, 0.0  ;;  %5471 = vmatpush.bf16.msrb.mxu0 %v8096_v23  ;;  %v8168_v29 = vor.u32 %v8841_v52, %v8167_v48  ;;  %v8068_v44 = vor.u32 %v8814_v49, %v8065_v33  ;;  %v5028_v23 = vmul.f32 %v8888_v46, %v217_v20  ;;  %v8201_v52 = vld [vmem:[#allocation10 + $0x1f8] sm:$0xf0]  ;;  %v7969_v49 = vld [vmem:[#allocation10 + $0x28] sm:$0xf0] }
 0x5e4   :  { %v8144_v48 = vor.u32 %v8835_v34, %v8143_v57 }
 0x5e5   :  { %v4971_v25 = vpack.c.bf16 %v4963_v22, %v4959_v11  ;;  %v8159_v11 = vld [vmem:[#allocation10 + $0x1a0] sm:$0xf]  ;;  %v8839_v22 = vld [vmem:[#allocation10 + $0x1a4] sm:$0xf0]  ;;  %v5029_v61 = vsub.f32 1.0, %v5028_v23 }
 0x5e6   :  { %v8160_v16 = vor.u32 %v8839_v22, %v8159_v11  ;;  %5506 = vmatpush.bf16.msrb.mxu3 %v8068_v44  ;;  %v8822_v11 = vld [vmem:[#allocation10 + $0x124] sm:$0xf]  ;;  %v8097_v44 = vld [vmem:[#allocation10 + $0x128] sm:$0xf0]  ;;  %v8844_v23 = vld [vmem:[#allocation10 + $0x1d4] sm:$0xf] }
 0x5e7   :  { %5020 = vmatpush.bf16.msra.mxu2 %v4971_v25  ;;  %5472 = vmatpush.bf16.msrb.mxu0 %v8088_v40  ;;  %v8132_v25 = vor.u32 %v8830_v55, %v8129_v41  ;;  %v8204_v55 = vor.u32 %v8848_v51, %v8201_v52  ;;  %v7972_v41 = vor.u32 %v8790_v19, %v7969_v49 }
 0x5eb   :  { %5021 = vmatpush.bf16.msra.mxu2 %v4967_v13  ;;  %5473 = vmatpush.bf16.msrb.mxu0 %v8080_v30  ;;  %v8828_v13 = vld [vmem:[#allocation10 + $0x154] sm:$0xf]  ;;  %v8151_v30 = vld [vmem:[#allocation10 + $0x190] sm:$0xf] }
 0x5ec   :  { %v8124_v42 = vor.u32 %v8828_v13, %v8121_v2  ;;  %v8152_v43 = vor.u32 %v8837_v45, %v8151_v30  ;;  %v7961_v13 = vld [vmem:[#allocation10 + $0x18] sm:$0xf0]  ;;  %v8804_v2 = vld [vmem:[#allocation10 + $0x94] sm:$0xf]  ;;  %v8161_v30 = vld [vmem:[#allocation10 + $0x1a8] sm:$0xf0] }
 0x5ed   :  { %v8164_v45 = vor.u32 %v8838_v32, %v8161_v30  ;;  %v8852_v32 = vld [vmem:[#allocation11 + $0x10] sm:$0xff] }
 0x5ee   :  { %7948 = vmatmul.msk.bf16.vlgmr.msra.gmra.mxu2 %vm366_vm10, %v9996_v63  ;;  %v7960_v63 = vor.u32 %v8789_v58, %v7959_v31  ;;  %v5036_v31 = vand.u32 2147483647, %v217_v20  ;;  %v5039_v58 = vor.u32 1.1754944e-38, %v5038_v37  ;;  %v8185_v37 = vld [vmem:[#allocation10 + $0x1d8] sm:$0xf0]  ;;  %v8864_v30 = vld [vmem:[#allocation11 + $0x70] sm:$0xff] }
 0x5ef   :  { %5479 = vmatpush.bf16.msrb.mxu2 %v8200_v59  ;;  %5518 = vmatpush.bf16.msra.mxu0 %v8140_v21  ;;  %v8057_v59 = vld [vmem:[#allocation10 + $0xd8] sm:$0xf0] }
 0x5f0   :  { %5446 = vmatpush.bf16.msra.mxu1 %v7960_v63  ;;  %v8060_v62 = vor.u32 %v8812_v4, %v8057_v59  ;;  %vm5037_vm0 = vcmp.eq.f32.partialorder %v5036_v31, 8.507059e+37  ;;  %v8794_v63 = vld [vmem:[#allocation10 + $0x44] sm:$0xf]  ;;  %v8100_v4 = vor.u32 %v8822_v11, %v8097_v44  ;;  %v8788_v59 = vld [vmem:[#allocation10 + $0x14] sm:$0xf] }
 0x5f1   :  { %v7988_v40 = vor.u32 %v8794_v63, %v7985_v60  ;;  %v7953_v31 = vld [vmem:[#allocation10 + $0x8] sm:$0xf0]  ;;  %v8188_v63 = vor.u32 %v8844_v23, %v8185_v37  ;;  %v8856_v23 = vld [vmem:[#allocation11 + $0x30] sm:$0xff] }
 0x5f2   :  { %5507 = vmatpush.bf16.msrb.mxu3 %v8060_v62  ;;  %v8820_v62 = vld [vmem:[#allocation10 + $0x114] sm:$0xf]  ;;  %v5114_v44 = vld [vmem:[#allocation13 + $0x5] ss:$8 sm:$0x3] }
 0x5f3   :  { %5480 = vmatpush.bf16.msrb.mxu2 %v8192_v28  ;;  %5519 = vmatpush.bf16.msra.mxu0 %v8132_v25  ;;  %v5030_v28 = vmul.f32 %v8888_v46, %v5029_v61  ;;  %v8846_v25 = vld [vmem:[#allocation10 + $0x1e4] sm:$0xf] }
 0x5f4   :  { %5447 = vmatpush.bf16.msra.mxu1 %v7952_v18  ;;  %v8792_v18 = vld [vmem:[#allocation10 + $0x34] sm:$0xf]  ;;  %v8196_v1 = vor.u32 %v8846_v25, %v8193_v50  ;;  %v8786_v61 = vld [vmem:[#allocation10 + $0x4] sm:$0xf]  ;;  %v5116_v25 = vperm.slane %v5114_v44, 0  ;;  %v9141_v50 = vmov 2.0  }
 0x5f5   :  { %v5031_v54 = vadd.f32 %v8888_v46, %v5030_v28  ;;  %v7980_v17 = vor.u32 %v8792_v18, %v7977_v36  ;;  %v8802_v28 = vld [vmem:[#allocation10 + $0x84] sm:$0xf]  ;;  %v8840_v36 = vld [vmem:[#allocation10 + $0x1b4] sm:$0xf]  ;;  %8889 = vrcp.f32 %v9141_v50 }
 0x5f6   :  { %5508 = vmatpush.bf16.msrb.mxu3 %v8052_v12 }
 0x5f7   :  { %5481 = vmatpush.bf16.msrb.mxu2 %v8184_v8  ;;  %5520 = vmatpush.bf16.msra.mxu0 %v8124_v42  ;;  %v5035_v53 = vsel %vm5034_vm15, %v8888_v46, %v5031_v54  ;;  %v8826_v8 = vld [vmem:[#allocation10 + $0x144] sm:$0xf]  ;;  %v8089_v42 = vld [vmem:[#allocation10 + $0x118] sm:$0xf0]  ;;  %v8017_v54 = vld [vmem:[#allocation10 + $0x88] sm:$0xf0] }
 0x5f8   :  { %5492 = vmatpush.bf16.msrb.mxu1 %v8012_v47  ;;  %v10033_v9 = vsel %vm5037_vm0, %v5039_v58, %v5035_v53  ;;  %v8116_v56 = vor.u32 %v8826_v8, %v8113_v39  ;;  %v8105_v47 = vld [vmem:[#allocation10 + $0x138] sm:$0xf0]  ;;  %v8092_v46 = vor.u32 %v8820_v62, %v8089_v42  ;;  %v7956_v58 = vor.u32 %v8786_v61, %v7953_v31  ;;  %v8842_v8 = vld [vmem:[#allocation10 + $0x1c4] sm:$0xf]  ;;  %v8177_v39 = vld [vmem:[#allocation10 + $0x1c8] sm:$0xf0] }
 0x5f9   :  { %v8020_v60 = vor.u32 %v8802_v28, %v8017_v54  ;;  %v8857_v62 = vld [vmem:[#allocation11 + $0x38] sm:$0xff]  ;;  %v5117_v42 = vperm.slane %v5114_v44, 1  ;;  %v8855_v54 = vld [vmem:[#allocation11 + $0x28] sm:$0xff]  ;;  %v8860_v44 = vld [vmem:[#allocation11 + $0x50] sm:$0xff] }
 0x5fa   :  { %5509 = vmatpush.bf16.msrb.mxu3 %v8044_v10  ;;  %v8836_v10 = vld [vmem:[#allocation10 + $0x194] sm:$0xf] }
 0x5fb   :  { %5482 = vmatpush.bf16.msrb.mxu2 %v8176_v35  ;;  %5521 = vmatpush.bf16.msra.mxu0 %v8116_v56  ;;  %v8824_v35 = vld [vmem:[#allocation10 + $0x134] sm:$0xf]  ;;  %v8180_v56 = vor.u32 %v8842_v8, %v8177_v39  ;;  %v8853_v39 = vld [vmem:[#allocation11 + $0x18] sm:$0xff] }
 0x5fc   :  { %5493 = vmatpush.bf16.msrb.mxu1 %v8004_v24  ;;  %v8108_v15 = vor.u32 %v8824_v35, %v8105_v47  ;;  %v8033_v24 = vld [vmem:[#allocation10 + $0xa8] sm:$0xf0]  ;;  %v8834_v35 = vld [vmem:[#allocation10 + $0x184] sm:$0xf] }
 0x5fd   :  { %v8145_v47 = vld [vmem:[#allocation10 + $0x188] sm:$0xf0] }
 0x5fe   :  { %v8148_v57 = vor.u32 %v8834_v35, %v8145_v47 }
 0x5ff   :  { %5483 = vmatpush.bf16.msrb.mxu2 %v8168_v29  ;;  %5522 = vmatpush.bf16.msra.mxu0 %v8108_v15  ;;  %v8806_v29 = vld [vmem:[#allocation10 + $0xa4] sm:$0xf] }
 0x600   :  { %5494 = vmatpush.bf16.msrb.mxu1 %v7996_v14  ;;  %v8036_v22 = vor.u32 %v8806_v29, %v8033_v24  ;;  %v8025_v14 = vld [vmem:[#allocation10 + $0x98] sm:$0xf0] }
 0x601   :  { %v8028_v20 = vor.u32 %v8804_v2, %v8025_v14 }
 0x602   :  { %5510 = vmatpush.bf16.msrb.mxu3 %v8036_v22 }
 0x603   :  { %5484 = vmatpush.bf16.msrb.mxu2 %v8160_v16  ;;  %v7964_v16 = vor.u32 %v8788_v59, %v7961_v13  ;;  %5523 = vmatpush.bf16.msra.mxu0 %v8100_v4 }
 0x604   :  { %5495 = vmatpush.bf16.msrb.mxu1 %v7988_v40 }
 0x606   :  { %5511 = vmatpush.bf16.msrb.mxu3 %v8028_v20 }
 0x607   :  { %5485 = vmatpush.bf16.msrb.mxu2 %v8152_v43  ;;  %5524 = vmatpush.bf16.msra.mxu0 %v8092_v46 }
 0x608   :  { %5496 = vmatpush.bf16.msrb.mxu1 %v7980_v17  ;;  %v8172_v17 = vor.u32 %v8840_v36, %v8169_v0 }
 0x60a   :  { %5512 = vmatpush.bf16.msrb.mxu3 %v8020_v60 }
 0x60b   :  { %5486 = vmatpush.bf16.msrb.mxu2 %v8144_v48 }
 0x60c   :  { %5497 = vmatpush.bf16.msrb.mxu1 %v7972_v41 }
 0x60f   :  { %5531 = vmatpush.bf16.msra.mxu2 %v8204_v55 }
 0x610   :  { %5498 = vmatpush.bf16.msrb.mxu1 %v7964_v16 }
 0x611   :  { %v4984_v27 = vpop.f32.mrf.mxu2 }
 0x612   :  { %v5041_v5 = vmul.f32 %v10033_v9, %v4984_v27  ;;  %v8081_v27 = vld [vmem:[#allocation10 + $0x108] sm:$0xf0] }
 0x613   :  { %5532 = vmatpush.bf16.msra.mxu2 %v8196_v1  ;;  %v8084_v40 = vor.u32 %v8818_v26, %v8081_v27  ;;  %v8854_v27 = vld [vmem:[#allocation11 + $0x20] sm:$0xff] }
 0x614   :  { %v10036_v3 = vpack.c.bf16 %v5041_v5, %v5041_v5  ;;  %5499 = vmatpush.bf16.msrb.mxu1 %v7956_v58 }
 0x615   :  { %5525 = vmatpush.bf16.msra.mxu0 %v8084_v40 }
 0x616   :  { %5448 = vmatmul.bf16.vlgmr.msra.gmra.mxu1 %v10036_v3 }
 0x617   :  { %5533 = vmatpush.bf16.msra.mxu2 %v8188_v63 }
 0x618   :  { %5763 = vmatpush.bf16.msra.mxu1 %v8857_v62  ;;  %v5589_v62 = vld [vmem:[#allocation13 + $0x6] ss:$8 sm:$0x3] }
 0x619   :  { %v4986_v7 = vpop.f32.mrf.mxu2 }
 0x61b   :  { %5534 = vmatpush.bf16.msra.mxu2 %v8180_v56  ;;  %v8865_v56 = vld [vmem:[#allocation11 + $0x78] sm:$0xff] }
 0x61c   :  { %5764 = vmatpush.bf16.msra.mxu1 %v8856_v23 }
 0x61f   :  { %5535 = vmatpush.bf16.msra.mxu2 %v8172_v17 }
 0x620   :  { %5765 = vmatpush.bf16.msra.mxu1 %v8855_v54 }
 0x623   :  { %5536 = vmatpush.bf16.msra.mxu2 %v8164_v45 }
 0x624   :  { %5766 = vmatpush.bf16.msra.mxu1 %v8854_v27 }
 0x626   :  { %5500 = vmatmul.bf16.vlgmr.msrb.gmra.mxu1 %v10036_v3  ;;  %v8153_v3 = vld [vmem:[#allocation10 + $0x198] sm:$0xf0] }
 0x627   :  { %v8156_v43 = vor.u32 %v8836_v10, %v8153_v3 }
 0x628   :  { %5767 = vmatpush.bf16.msra.mxu1 %v8853_v39 }
 0x629   :  { %5537 = vmatpush.bf16.msra.mxu2 %v8156_v43 }
 0x62c   :  { %5768 = vmatpush.bf16.msra.mxu1 %v8852_v32 }
 0x62d   :  { %5538 = vmatpush.bf16.msra.mxu2 %v8148_v57  ;;  %v8851_v57 = vld [vmem:[#allocation11 + $0x8] sm:$0xff] }
 0x630   :  { %5769 = vmatpush.bf16.msra.mxu1 %v8851_v57 }
 0x631   :  { %v4997_v21 = vpop.f32.mrf.mxu3 }
 0x632   :  { %v5042_v33 = vmul.f32 %v10033_v9, %v4997_v21 }
 0x634   :  { %v5110_v38 = vpack.c.bf16 %v5042_v33, %v5042_v33 }
 0x636   :  { %5461 = vmatmul.bf16.vlgmr.msra.gmra.mxu3 %v5110_v38 }
 0x637   :  { %5776 = vmatpush.bf16.msra.mxu3 %v8865_v56 }
 0x639   :  { %v4999_v53 = vpop.f32.mrf.mxu3 }
 0x63b   :  { %5777 = vmatpush.bf16.msra.mxu3 %v8864_v30 }
 0x646   :  { %5513 = vmatmul.bf16.vlgmr.msrb.gmra.mxu3 %v5110_v38  ;;  %v8890_v38 = vpop.eup %8889 }
 0x647   :  { %v5560_v59 = vmul.f32 2.0, %v8890_v38  ;;  %vm5564_vm2 = vweird.f32 %v8890_v38 }
 0x649   :  { %v5561_v14 = vsub.f32 1.0, %v5560_v59 }
 0x64b   :  { %v5010_v6 = vpop.f32.mrf.mxu0  ;;  %v5562_v46 = vmul.f32 %v8890_v38, %v5561_v14 }
 0x64c   :  { %v5043_v5 = vmul.f32 %v10033_v9, %v5010_v6 }
 0x64d   :  { %v5563_v58 = vadd.f32 %v8890_v38, %v5562_v46  ;;  %v5593_v46 = vperm.slane %v5589_v62, 0 }
 0x64e   :  { %v5111_v12 = vpack.c.bf16 %v5043_v5, %v5043_v5 }
 0x64f   :  { %v10044_v26 = vsel %vm5564_vm2, %v8890_v38, %v5563_v58  ;;  %v8859_v38 = vld [vmem:[#allocation11 + $0x48] sm:$0xff] }
 0x650   :  { %5474 = vmatmul.bf16.vlgmr.msrb.gmra.mxu0 %v5111_v12 }
 0x653   :  { %v5012_v18 = vpop.f32.mrf.mxu0 }
 0x660   :  { %5526 = vmatmul.bf16.vlgmr.msra.gmra.mxu0 %v5111_v12 }
 0x671   :  { %v5023_v34 = vpop.f32.mrf.mxu2 }
 0x672   :  { %v5044_v15 = vmul.f32 %v10033_v9, %v5023_v34  ;;  %v8863_v34 = vld [vmem:[#allocation11 + $0x68] sm:$0xff] }
 0x673   :  { %5778 = vmatpush.bf16.msra.mxu3 %v8863_v34 }
 0x674   :  { %v5112_v51 = vpack.c.bf16 %v5044_v15, %v5044_v15 }
 0x676   :  { %5487 = vmatmul.bf16.vlgmr.msrb.gmra.mxu2 %v5112_v51 }
 0x679   :  { %v5025_v21 = vpop.f32.mrf.mxu2 }
 0x686   :  { %5539 = vmatmul.bf16.vlgmr.msra.gmra.mxu2 %v5112_v51 }
 0x693   :  { %v5449_v48 = vpop.f32.mrf.mxu1 }
 0x694   :  { %v5450_v9 = vadd.f32 %v5449_v48, %v5116_v25 }
 0x69b   :  { %v5451_v52 = vpop.f32.mrf.mxu1 }
 0x69c   :  { %v8850_v52 = vld [vmem:[#allocation11] sm:$0xff] }
 0x69d   :  { %5770 = vmatpush.bf16.msra.mxu1 %v8850_v52 }
 0x6a3   :  { %v5501_v19 = vpop.f32.mrf.mxu1 }
 0x6a4   :  { %v5502_v61 = vadd.f32 %v5501_v19, %v5117_v42 }
 0x6ab   :  { %v5503_v33 = vpop.f32.mrf.mxu1 }
 0x6b9   :  { %v5462_v7 = vpop.f32.mrf.mxu3 }
 0x6ba   :  { %v5463_v4 = vadd.f32 %v5462_v7, %v5450_v9  ;;  %v8862_v7 = vld [vmem:[#allocation11 + $0x60] sm:$0xff] }
 0x6bb   :  { %5779 = vmatpush.bf16.msra.mxu3 %v8862_v7 }
 0x6c1   :  { %v5464_v49 = vpop.f32.mrf.mxu3 }
 0x6c9   :  { %v5514_v55 = vpop.f32.mrf.mxu3 }
 0x6ca   :  { %v5515_v63 = vadd.f32 %v5514_v55, %v5502_v61 }
 0x6cd   :  { %v5475_v41 = vpop.f32.mrf.mxu0 }
 0x6ce   :  { %v5476_v13 = vadd.f32 %v5475_v41, %v5463_v4  ;;  %v8861_v41 = vld [vmem:[#allocation11 + $0x58] sm:$0xff] }
 0x6cf   :  { %5780 = vmatpush.bf16.msra.mxu3 %v8861_v41 }
 0x6d1   :  { %v5516_v29 = vpop.f32.mrf.mxu3 }
 0x6d3   :  { %5781 = vmatpush.bf16.msra.mxu3 %v8860_v44 }
 0x6d5   :  { %v5477_v24 = vpop.f32.mrf.mxu0 }
 0x6d7   :  { %5782 = vmatpush.bf16.msra.mxu3 %v8859_v38 }
 0x6dd   :  { %v5527_v11 = vpop.f32.mrf.mxu0 }
 0x6de   :  { %v5528_v6 = vadd.f32 %v5527_v11, %v5515_v63 }
 0x6e5   :  { %v5529_v22 = vpop.f32.mrf.mxu0 }
 0x6f9   :  { %v5488_v2 = vpop.f32.mrf.mxu2 }
 0x6fa   :  { %v5489_v16 = vadd.f32 %v5488_v2, %v5476_v13  ;;  %v8858_v2 = vld [vmem:[#allocation11 + $0x40] sm:$0xff] }
 0x6fb   :  { %5783 = vmatpush.bf16.msra.mxu3 %v8858_v2 }
 0x6fc   :  { %v5545_v1 = vsel %vm5544_vm1, %v5489_v16, 0.0 }
 0x6fd   :  { %v5546_v20 = vrot.slane %v5545_v1, 4 }
 0x6ff   :  { %v5547_v37 = vadd.f32 %v5546_v20, %v5545_v1 }
 0x701   :  { %v5548_v31 = vrot.slane %v5547_v37, 2  ;;  %v5490_v28 = vpop.f32.mrf.mxu2 }
 0x703   :  { %v5549_v53 = vadd.f32 %v5548_v31, %v5547_v37  ;;  %v5591_v37 = vld [vmem:[#allocation13 + $0x16] ss:$8 sm:$0x3] }
 0x704   :  { %v5624_v54 = vperm.slane %v5591_v37, 0 }
 0x705   :  { %v5550_v60 = vrot.slane %v5549_v53, 1 }
 0x707   :  { %v5551_v40 = vadd.f32 %v5550_v60, %v5549_v53 }
 0x709   :  { %v5566_v5 = vmul.f32 %v10044_v26, %v5551_v40  ;;  %v5540_v12 = vpop.f32.mrf.mxu2 }
 0x70a   :  { %v5541_v8 = vadd.f32 %v5540_v12, %v5528_v6 }
 0x70b   :  { %v10047_v18 = vsub.f32 %v5489_v16, %v5566_v5 }
 0x70c   :  { %v5552_v36 = vsel %vm5544_vm1, %v5541_v8, 0.0 }
 0x70d   :  { %v5570_v0 = vmul.f32 %v10047_v18, %v10047_v18  ;;  %v5553_v17 = vrot.slane %v5552_v36, 4  ;;  %v5597_v58 = vmul.f32 %v5593_v46, %v10047_v18  ;;  %v5625_v18 = vperm.slane %v5591_v37, 1 }
 0x70f   :  { %v5572_v45 = vsel %vm5544_vm1, %v5570_v0, 0.0  ;;  %v5554_v10 = vadd.f32 %v5553_v17, %v5552_v36 }
 0x710   :  { %v5573_v3 = vrot.slane %v5572_v45, 4 }
 0x711   :  { %v5555_v43 = vrot.slane %v5554_v10, 2  ;;  %v5542_v35 = vpop.f32.mrf.mxu2 }
 0x712   :  { %v5574_v47 = vadd.f32 %v5573_v3, %v5572_v45 }
 0x713   :  { %v5556_v15 = vadd.f32 %v5555_v43, %v5554_v10  ;;  %v5666_v43 = vld [vmem:[#allocation13 + $0x7] ss:$0 sm:$0xff] }
 0x714   :  { %v5575_v51 = vrot.slane %v5574_v47, 2 }
 0x715   :  { %v5557_v21 = vrot.slane %v5556_v15, 1 }
 0x716   :  { %v5576_v48 = vadd.f32 %v5575_v51, %v5574_v47 }
 0x717   :  { %v5558_v19 = vadd.f32 %v5557_v21, %v5556_v15 }
 0x718   :  { %v5577_v49 = vrot.slane %v5576_v48, 1 }
 0x719   :  { %v5567_v33 = vmul.f32 %v10044_v26, %v5558_v19 }
 0x71a   :  { %v5578_v55 = vadd.f32 %v5577_v49, %v5576_v48 }
 0x71b   :  { %v5569_v29 = vsub.f32 %v5541_v8, %v5567_v33  ;;  %v5594_v8 = vperm.slane %v5589_v62, 1 }
 0x71c   :  { %v5586_v24 = vmul.f32 %v5578_v55, %v10044_v26 }
 0x71d   :  { %v5571_v11 = vmul.f32 %v5569_v29, %v5569_v29  ;;  %v5598_v36 = vmul.f32 %v5594_v8, %v5569_v29 }
 0x71e   :  { %v5599_v22 = vadd.f32 1e-05, %v5586_v24 }
 0x71f   :  { %v5579_v25 = vsel %vm5544_vm1, %v5571_v11, 0.0 }
 0x720   :  { %8891 = vrsqrt.f32 %v5599_v22  ;;  %v5580_v50 = vrot.slane %v5579_v25, 4  ;;  %vm5607_vm4 = vweird.f32 %v5599_v22 }
 0x722   :  { %v5581_v9 = vadd.f32 %v5580_v50, %v5579_v25 }
 0x724   :  { %v5582_v4 = vrot.slane %v5581_v9, 2 }
 0x726   :  { %v8892_v59 = vpop.eup %8891  ;;  %v5583_v13 = vadd.f32 %v5582_v4, %v5581_v9 }
 0x727   :  { %v5602_v16 = vmul.f32 %v8892_v59, %v5599_v22  ;;  %vm5608_vm3 = vweird.f32 %v8892_v59 }
 0x728   :  { %v5584_v14 = vrot.slane %v5583_v13, 1  ;;  %vm5609_vm5 = vmor %vm5607_vm4, %vm5608_vm3 }
 0x729   :  { %v5603_v42 = vmul.f32 %v8892_v59, %v5602_v16 }
 0x72a   :  { %v5585_v1 = vadd.f32 %v5584_v14, %v5583_v13 }
 0x72b   :  { %v5604_v20 = vmul.f32 0.5, %v5603_v42 }
 0x72c   :  { %v5587_v23 = vmul.f32 %v5585_v1, %v10044_v26 }
 0x72d   :  { %v5605_v61 = vsub.f32 1.5, %v5604_v20 }
 0x72e   :  { %v5600_v31 = vadd.f32 1e-05, %v5587_v23 }
 0x72f   :  { %v5606_v28 = vmul.f32 %v8892_v59, %v5605_v61 }
 0x730   :  { %8893 = vrsqrt.f32 %v5600_v31  ;;  %vm5617_vm7 = vweird.f32 %v5600_v31 }
 0x731   :  { %v5610_v53 = vsel %vm5609_vm5, %v8892_v59, %v5606_v28 }
 0x732   :  { %v5621_v63 = vmul.f32 %v5610_v53, %v5597_v58 }
 0x734   :  { %v5628_v60 = vadd.f32 %v5624_v54, %v5621_v63 }
 0x736   :  { %v8894_v27 = vpop.eup %8893  ;;  %v5630_v40 = vmax.f32 %v5628_v60, 0.0 }
 0x737   :  { %v5612_v6 = vmul.f32 %v8894_v27, %v5600_v31  ;;  %vm5618_vm6 = vweird.f32 %v8894_v27 }
 0x738   :  { %v5664_v5 = vpack.c.bf16 %v5630_v40, %v5630_v40  ;;  %vm5619_vm8 = vmor %vm5617_vm7, %vm5618_vm6 }
 0x739   :  { %v5613_v12 = vmul.f32 %v8894_v27, %v5612_v6 }
 0x73a   :  { %5771 = vmatmul.bf16.vlgmr.msra.gmra.mxu1 %v5664_v5 }
 0x73b   :  { %v5614_v26 = vmul.f32 0.5, %v5613_v12 }
 0x73d   :  { %v5615_v39 = vsub.f32 1.5, %v5614_v26 }
 0x73f   :  { %v5616_v56 = vmul.f32 %v8894_v27, %v5615_v39 }
 0x741   :  { %v5620_v0 = vsel %vm5619_vm8, %v8894_v27, %v5616_v56 }
 0x742   :  { %v5622_v17 = vmul.f32 %v5620_v0, %v5598_v36 }
 0x744   :  { %v5629_v32 = vadd.f32 %v5625_v18, %v5622_v17 }
 0x746   :  { %v5631_v30 = vmax.f32 %v5629_v32, 0.0 }
 0x748   :  { %v5665_v45 = vpack.c.bf16 %v5631_v30, %v5631_v30 }
 0x74a   :  { %5784 = vmatmul.bf16.vlgmr.msra.gmra.mxu3 %v5665_v45 }
 0x7b7   :  { %v5772_v10 = vpop.f32.mrf.mxu1 }
 0x7b8   :  { %v5773_v35 = vadd.f32 %v5772_v10, %v5666_v43 }
 0x7bf   :  { %v5774_v3 = vpop.f32.mrf.mxu1 }
 0x7cd   :  { %v5785_v47 = vpop.f32.mrf.mxu3 }
 0x7ce   :  { %v5786_v57 = vadd.f32 %v5785_v47, %v5773_v35 }
 0x7d0   :  { %5789 = vst [vmem:[#allocation14] sm:$0x3] %v5786_v57  ;;  %v8269_v34 = vmul.f32 -1.442695, %v5786_v57 }
 0x7d1   :  { %5820 = dma.vmem_to_hbm [thread:$0]  %s5816_s28, 32, %s5818_s10, [#allocation4]  }
 0x7d2   :  { %8895 = vpow2.f32 %v8269_v34 }
 0x7d5   :  { %v5787_v15 = vpop.f32.mrf.mxu3 }
 0x7d8   :  { %v8896_v51 = vpop.eup %8895 }
 0x7d9   :  { %v5793_v21 = vadd.f32 1.0, %v8896_v51 }
 0x7db   :  { %8897 = vrcp.f32 %v5793_v21  ;;  %v5805_v19 = vand.u32 2147483648, %v5793_v21  ;;  %v5803_v33 = vand.u32 2147483647, %v5793_v21  ;;  %vm5799_vm10 = vweird.f32 %v5793_v21 }
 0x7dd   :  { %v5806_v41 = vor.u32 1.1754944e-38, %v5805_v19  ;;  %vm5804_vm12 = vcmp.eq.f32.partialorder %v5803_v33, 8.507059e+37 }
 0x7e1   :  { %v8898_v48 = vpop.eup %8897 }
 0x7e2   :  { %v5795_v52 = vmul.f32 %v8898_v48, %v5793_v21  ;;  %vm5800_vm9 = vweird.f32 %v8898_v48 }
 0x7e3   :  { %vm5801_vm11 = vmor %vm5799_vm10, %vm5800_vm9 }
 0x7e4   :  { %v5796_v7 = vsub.f32 1.0, %v5795_v52 }
 0x7e6   :  { %v5797_v49 = vmul.f32 %v8898_v48, %v5796_v7 }
 0x7e8   :  { %v5798_v55 = vadd.f32 %v8898_v48, %v5797_v49 }
 0x7ea   :  { %v5802_v29 = vsel %vm5801_vm11, %v8898_v48, %v5798_v55 }
 0x7eb   :  { %v5807_v24 = vsel %vm5804_vm12, %v5806_v41, %v5802_v29 }
 0x7ec   :  { %5809 = vst [vmem:[#allocation15] sm:$0x3] %v5807_v24 }
 0x7ed   :  { %5831 = dma.vmem_to_hbm [thread:$0]  %s5827_s6, 32, %s5829_s13, [#allocation16]  }
 0x7ee   :  { %9123 = dma.done.wait [#allocation4], 32  }
 0x7ef   :  { %9124 = vsyncadd [#allocation4], 4294967264 }
 0x7f0   :  { %9125 = dma.done.wait [#allocation16], 32  }
 0x7f1   :  { %9126 = vsyncadd [#allocation16], 4294967264 }
 0x7f2   :  { %5840 = vsyncpa [#allocation3], 1 }
 0x7f3   :  { %5841 = vsyncpa [#allocation6], 1 }
 0x7f4   :  { %5842 = vsyncpa [#allocation9], 1 }
 0x7f5   :  { %5843 = vsyncpa [#allocation12], 1 }
 0x7f6   :  { %5844 = vsyncpa [#allocation4], 1 }
 0x7f7   :  { %5845 = vsyncpa [#allocation16], 1 }

</bundles_post_ra>
